<compile_context>
chip_gen: v7x
topology: tpu7x:2x2x1
jax: 0.10.0
libtpu: 0.0.40
codegen_flags: <defaults>
</compile_context>

<pallas_src>
import jax
import jax.numpy as jnp
from jax.experimental import pallas as pl
from jax.experimental.pallas import tpu as pltpu

# ----------------------- small stand-in config for ViT-B/32 ------------------------
BATCH = 2
CHANNELS = 3
IMAGE = 32          # stand-in for 224
PATCH = 8           # stand-in for 32
NPATCH = (IMAGE // PATCH) ** 2            # 16
SEQ = NPATCH + 1                          # +1 CLS token -> 17
SEQ_PAD = 32                              # padded so bf16 MXU operands tile cleanly
HIDDEN = 64         # stand-in for 768
HEADS = 2           # stand-in for 12
HEAD_DIM = HIDDEN // HEADS                # 32
INTERMEDIATE = 4 * HIDDEN                 # 256 (same 4x ratio as CLIP MLP)
LAYERS = 2          # stand-in for 12
PROJ_DIM = 32       # stand-in for projection_dim=512
PATCH_FEAT = CHANNELS * PATCH * PATCH     # 192
LN_EPS = 1e-5

ROWS = BATCH * SEQ_PAD                    # batch folded into rows: 64
STACK = HEADS * ROWS                      # heads stacked along rows: 128


# ============================== in-kernel helpers ==================================
def _layernorm(x, g, b):
    """x: (T, D) f32, g/b: (1, D) f32."""
    mean = jnp.mean(x, axis=-1, keepdims=True)
    var = jnp.mean((x - mean) ** 2, axis=-1, keepdims=True)
    return (x - mean) * jax.lax.rsqrt(var + LN_EPS) * g + b


def _mm(x, w):
    """bf16 MXU inputs (weights are already bf16 in HBM), f32 accumulation."""
    return jnp.dot(x.astype(jnp.bfloat16), w.astype(jnp.bfloat16),
                   preferred_element_type=jnp.float32)


# ============================== the fused kernel ====================================
def _clip_forward_kernel(
    pix_ref,      # (ROWS, PATCH_FEAT) f32   patch pixels scattered into token rows
    patch_w_ref,  # (PATCH_FEAT, HIDDEN) bf16
    add_ref,      # (SEQ_PAD, HIDDEN) f32    class_emb@CLS + positional embeddings
    pre_ln_ref,   # (2, HIDDEN) f32          [gamma; beta]
    mask_ref,     # (STACK, STACK) f32       additive mask bias (block-diag + key pad)
    ln_ref,       # (1, 4, HIDDEN) f32       [ln1_g, ln1_b, ln2_g, ln2_b] of layer l
    qkv_w_ref,    # (1, HIDDEN, 3*HIDDEN) bf16
    qkv_b_ref,    # (1, 1, 3*HIDDEN) f32
    o_w_ref,      # (1, HIDDEN, HIDDEN) bf16
    o_b_ref,      # (1, 1, HIDDEN) f32
    fc1_w_ref,    # (1, HIDDEN, INTERMEDIATE) bf16
    fc1_b_ref,    # (1, 1, INTERMEDIATE) f32
    fc2_w_ref,    # (1, INTERMEDIATE, HIDDEN) bf16
    fc2_b_ref,    # (1, 1, HIDDEN) f32
    post_ln_ref,  # (2, HIDDEN) f32
    proj_w_ref,   # (HIDDEN, PROJ_DIM) bf16
    cls_w_ref,    # (1, PROJ_DIM) f32
    cls_b_ref,    # (1, 1) f32
    logits_ref,   # out: (BATCH, 1) f32
    x_vmem,       # scratch: (ROWS, HIDDEN) f32 — activation carried across layer steps
):
    l = pl.program_id(0)

    # ----- embedding: patch "conv" (as matmul) + CLS / positional add + pre-LN -----
    @pl.when(l == 0)
    def _():
        emb = _mm(pix_ref[...], patch_w_ref[...])                 # (ROWS, HIDDEN)
        emb = emb + jnp.concatenate([add_ref[...]] * BATCH, axis=0)
        x_vmem[...] = _layernorm(emb, pre_ln_ref[0:1, :], pre_ln_ref[1:2, :])

    # ----- one CLIPEncoderLayer (weights selected by the layer grid axis) -----
    x = x_vmem[...]                                               # (ROWS, HIDDEN) f32
    ln_p = ln_ref[0]                                              # (4, HIDDEN)

    # pre-LN + fused QKV projection
    h = _layernorm(x, ln_p[0:1, :], ln_p[1:2, :])
    qkv = _mm(h, qkv_w_ref[0]) + qkv_b_ref[0]                     # (ROWS, 3*HIDDEN)

    # stack heads along rows (head-major): (STACK, HEAD_DIM)
    q = jnp.concatenate(
        [qkv[:, hh * HEAD_DIM:(hh + 1) * HEAD_DIM] for hh in range(HEADS)], axis=0)
    k = jnp.concatenate(
        [qkv[:, HIDDEN + hh * HEAD_DIM:HIDDEN + (hh + 1) * HEAD_DIM]
         for hh in range(HEADS)], axis=0)
    v = jnp.concatenate(
        [qkv[:, 2 * HIDDEN + hh * HEAD_DIM:2 * HIDDEN + (hh + 1) * HEAD_DIM]
         for hh in range(HEADS)], axis=0)
    q = q * (HEAD_DIM ** -0.5)

    # single score matmul + additive mask + softmax (f32 elementwise path)
    s = jax.lax.dot_general(q.astype(jnp.bfloat16), k.astype(jnp.bfloat16),
                            (((1,), (1,)), ((), ())),
                            preferred_element_type=jnp.float32)   # (STACK, STACK)
    s = s + mask_ref[...]
    s = s - jnp.max(s, axis=-1, keepdims=True)
    p = jnp.exp(s)
    p = p * pl.reciprocal(jnp.sum(p, axis=-1, keepdims=True), approx=False)

    # single PV matmul, then un-stack heads back into the lane dimension
    ctx = _mm(p, v)                                               # (STACK, HEAD_DIM)
    attn = jnp.concatenate(
        [ctx[hh * ROWS:(hh + 1) * ROWS, :] for hh in range(HEADS)], axis=1)
    attn = _mm(attn, o_w_ref[0]) + o_b_ref[0]
    x = x + attn

    # pre-LN + MLP with QuickGELU (f32 elementwise path)
    h = _layernorm(x, ln_p[2:3, :], ln_p[3:4, :])
    h1 = _mm(h, fc1_w_ref[0]) + fc1_b_ref[0]
    h1 = h1 * jax.nn.sigmoid(1.702 * h1)
    h2 = _mm(h1, fc2_w_ref[0]) + fc2_b_ref[0]
    x = x + h2
    x_vmem[...] = x

    # ----- CLS pooling -> post-LN -> visual projection -> classifier head -----
    @pl.when(l == pl.num_programs(0) - 1)
    def _():
        cls_rows = jnp.concatenate(
            [x[b * SEQ_PAD:b * SEQ_PAD + 1, :] for b in range(BATCH)], axis=0)
        pooled = _layernorm(cls_rows, post_ln_ref[0:1, :], post_ln_ref[1:2, :])
        feat = _mm(pooled, proj_w_ref[...])                               # (B, PROJ_DIM)
        logit = jnp.sum(feat * cls_w_ref[...], axis=-1, keepdims=True)    # (B, 1)
        logit = logit + cls_b_ref[...]
        logits_ref[...] = logit.astype(logits_ref.dtype)


def clip_forward_pallas(params, pix_tokens, add_tokens, mask_bias):
    def const2(shape):
        return pl.BlockSpec(shape, lambda l: (0, 0))

    def layer3(tail):
        return pl.BlockSpec((1,) + tail, lambda l: (l, 0, 0))

    logits = pl.pallas_call(
        _clip_forward_kernel,
        out_shape=jax.ShapeDtypeStruct((BATCH, 1), jnp.float32),
        grid=(LAYERS,),                       # layer axis only; batch folded into rows
        in_specs=[
            const2((ROWS, PATCH_FEAT)),           # pix
            const2((PATCH_FEAT, HIDDEN)),         # patch_w
            const2((SEQ_PAD, HIDDEN)),            # add (CLS + pos emb), one copy
            const2((2, HIDDEN)),                  # pre_ln
            const2((STACK, STACK)),               # attention mask bias
            layer3((4, HIDDEN)),                  # ln_gb
            layer3((HIDDEN, 3 * HIDDEN)),         # qkv_w
            layer3((1, 3 * HIDDEN)),              # qkv_b
            layer3((HIDDEN, HIDDEN)),             # o_w
            layer3((1, HIDDEN)),                  # o_b
            layer3((HIDDEN, INTERMEDIATE)),       # fc1_w
            layer3((1, INTERMEDIATE)),            # fc1_b
            layer3((INTERMEDIATE, HIDDEN)),       # fc2_w
            layer3((1, HIDDEN)),                  # fc2_b
            const2((2, HIDDEN)),                  # post_ln
            const2((HIDDEN, PROJ_DIM)),           # proj_w
            const2((1, PROJ_DIM)),                # cls_w
            const2((1, 1)),                       # cls_b
        ],
        out_specs=pl.BlockSpec((BATCH, 1), lambda l: (0, 0)),
        scratch_shapes=[pltpu.VMEM((ROWS, HIDDEN), jnp.float32)],
        compiler_params=pltpu.CompilerParams(
            dimension_semantics=("arbitrary",),   # layer carry => must stay sequential
            vmem_limit_bytes=64 * 1024 * 1024),
    )(
        pix_tokens, params["patch_w"], add_tokens, params["pre_ln"], mask_bias,
        params["ln_gb"], params["qkv_w"], params["qkv_b"],
        params["o_w"], params["o_b"], params["fc1_w"], params["fc1_b"],
        params["fc2_w"], params["fc2_b"], params["post_ln"],
        params["proj_w"], params["cls_w"], params["cls_b"],
    )
    return logits.reshape(BATCH)


# ================================== glue (JAX) =====================================
def extract_patches(pixel_values, patch):
    """NCHW -> (B, num_patches, C*P*P); flatten order (c, ph, pw) matches torch Conv2d."""
    B, C, H, W = pixel_values.shape
    x = pixel_values.reshape(B, C, H // patch, patch, W // patch, patch)
    x = x.transpose(0, 2, 4, 1, 3, 5)                 # (B, Hp, Wp, C, P, P)
    return x.reshape(B, (H // patch) * (W // patch), C * patch * patch)


def build_attention_mask_bias(batch):
    """Additive bias for the stacked-head (head-major rows) attention layout.

    Row index i = h * (batch*SEQ_PAD) + b * SEQ_PAD + t.  Query i may attend key j iff
    same head, same batch element, and the key token index is a real (non-pad) token.
    """
    rows = batch * SEQ_PAD
    rh = HEADS * rows
    idx = jnp.arange(rh)
    h_idx = idx // rows
    r_idx = idx % rows
    b_idx = r_idx // SEQ_PAD
    t_idx = r_idx % SEQ_PAD
    valid = ((h_idx[:, None] == h_idx[None, :])
             & (b_idx[:, None] == b_idx[None, :])
             & (t_idx[None, :] < SEQ))
    return jnp.where(valid, 0.0, -1e30).astype(jnp.float32)


def clip_linear_probe_forward(params, pixel_values):
    """Equivalent of CLIPLinearProbeModel.forward(pixel_tensor) -> logits.squeeze(1)."""
    B = pixel_values.shape[0]
    patches = extract_patches(pixel_values, PATCH).astype(jnp.float32)

    # scatter patch pixels into padded token rows (row 0 = CLS slot, rows >= SEQ = pad),
    # batch folded into the row dimension
    pix = jnp.zeros((B, SEQ_PAD, PATCH_FEAT), jnp.float32)
    pix = pix.at[:, 1:1 + NPATCH, :].set(patches)
    pix_tokens = pix.reshape(B * SEQ_PAD, PATCH_FEAT)

    # additive embedding term (one copy, not broadcast per batch element)
    add = jnp.zeros((SEQ_PAD, HIDDEN), jnp.float32)
    add = add.at[:SEQ, :].set(params["pos_emb"])
    add = add.at[0, :].add(params["class_emb"])

    mask_bias = build_attention_mask_bias(B)

    return clip_forward_pallas(params, pix_tokens, add, mask_bias)


# ============================ pure-JAX reference (f32) =============================
def reference_forward(params, pixel_values):
    B = pixel_values.shape[0]
    patches = extract_patches(pixel_values, PATCH).astype(jnp.float32)
    x = jnp.einsum("bnf,fh->bnh", patches, params["patch_w"].astype(jnp.float32))
    cls = jnp.broadcast_to(params["class_emb"][None, None, :], (B, 1, HIDDEN))
    x = jnp.concatenate([cls, x], axis=1) + params["pos_emb"][None]

    def ln(y, g, b):
        m = y.mean(-1, keepdims=True)
        v = ((y - m) ** 2).mean(-1, keepdims=True)
        return (y - m) * jax.lax.rsqrt(v + LN_EPS) * g + b

    x = ln(x, params["pre_ln"][0], params["pre_ln"][1])
    for li in range(LAYERS):
        h = ln(x, params["ln_gb"][li, 0], params["ln_gb"][li, 1])
        qkv = (jnp.einsum("bth,hk->btk", h, params["qkv_w"][li].astype(jnp.float32))
               + params["qkv_b"][li, 0])
        q, k, v = jnp.split(qkv, 3, axis=-1)

        def heads(t):
            return t.reshape(B, SEQ, HEADS, HEAD_DIM).transpose(0, 2, 1, 3)

        q, k, v = heads(q), heads(k), heads(v)
        s = jnp.einsum("bhqd,bhkd->bhqk", q, k) * (HEAD_DIM ** -0.5)
        p = jax.nn.softmax(s, axis=-1)
        o = jnp.einsum("bhqk,bhkd->bhqd", p, v).transpose(0, 2, 1, 3).reshape(B, SEQ, HIDDEN)
        o = (jnp.einsum("bth,hk->btk", o, params["o_w"][li].astype(jnp.float32))
             + params["o_b"][li, 0])
        x = x + o
        h = ln(x, params["ln_gb"][li, 2], params["ln_gb"][li, 3])
        h1 = (jnp.einsum("bth,hk->btk", h, params["fc1_w"][li].astype(jnp.float32))
              + params["fc1_b"][li, 0])
        h1 = h1 * jax.nn.sigmoid(1.702 * h1)
        h2 = (jnp.einsum("btk,kh->bth", h1, params["fc2_w"][li].astype(jnp.float32))
              + params["fc2_b"][li, 0])
        x = x + h2

    pooled = ln(x[:, 0, :], params["post_ln"][0], params["post_ln"][1])
    feat = pooled @ params["proj_w"].astype(jnp.float32)
    return jnp.sum(feat * params["cls_w"], axis=-1) + params["cls_b"][0]


# ============================ deterministic parameters =============================
def init_params(key):
    def normal(k, shape, scale=0.02, dtype=jnp.float32):
        return (scale * jax.random.normal(k, shape)).astype(dtype)

    bf16 = jnp.bfloat16
    ks = iter(jax.random.split(key, 32))
    params = {
        # MXU weights stored in bf16 (halved HBM traffic; MXU sees bf16 either way)
        "patch_w": normal(next(ks), (PATCH_FEAT, HIDDEN), dtype=bf16),
        "class_emb": normal(next(ks), (HIDDEN,)),
        "pos_emb": normal(next(ks), (SEQ, HIDDEN)),
        "pre_ln": jnp.stack([1.0 + normal(next(ks), (HIDDEN,)),
                             normal(next(ks), (HIDDEN,))]).astype(jnp.float32),
        "post_ln": jnp.stack([1.0 + normal(next(ks), (HIDDEN,)),
                              normal(next(ks), (HIDDEN,))]).astype(jnp.float32),
        "proj_w": normal(next(ks), (HIDDEN, PROJ_DIM), dtype=bf16),
        "cls_w": normal(next(ks), (1, PROJ_DIM)),
        "cls_b": normal(next(ks), (1, 1)),
        # stacked per-layer params, [ln1_g, ln1_b, ln2_g, ln2_b]
        "ln_gb": jnp.concatenate([
            1.0 + normal(next(ks), (LAYERS, 1, HIDDEN)),
            normal(next(ks), (LAYERS, 1, HIDDEN)),
            1.0 + normal(next(ks), (LAYERS, 1, HIDDEN)),
            normal(next(ks), (LAYERS, 1, HIDDEN))], axis=1).astype(jnp.float32),
        "qkv_w": normal(next(ks), (LAYERS, HIDDEN, 3 * HIDDEN), dtype=bf16),
        "qkv_b": normal(next(ks), (LAYERS, 1, 3 * HIDDEN)),
        "o_w": normal(next(ks), (LAYERS, HIDDEN, HIDDEN), dtype=bf16),
        "o_b": normal(next(ks), (LAYERS, 1, HIDDEN)),
        "fc1_w": normal(next(ks), (LAYERS, HIDDEN, INTERMEDIATE), dtype=bf16),
        "fc1_b": normal(next(ks), (LAYERS, 1, INTERMEDIATE)),
        "fc2_w": normal(next(ks), (LAYERS, INTERMEDIATE, HIDDEN), dtype=bf16),
        "fc2_b": normal(next(ks), (LAYERS, 1, HIDDEN)),
    }
    return params


# ===================================== main ========================================
if __name__ == "__main__":
    key = jax.random.PRNGKey(0)
    k_pix, k_params = jax.random.split(key)

    pixel_values = jax.random.normal(k_pix, (BATCH, CHANNELS, IMAGE, IMAGE),
                                     dtype=jnp.float32)
    params = init_params(k_params)

    forward = jax.jit(clip_linear_probe_forward)
    logits = forward(params, pixel_values)
    jax.block_until_ready(logits)

    assert logits.shape == (BATCH,), logits.shape
    assert logits.dtype == jnp.float32
    assert bool(jnp.all(jnp.isfinite(logits)))

    # loose tolerance: kernel uses bf16 MXU activations with f32 accumulation
    ref = reference_forward(params, pixel_values)
    assert bool(jnp.allclose(logits, ref, rtol=5e-2, atol=5e-2)), (logits, ref)

    print("KERNEL_OK")
</pallas_src>

<mosaic_0001>
module attributes {stable_mosaic.version = 11 : i64} {
  func.func @_clip_forward_kernel(%arg0: i32, %arg1: memref<64x192xf32, #tpu.memory_space<vmem>>, %arg2: memref<192x64xbf16, #tpu.memory_space<vmem>>, %arg3: memref<32x64xf32, #tpu.memory_space<vmem>>, %arg4: memref<2x64xf32, #tpu.memory_space<vmem>>, %arg5: memref<128x128xf32, #tpu.memory_space<vmem>>, %arg6: memref<1x4x64xf32, #tpu.memory_space<vmem>>, %arg7: memref<1x64x192xbf16, #tpu.memory_space<vmem>>, %arg8: memref<1x1x192xf32, #tpu.memory_space<vmem>>, %arg9: memref<1x64x64xbf16, #tpu.memory_space<vmem>>, %arg10: memref<1x1x64xf32, #tpu.memory_space<vmem>>, %arg11: memref<1x64x256xbf16, #tpu.memory_space<vmem>>, %arg12: memref<1x1x256xf32, #tpu.memory_space<vmem>>, %arg13: memref<1x256x64xbf16, #tpu.memory_space<vmem>>, %arg14: memref<1x1x64xf32, #tpu.memory_space<vmem>>, %arg15: memref<2x64xf32, #tpu.memory_space<vmem>>, %arg16: memref<64x32xbf16, #tpu.memory_space<vmem>>, %arg17: memref<1x32xf32, #tpu.memory_space<vmem>>, %arg18: memref<1x1xf32, #tpu.memory_space<vmem>>, %arg19: memref<2x1xf32, #tpu.memory_space<vmem>>, %arg20: memref<64x64xf32, #tpu.memory_space<vmem>>) attributes {dimension_semantics = [#tpu.dimension_semantics<arbitrary>], iteration_bounds = array<i64: 2>, scalar_prefetch = 0 : i64, scratch_operands = 1 : i64, tpu.core_type = #tpu.core_type<tc>, window_params = [{pipeline_mode = #tpu.pipeline_mode<synchronous>, transform_indices = @transform_0, window_bounds = array<i64: 64, 192>}, {pipeline_mode = #tpu.pipeline_mode<synchronous>, transform_indices = @transform_1, window_bounds = array<i64: 192, 64>}, {pipeline_mode = #tpu.pipeline_mode<synchronous>, transform_indices = @transform_2, window_bounds = array<i64: 32, 64>}, {pipeline_mode = #tpu.pipeline_mode<synchronous>, transform_indices = @transform_3, window_bounds = array<i64: 2, 64>}, {pipeline_mode = #tpu.pipeline_mode<synchronous>, transform_indices = @transform_4, window_bounds = array<i64: 128, 128>}, {transform_indices = @transform_5, window_bounds = array<i64: 1, 4, 64>}, {transform_indices = @transform_6, window_bounds = array<i64: 1, 64, 192>}, {transform_indices = @transform_7, window_bounds = array<i64: 1, 1, 192>}, {transform_indices = @transform_8, window_bounds = array<i64: 1, 64, 64>}, {transform_indices = @transform_9, window_bounds = array<i64: 1, 1, 64>}, {transform_indices = @transform_10, window_bounds = array<i64: 1, 64, 256>}, {transform_indices = @transform_11, window_bounds = array<i64: 1, 1, 256>}, {transform_indices = @transform_12, window_bounds = array<i64: 1, 256, 64>}, {transform_indices = @transform_13, window_bounds = array<i64: 1, 1, 64>}, {pipeline_mode = #tpu.pipeline_mode<synchronous>, transform_indices = @transform_14, window_bounds = array<i64: 2, 64>}, {pipeline_mode = #tpu.pipeline_mode<synchronous>, transform_indices = @transform_15, window_bounds = array<i64: 64, 32>}, {pipeline_mode = #tpu.pipeline_mode<synchronous>, transform_indices = @transform_16, window_bounds = array<i64: 1, 32>}, {pipeline_mode = #tpu.pipeline_mode<synchronous>, transform_indices = @transform_17, window_bounds = array<i64: 1, 1>}, {pipeline_mode = #tpu.pipeline_mode<synchronous>, transform_indices = @transform_18, window_bounds = array<i64: 2, 1>}]} {
    %c0_i32 = arith.constant 0 : i32
    %0 = arith.cmpi eq, %arg0, %c0_i32 : i32
    %1 = arith.extui %0 : i1 to i32
    %c0_i32_0 = arith.constant 0 : i32
    %2 = arith.cmpi ne, %1, %c0_i32_0 : i32
    scf.if %2 {
      %c0_54 = arith.constant 0 : index
      %c0_55 = arith.constant 0 : index
      %132 = vector.load %arg1[%c0_54, %c0_55] : memref<64x192xf32, #tpu.memory_space<vmem>>, vector<64x192xf32>
      %c0_56 = arith.constant 0 : index
      %c0_57 = arith.constant 0 : index
      %133 = vector.load %arg2[%c0_56, %c0_57] : memref<192x64xbf16, #tpu.memory_space<vmem>>, vector<192x64xbf16>
      %134 = arith.truncf %132 : vector<64x192xf32> to vector<64x192xbf16>
      %cst_58 = arith.constant dense<0.000000e+00> : vector<64x64xf32>
      %135 = tpu.matmul %134, %133, %cst_58 {dimension_numbers = #tpu.dot_dimension_numbers<[1], [0], [0], [1], [0, 0, 1, 1], [], []>} : vector<64x192xbf16>, vector<192x64xbf16>, vector<64x64xf32> -> vector<64x64xf32>
      %c0_59 = arith.constant 0 : index
      %c0_60 = arith.constant 0 : index
      %136 = vector.load %arg3[%c0_59, %c0_60] : memref<32x64xf32, #tpu.memory_space<vmem>>, vector<32x64xf32>
      %137 = tpu.concatenate %136, %136 in 0 : vector<32x64xf32>, vector<32x64xf32> -> vector<64x64xf32>
      %138 = arith.addf %135, %137 : vector<64x64xf32>
      %c0_61 = arith.constant 0 : index
      %c0_62 = arith.constant 0 : index
      %139 = vector.load %arg4[%c0_61, %c0_62] : memref<2x64xf32, #tpu.memory_space<vmem>>, vector<1x64xf32>
      %c1 = arith.constant 1 : index
      %c0_63 = arith.constant 0 : index
      %140 = vector.load %arg4[%c1, %c0_63] : memref<2x64xf32, #tpu.memory_space<vmem>>, vector<1x64xf32>
      %cst_64 = arith.constant dense<0.000000e+00> : vector<64xf32>
      %141 = vector.multi_reduction <add>, %138, %cst_64 [1] : vector<64x64xf32> to vector<64xf32>
      %142 = vector.shape_cast %141 : vector<64xf32> to vector<64x1xf32>
      %cst_65 = arith.constant 6.400000e+01 : f32
      %143 = vector.broadcast %cst_65 : f32 to vector<64x1xf32>
      %144 = arith.divf %142, %143 : vector<64x1xf32>
      %145 = vector.broadcast %144 : vector<64x1xf32> to vector<64x64xf32>
      %146 = arith.subf %138, %145 : vector<64x64xf32>
      %147 = arith.mulf %146, %146 : vector<64x64xf32>
      %cst_66 = arith.constant dense<0.000000e+00> : vector<64xf32>
      %148 = vector.multi_reduction <add>, %147, %cst_66 [1] : vector<64x64xf32> to vector<64xf32>
      %149 = vector.shape_cast %148 : vector<64xf32> to vector<64x1xf32>
      %cst_67 = arith.constant 6.400000e+01 : f32
      %150 = vector.broadcast %cst_67 : f32 to vector<64x1xf32>
      %151 = arith.divf %149, %150 : vector<64x1xf32>
      %152 = vector.broadcast %144 : vector<64x1xf32> to vector<64x64xf32>
      %153 = arith.subf %138, %152 : vector<64x64xf32>
      %cst_68 = arith.constant 9.99999974E-6 : f32
      %154 = vector.broadcast %cst_68 : f32 to vector<64x1xf32>
      %155 = arith.addf %151, %154 : vector<64x1xf32>
      %156 = math.rsqrt %155 : vector<64x1xf32>
      %157 = vector.broadcast %156 : vector<64x1xf32> to vector<64x64xf32>
      %158 = arith.mulf %153, %157 : vector<64x64xf32>
      %159 = vector.broadcast %139 : vector<1x64xf32> to vector<64x64xf32>
      %160 = arith.mulf %158, %159 : vector<64x64xf32>
      %161 = vector.broadcast %140 : vector<1x64xf32> to vector<64x64xf32>
      %162 = arith.addf %160, %161 : vector<64x64xf32>
      %c0_69 = arith.constant 0 : index
      %c0_70 = arith.constant 0 : index
      %163 = vector.load %arg20[%c0_69, %c0_70] : memref<64x64xf32, #tpu.memory_space<vmem>>, vector<64x64xf32>
      tpu.vector_store %arg20[%c0_69, %c0_70], %162 {strides = array<i32>} : memref<64x64xf32, #tpu.memory_space<vmem>>, vector<64x64xf32>,
    } else {
    }
    %c0 = arith.constant 0 : index
    %c0_1 = arith.constant 0 : index
    %3 = vector.load %arg20[%c0, %c0_1] : memref<64x64xf32, #tpu.memory_space<vmem>>, vector<64x64xf32>
    %c0_2 = arith.constant 0 : index
    %c0_3 = arith.constant 0 : index
    %c0_4 = arith.constant 0 : index
    %4 = vector.load %arg6[%c0_2, %c0_3, %c0_4] : memref<1x4x64xf32, #tpu.memory_space<vmem>>, vector<1x4x64xf32>
    %5 = vector.shape_cast %4 : vector<1x4x64xf32> to vector<4x64xf32>
    %6 = vector.extract_strided_slice %5 {offsets = [0, 0], sizes = [1, 64], strides = [1, 1]} : vector<4x64xf32> to vector<1x64xf32>
    %7 = vector.extract_strided_slice %5 {offsets = [1, 0], sizes = [1, 64], strides = [1, 1]} : vector<4x64xf32> to vector<1x64xf32>
    %cst = arith.constant dense<0.000000e+00> : vector<64xf32>
    %8 = vector.multi_reduction <add>, %3, %cst [1] : vector<64x64xf32> to vector<64xf32>
    %9 = vector.shape_cast %8 : vector<64xf32> to vector<64x1xf32>
    %cst_5 = arith.constant 6.400000e+01 : f32
    %10 = vector.broadcast %cst_5 : f32 to vector<64x1xf32>
    %11 = arith.divf %9, %10 : vector<64x1xf32>
    %12 = vector.broadcast %11 : vector<64x1xf32> to vector<64x64xf32>
    %13 = arith.subf %3, %12 : vector<64x64xf32>
    %14 = arith.mulf %13, %13 : vector<64x64xf32>
    %cst_6 = arith.constant dense<0.000000e+00> : vector<64xf32>
    %15 = vector.multi_reduction <add>, %14, %cst_6 [1] : vector<64x64xf32> to vector<64xf32>
    %16 = vector.shape_cast %15 : vector<64xf32> to vector<64x1xf32>
    %cst_7 = arith.constant 6.400000e+01 : f32
    %17 = vector.broadcast %cst_7 : f32 to vector<64x1xf32>
    %18 = arith.divf %16, %17 : vector<64x1xf32>
    %19 = vector.broadcast %11 : vector<64x1xf32> to vector<64x64xf32>
    %20 = arith.subf %3, %19 : vector<64x64xf32>
    %cst_8 = arith.constant 9.99999974E-6 : f32
    %21 = vector.broadcast %cst_8 : f32 to vector<64x1xf32>
    %22 = arith.addf %18, %21 : vector<64x1xf32>
    %23 = math.rsqrt %22 : vector<64x1xf32>
    %24 = vector.broadcast %23 : vector<64x1xf32> to vector<64x64xf32>
    %25 = arith.mulf %20, %24 : vector<64x64xf32>
    %26 = vector.broadcast %6 : vector<1x64xf32> to vector<64x64xf32>
    %27 = arith.mulf %25, %26 : vector<64x64xf32>
    %28 = vector.broadcast %7 : vector<1x64xf32> to vector<64x64xf32>
    %29 = arith.addf %27, %28 : vector<64x64xf32>
    %c0_9 = arith.constant 0 : index
    %c0_10 = arith.constant 0 : index
    %c0_11 = arith.constant 0 : index
    %30 = vector.load %arg7[%c0_9, %c0_10, %c0_11] : memref<1x64x192xbf16, #tpu.memory_space<vmem>>, vector<1x64x192xbf16>
    %31 = vector.shape_cast %30 : vector<1x64x192xbf16> to vector<64x192xbf16>
    %32 = arith.truncf %29 : vector<64x64xf32> to vector<64x64xbf16>
    %cst_12 = arith.constant dense<0.000000e+00> : vector<64x192xf32>
    %33 = tpu.matmul %32, %31, %cst_12 {dimension_numbers = #tpu.dot_dimension_numbers<[1], [0], [0], [1], [0, 0, 1, 1], [], []>} : vector<64x64xbf16>, vector<64x192xbf16>, vector<64x192xf32> -> vector<64x192xf32>
    %c0_13 = arith.constant 0 : index
    %c0_14 = arith.constant 0 : index
    %c0_15 = arith.constant 0 : index
    %34 = vector.load %arg8[%c0_13, %c0_14, %c0_15] : memref<1x1x192xf32, #tpu.memory_space<vmem>>, vector<1x1x192xf32>
    %35 = vector.shape_cast %34 : vector<1x1x192xf32> to vector<1x192xf32>
    %36 = vector.broadcast %35 : vector<1x192xf32> to vector<64x192xf32>
    %37 = arith.addf %33, %36 : vector<64x192xf32>
    %38 = vector.extract_strided_slice %37 {offsets = [0, 0], sizes = [64, 32], strides = [1, 1]} : vector<64x192xf32> to vector<64x32xf32>
    %39 = vector.extract_strided_slice %37 {offsets = [0, 32], sizes = [64, 32], strides = [1, 1]} : vector<64x192xf32> to vector<64x32xf32>
    %40 = tpu.concatenate %38, %39 in 0 : vector<64x32xf32>, vector<64x32xf32> -> vector<128x32xf32>
    %41 = vector.extract_strided_slice %37 {offsets = [0, 64], sizes = [64, 32], strides = [1, 1]} : vector<64x192xf32> to vector<64x32xf32>
    %42 = vector.extract_strided_slice %37 {offsets = [0, 96], sizes = [64, 32], strides = [1, 1]} : vector<64x192xf32> to vector<64x32xf32>
    %43 = tpu.concatenate %41, %42 in 0 : vector<64x32xf32>, vector<64x32xf32> -> vector<128x32xf32>
    %44 = vector.extract_strided_slice %37 {offsets = [0, 128], sizes = [64, 32], strides = [1, 1]} : vector<64x192xf32> to vector<64x32xf32>
    %45 = vector.extract_strided_slice %37 {offsets = [0, 160], sizes = [64, 32], strides = [1, 1]} : vector<64x192xf32> to vector<64x32xf32>
    %46 = tpu.concatenate %44, %45 in 0 : vector<64x32xf32>, vector<64x32xf32> -> vector<128x32xf32>
    %cst_16 = arith.constant 0.176776692 : f32
    %47 = vector.broadcast %cst_16 : f32 to vector<128x32xf32>
    %48 = arith.mulf %40, %47 : vector<128x32xf32>
    %49 = arith.truncf %48 : vector<128x32xf32> to vector<128x32xbf16>
    %50 = arith.truncf %43 : vector<128x32xf32> to vector<128x32xbf16>
    %cst_17 = arith.constant dense<0.000000e+00> : vector<128x128xf32>
    %51 = tpu.matmul %49, %50, %cst_17 {dimension_numbers = #tpu.dot_dimension_numbers<[1], [1], [0], [0], [0, 0, 1, 0], [], []>} : vector<128x32xbf16>, vector<128x32xbf16>, vector<128x128xf32> -> vector<128x128xf32>
    %c0_18 = arith.constant 0 : index
    %c0_19 = arith.constant 0 : index
    %52 = vector.load %arg5[%c0_18, %c0_19] : memref<128x128xf32, #tpu.memory_space<vmem>>, vector<128x128xf32>
    %53 = arith.addf %51, %52 : vector<128x128xf32>
    %cst_20 = arith.constant dense<0xFF800000> : vector<128xf32>
    %54 = vector.multi_reduction <maximumf>, %53, %cst_20 [1] : vector<128x128xf32> to vector<128xf32>
    %55 = vector.shape_cast %54 : vector<128xf32> to vector<128x1xf32>
    %56 = vector.broadcast %55 : vector<128x1xf32> to vector<128x128xf32>
    %57 = arith.subf %53, %56 : vector<128x128xf32>
    %58 = math.exp %57 : vector<128x128xf32>
    %cst_21 = arith.constant dense<0.000000e+00> : vector<128xf32>
    %59 = vector.multi_reduction <add>, %58, %cst_21 [1] : vector<128x128xf32> to vector<128xf32>
    %60 = vector.shape_cast %59 : vector<128xf32> to vector<128x1xf32>
    %61 = tpu.reciprocal %60 : vector<128x1xf32> -> vector<128x1xf32>
    %62 = vector.broadcast %61 : vector<128x1xf32> to vector<128x128xf32>
    %63 = arith.mulf %58, %62 : vector<128x128xf32>
    %64 = arith.truncf %63 : vector<128x128xf32> to vector<128x128xbf16>
    %65 = arith.truncf %46 : vector<128x32xf32> to vector<128x32xbf16>
    %cst_22 = arith.constant dense<0.000000e+00> : vector<128x32xf32>
    %66 = tpu.matmul %64, %65, %cst_22 {dimension_numbers = #tpu.dot_dimension_numbers<[1], [0], [0], [1], [0, 0, 1, 1], [], []>} : vector<128x128xbf16>, vector<128x32xbf16>, vector<128x32xf32> -> vector<128x32xf32>
    %67 = vector.extract_strided_slice %66 {offsets = [0, 0], sizes = [64, 32], strides = [1, 1]} : vector<128x32xf32> to vector<64x32xf32>
    %68 = vector.extract_strided_slice %66 {offsets = [64, 0], sizes = [64, 32], strides = [1, 1]} : vector<128x32xf32> to vector<64x32xf32>
    %69 = tpu.concatenate %67, %68 in 1 : vector<64x32xf32>, vector<64x32xf32> -> vector<64x64xf32>
    %c0_23 = arith.constant 0 : index
    %c0_24 = arith.constant 0 : index
    %c0_25 = arith.constant 0 : index
    %70 = vector.load %arg9[%c0_23, %c0_24, %c0_25] : memref<1x64x64xbf16, #tpu.memory_space<vmem>>, vector<1x64x64xbf16>
    %71 = vector.shape_cast %70 : vector<1x64x64xbf16> to vector<64x64xbf16>
    %72 = arith.truncf %69 : vector<64x64xf32> to vector<64x64xbf16>
    %cst_26 = arith.constant dense<0.000000e+00> : vector<64x64xf32>
    %73 = tpu.matmul %72, %71, %cst_26 {dimension_numbers = #tpu.dot_dimension_numbers<[1], [0], [0], [1], [0, 0, 1, 1], [], []>} : vector<64x64xbf16>, vector<64x64xbf16>, vector<64x64xf32> -> vector<64x64xf32>
    %c0_27 = arith.constant 0 : index
    %c0_28 = arith.constant 0 : index
    %c0_29 = arith.constant 0 : index
    %74 = vector.load %arg10[%c0_27, %c0_28, %c0_29] : memref<1x1x64xf32, #tpu.memory_space<vmem>>, vector<1x1x64xf32>
    %75 = vector.shape_cast %74 : vector<1x1x64xf32> to vector<1x64xf32>
    %76 = vector.broadcast %75 : vector<1x64xf32> to vector<64x64xf32>
    %77 = arith.addf %73, %76 : vector<64x64xf32>
    %78 = arith.addf %3, %77 : vector<64x64xf32>
    %79 = vector.extract_strided_slice %5 {offsets = [2, 0], sizes = [1, 64], strides = [1, 1]} : vector<4x64xf32> to vector<1x64xf32>
    %80 = vector.extract_strided_slice %5 {offsets = [3, 0], sizes = [1, 64], strides = [1, 1]} : vector<4x64xf32> to vector<1x64xf32>
    %cst_30 = arith.constant dense<0.000000e+00> : vector<64xf32>
    %81 = vector.multi_reduction <add>, %78, %cst_30 [1] : vector<64x64xf32> to vector<64xf32>
    %82 = vector.shape_cast %81 : vector<64xf32> to vector<64x1xf32>
    %cst_31 = arith.constant 6.400000e+01 : f32
    %83 = vector.broadcast %cst_31 : f32 to vector<64x1xf32>
    %84 = arith.divf %82, %83 : vector<64x1xf32>
    %85 = vector.broadcast %84 : vector<64x1xf32> to vector<64x64xf32>
    %86 = arith.subf %78, %85 : vector<64x64xf32>
    %87 = arith.mulf %86, %86 : vector<64x64xf32>
    %cst_32 = arith.constant dense<0.000000e+00> : vector<64xf32>
    %88 = vector.multi_reduction <add>, %87, %cst_32 [1] : vector<64x64xf32> to vector<64xf32>
    %89 = vector.shape_cast %88 : vector<64xf32> to vector<64x1xf32>
    %cst_33 = arith.constant 6.400000e+01 : f32
    %90 = vector.broadcast %cst_33 : f32 to vector<64x1xf32>
    %91 = arith.divf %89, %90 : vector<64x1xf32>
    %92 = vector.broadcast %84 : vector<64x1xf32> to vector<64x64xf32>
    %93 = arith.subf %78, %92 : vector<64x64xf32>
    %cst_34 = arith.constant 9.99999974E-6 : f32
    %94 = vector.broadcast %cst_34 : f32 to vector<64x1xf32>
    %95 = arith.addf %91, %94 : vector<64x1xf32>
    %96 = math.rsqrt %95 : vector<64x1xf32>
    %97 = vector.broadcast %96 : vector<64x1xf32> to vector<64x64xf32>
    %98 = arith.mulf %93, %97 : vector<64x64xf32>
    %99 = vector.broadcast %79 : vector<1x64xf32> to vector<64x64xf32>
    %100 = arith.mulf %98, %99 : vector<64x64xf32>
    %101 = vector.broadcast %80 : vector<1x64xf32> to vector<64x64xf32>
    %102 = arith.addf %100, %101 : vector<64x64xf32>
    %c0_35 = arith.constant 0 : index
    %c0_36 = arith.constant 0 : index
    %c0_37 = arith.constant 0 : index
    %103 = vector.load %arg11[%c0_35, %c0_36, %c0_37] : memref<1x64x256xbf16, #tpu.memory_space<vmem>>, vector<1x64x256xbf16>
    %104 = vector.shape_cast %103 : vector<1x64x256xbf16> to vector<64x256xbf16>
    %105 = arith.truncf %102 : vector<64x64xf32> to vector<64x64xbf16>
    %cst_38 = arith.constant dense<0.000000e+00> : vector<64x256xf32>
    %106 = tpu.matmul %105, %104, %cst_38 {dimension_numbers = #tpu.dot_dimension_numbers<[1], [0], [0], [1], [0, 0, 1, 1], [], []>} : vector<64x64xbf16>, vector<64x256xbf16>, vector<64x256xf32> -> vector<64x256xf32>
    %c0_39 = arith.constant 0 : index
    %c0_40 = arith.constant 0 : index
    %c0_41 = arith.constant 0 : index
    %107 = vector.load %arg12[%c0_39, %c0_40, %c0_41] : memref<1x1x256xf32, #tpu.memory_space<vmem>>, vector<1x1x256xf32>
    %108 = vector.shape_cast %107 : vector<1x1x256xf32> to vector<1x256xf32>
    %109 = vector.broadcast %108 : vector<1x256xf32> to vector<64x256xf32>
    %110 = arith.addf %106, %109 : vector<64x256xf32>
    %cst_42 = arith.constant 1.702000e+00 : f32
    %111 = vector.broadcast %cst_42 : f32 to vector<64x256xf32>
    %112 = arith.mulf %111, %110 : vector<64x256xf32>
    %113 = arith.negf %112 : vector<64x256xf32>
    %114 = math.exp %113 : vector<64x256xf32>
    %cst_43 = arith.constant 1.000000e+00 : f32
    %115 = vector.broadcast %cst_43 : f32 to vector<64x256xf32>
    %116 = arith.addf %115, %114 : vector<64x256xf32>
    %117 = arith.divf %115, %116 : vector<64x256xf32>
    %118 = arith.mulf %110, %117 : vector<64x256xf32>
    %c0_44 = arith.constant 0 : index
    %c0_45 = arith.constant 0 : index
    %c0_46 = arith.constant 0 : index
    %119 = vector.load %arg13[%c0_44, %c0_45, %c0_46] : memref<1x256x64xbf16, #tpu.memory_space<vmem>>, vector<1x256x64xbf16>
    %120 = vector.shape_cast %119 : vector<1x256x64xbf16> to vector<256x64xbf16>
    %121 = arith.truncf %118 : vector<64x256xf32> to vector<64x256xbf16>
    %cst_47 = arith.constant dense<0.000000e+00> : vector<64x64xf32>
    %122 = tpu.matmul %121, %120, %cst_47 {dimension_numbers = #tpu.dot_dimension_numbers<[1], [0], [0], [1], [0, 0, 1, 1], [], []>} : vector<64x256xbf16>, vector<256x64xbf16>, vector<64x64xf32> -> vector<64x64xf32>
    %c0_48 = arith.constant 0 : index
    %c0_49 = arith.constant 0 : index
    %c0_50 = arith.constant 0 : index
    %123 = vector.load %arg14[%c0_48, %c0_49, %c0_50] : memref<1x1x64xf32, #tpu.memory_space<vmem>>, vector<1x1x64xf32>
    %124 = vector.shape_cast %123 : vector<1x1x64xf32> to vector<1x64xf32>
    %125 = vector.broadcast %124 : vector<1x64xf32> to vector<64x64xf32>
    %126 = arith.addf %122, %125 : vector<64x64xf32>
    %127 = arith.addf %78, %126 : vector<64x64xf32>
    %c0_51 = arith.constant 0 : index
    %c0_52 = arith.constant 0 : index
    %128 = vector.load %arg20[%c0_51, %c0_52] : memref<64x64xf32, #tpu.memory_space<vmem>>, vector<64x64xf32>
    tpu.vector_store %arg20[%c0_51, %c0_52], %127 {strides = array<i32>} : memref<64x64xf32, #tpu.memory_space<vmem>>, vector<64x64xf32>,
    %c1_i32 = arith.constant 1 : i32
    %129 = arith.cmpi eq, %arg0, %c1_i32 : i32
    %130 = arith.extui %129 : i1 to i32
    %c0_i32_53 = arith.constant 0 : i32
    %131 = arith.cmpi ne, %130, %c0_i32_53 : i32
    scf.if %131 {
      %132 = vector.extract_strided_slice %127 {offsets = [0, 0], sizes = [1, 64], strides = [1, 1]} : vector<64x64xf32> to vector<1x64xf32>
      %133 = vector.extract_strided_slice %127 {offsets = [32, 0], sizes = [1, 64], strides = [1, 1]} : vector<64x64xf32> to vector<1x64xf32>
      %134 = tpu.concatenate %132, %133 in 0 : vector<1x64xf32>, vector<1x64xf32> -> vector<2x64xf32>
      %c0_54 = arith.constant 0 : index
      %c0_55 = arith.constant 0 : index
      %135 = vector.load %arg15[%c0_54, %c0_55] : memref<2x64xf32, #tpu.memory_space<vmem>>, vector<1x64xf32>
      %c1 = arith.constant 1 : index
      %c0_56 = arith.constant 0 : index
      %136 = vector.load %arg15[%c1, %c0_56] : memref<2x64xf32, #tpu.memory_space<vmem>>, vector<1x64xf32>
      %cst_57 = arith.constant dense<0.000000e+00> : vector<2xf32>
      %137 = vector.multi_reduction <add>, %134, %cst_57 [1] : vector<2x64xf32> to vector<2xf32>
      %138 = vector.shape_cast %137 : vector<2xf32> to vector<2x1xf32>
      %cst_58 = arith.constant 6.400000e+01 : f32
      %139 = vector.broadcast %cst_58 : f32 to vector<2x1xf32>
      %140 = arith.divf %138, %139 : vector<2x1xf32>
      %141 = vector.broadcast %140 : vector<2x1xf32> to vector<2x64xf32>
      %142 = arith.subf %134, %141 : vector<2x64xf32>
      %143 = arith.mulf %142, %142 : vector<2x64xf32>
      %cst_59 = arith.constant dense<0.000000e+00> : vector<2xf32>
      %144 = vector.multi_reduction <add>, %143, %cst_59 [1] : vector<2x64xf32> to vector<2xf32>
      %145 = vector.shape_cast %144 : vector<2xf32> to vector<2x1xf32>
      %cst_60 = arith.constant 6.400000e+01 : f32
      %146 = vector.broadcast %cst_60 : f32 to vector<2x1xf32>
      %147 = arith.divf %145, %146 : vector<2x1xf32>
      %148 = vector.broadcast %140 : vector<2x1xf32> to vector<2x64xf32>
      %149 = arith.subf %134, %148 : vector<2x64xf32>
      %cst_61 = arith.constant 9.99999974E-6 : f32
      %150 = vector.broadcast %cst_61 : f32 to vector<2x1xf32>
      %151 = arith.addf %147, %150 : vector<2x1xf32>
      %152 = math.rsqrt %151 : vector<2x1xf32>
      %153 = vector.broadcast %152 : vector<2x1xf32> to vector<2x64xf32>
      %154 = arith.mulf %149, %153 : vector<2x64xf32>
      %155 = vector.broadcast %135 : vector<1x64xf32> to vector<2x64xf32>
      %156 = arith.mulf %154, %155 : vector<2x64xf32>
      %157 = vector.broadcast %136 : vector<1x64xf32> to vector<2x64xf32>
      %158 = arith.addf %156, %157 : vector<2x64xf32>
      %c0_62 = arith.constant 0 : index
      %c0_63 = arith.constant 0 : index
      %159 = vector.load %arg16[%c0_62, %c0_63] : memref<64x32xbf16, #tpu.memory_space<vmem>>, vector<64x32xbf16>
      %160 = arith.truncf %158 : vector<2x64xf32> to vector<2x64xbf16>
      %cst_64 = arith.constant dense<0.000000e+00> : vector<2x32xf32>
      %161 = tpu.matmul %160, %159, %cst_64 {dimension_numbers = #tpu.dot_dimension_numbers<[1], [0], [0], [1], [0, 0, 1, 1], [], []>} : vector<2x64xbf16>, vector<64x32xbf16>, vector<2x32xf32> -> vector<2x32xf32>
      %c0_65 = arith.constant 0 : index
      %c0_66 = arith.constant 0 : index
      %162 = vector.load %arg17[%c0_65, %c0_66] : memref<1x32xf32, #tpu.memory_space<vmem>>, vector<1x32xf32>
      %163 = vector.broadcast %162 : vector<1x32xf32> to vector<2x32xf32>
      %164 = arith.mulf %161, %163 : vector<2x32xf32>
      %cst_67 = arith.constant dense<0.000000e+00> : vector<2xf32>
      %165 = vector.multi_reduction <add>, %164, %cst_67 [1] : vector<2x32xf32> to vector<2xf32>
      %166 = vector.shape_cast %165 : vector<2xf32> to vector<2x1xf32>
      %c0_68 = arith.constant 0 : index
      %c0_69 = arith.constant 0 : index
      %167 = vector.load %arg18[%c0_68, %c0_69] : memref<1x1xf32, #tpu.memory_space<vmem>>, vector<1x1xf32>
      %168 = vector.broadcast %167 : vector<1x1xf32> to vector<2x1xf32>
      %169 = arith.addf %166, %168 : vector<2x1xf32>
      %c0_70 = arith.constant 0 : index
      %c0_71 = arith.constant 0 : index
      %170 = vector.load %arg19[%c0_70, %c0_71] : memref<2x1xf32, #tpu.memory_space<vmem>>, vector<2x1xf32>
      tpu.vector_store %arg19[%c0_70, %c0_71], %169 {strides = array<i32>} : memref<2x1xf32, #tpu.memory_space<vmem>>, vector<2x1xf32>,
    } else {
    }
    return
  }
  func.func @transform_0(%arg0: i32) -> (i32, i32) {
    %c0_i32 = arith.constant 0 : i32
    %c0_i32_0 = arith.constant 0 : i32
    %c0_i32_1 = arith.constant 0 : i32
    return %c0_i32, %c0_i32_0 : i32, i32
  }
  func.func @transform_1(%arg0: i32) -> (i32, i32) {
    %c0_i32 = arith.constant 0 : i32
    %c0_i32_0 = arith.constant 0 : i32
    %c0_i32_1 = arith.constant 0 : i32
    return %c0_i32, %c0_i32_0 : i32, i32
  }
  func.func @transform_2(%arg0: i32) -> (i32, i32) {
    %c0_i32 = arith.constant 0 : i32
    %c0_i32_0 = arith.constant 0 : i32
    %c0_i32_1 = arith.constant 0 : i32
    return %c0_i32, %c0_i32_0 : i32, i32
  }
  func.func @transform_3(%arg0: i32) -> (i32, i32) {
    %c0_i32 = arith.constant 0 : i32
    %c0_i32_0 = arith.constant 0 : i32
    %c0_i32_1 = arith.constant 0 : i32
    return %c0_i32, %c0_i32_0 : i32, i32
  }
  func.func @transform_4(%arg0: i32) -> (i32, i32) {
    %c0_i32 = arith.constant 0 : i32
    %c0_i32_0 = arith.constant 0 : i32
    %c0_i32_1 = arith.constant 0 : i32
    return %c0_i32, %c0_i32_0 : i32, i32
  }
  func.func @transform_5(%arg0: i32) -> (i32, i32, i32) {
    %c0_i32 = arith.constant 0 : i32
    %c0_i32_0 = arith.constant 0 : i32
    %c0_i32_1 = arith.constant 0 : i32
    return %arg0, %c0_i32, %c0_i32_0 : i32, i32, i32
  }
  func.func @transform_6(%arg0: i32) -> (i32, i32, i32) {
    %c0_i32 = arith.constant 0 : i32
    %c0_i32_0 = arith.constant 0 : i32
    %c0_i32_1 = arith.constant 0 : i32
    return %arg0, %c0_i32, %c0_i32_0 : i32, i32, i32
  }
  func.func @transform_7(%arg0: i32) -> (i32, i32, i32) {
    %c0_i32 = arith.constant 0 : i32
    %c0_i32_0 = arith.constant 0 : i32
    %c0_i32_1 = arith.constant 0 : i32
    return %arg0, %c0_i32, %c0_i32_0 : i32, i32, i32
  }
  func.func @transform_8(%arg0: i32) -> (i32, i32, i32) {
    %c0_i32 = arith.constant 0 : i32
    %c0_i32_0 = arith.constant 0 : i32
    %c0_i32_1 = arith.constant 0 : i32
    return %arg0, %c0_i32, %c0_i32_0 : i32, i32, i32
  }
  func.func @transform_9(%arg0: i32) -> (i32, i32, i32) {
    %c0_i32 = arith.constant 0 : i32
    %c0_i32_0 = arith.constant 0 : i32
    %c0_i32_1 = arith.constant 0 : i32
    return %arg0, %c0_i32, %c0_i32_0 : i32, i32, i32
  }
  func.func @transform_10(%arg0: i32) -> (i32, i32, i32) {
    %c0_i32 = arith.constant 0 : i32
    %c0_i32_0 = arith.constant 0 : i32
    %c0_i32_1 = arith.constant 0 : i32
    return %arg0, %c0_i32, %c0_i32_0 : i32, i32, i32
  }
  func.func @transform_11(%arg0: i32) -> (i32, i32, i32) {
    %c0_i32 = arith.constant 0 : i32
    %c0_i32_0 = arith.constant 0 : i32
    %c0_i32_1 = arith.constant 0 : i32
    return %arg0, %c0_i32, %c0_i32_0 : i32, i32, i32
  }
  func.func @transform_12(%arg0: i32) -> (i32, i32, i32) {
    %c0_i32 = arith.constant 0 : i32
    %c0_i32_0 = arith.constant 0 : i32
    %c0_i32_1 = arith.constant 0 : i32
    return %arg0, %c0_i32, %c0_i32_0 : i32, i32, i32
  }
  func.func @transform_13(%arg0: i32) -> (i32, i32, i32) {
    %c0_i32 = arith.constant 0 : i32
    %c0_i32_0 = arith.constant 0 : i32
    %c0_i32_1 = arith.constant 0 : i32
    return %arg0, %c0_i32, %c0_i32_0 : i32, i32, i32
  }
  func.func @transform_14(%arg0: i32) -> (i32, i32) {
    %c0_i32 = arith.constant 0 : i32
    %c0_i32_0 = arith.constant 0 : i32
    %c0_i32_1 = arith.constant 0 : i32
    return %c0_i32, %c0_i32_0 : i32, i32
  }
  func.func @transform_15(%arg0: i32) -> (i32, i32) {
    %c0_i32 = arith.constant 0 : i32
    %c0_i32_0 = arith.constant 0 : i32
    %c0_i32_1 = arith.constant 0 : i32
    return %c0_i32, %c0_i32_0 : i32, i32
  }
  func.func @transform_16(%arg0: i32) -> (i32, i32) {
    %c0_i32 = arith.constant 0 : i32
    %c0_i32_0 = arith.constant 0 : i32
    %c0_i32_1 = arith.constant 0 : i32
    return %c0_i32, %c0_i32_0 : i32, i32
  }
  func.func @transform_17(%arg0: i32) -> (i32, i32) {
    %c0_i32 = arith.constant 0 : i32
    %c0_i32_0 = arith.constant 0 : i32
    %c0_i32_1 = arith.constant 0 : i32
    return %c0_i32, %c0_i32_0 : i32, i32
  }
  func.func @transform_18(%arg0: i32) -> (i32, i32) {
    %c0_i32 = arith.constant 0 : i32
    %c0_i32_0 = arith.constant 0 : i32
    %c0_i32_1 = arith.constant 0 : i32
    return %c0_i32, %c0_i32_0 : i32, i32
  }
}

</mosaic_0001>

<bundles_post_ra>
// kernel: clip_linear_probe_forward.1
= control target key start
LH: loop header
LB: loop body
LE: loop exit
PB: predicated region body
PF: predicated region fallthrough
CT: control target
= control target key end

     0   :  { %s6295_s0 = inlined_call_operand.hbm [shape: f32[64,192], index: 0, kind: input, shape index: {}]   ;;  %s6296_s1 = inlined_call_operand.hbm [shape: bf16[192,64], index: 1, kind: input, shape index: {}]   ;;  %s6297_s2 = inlined_call_operand.hbm [shape: f32[32,64], index: 2, kind: input, shape index: {}]   ;;  %s6298_s3 = inlined_call_operand.hbm [shape: f32[2,64], index: 3, kind: input, shape index: {}]   ;;  %s6299_s4 = inlined_call_operand.hbm [shape: f32[128,128], index: 4, kind: input, shape index: {}]   ;;  %s6300_s5 = inlined_call_operand.hbm [shape: f32[2,4,64], index: 5, kind: input, shape index: {}]   ;;  %s6301_s6 = inlined_call_operand.hbm [shape: bf16[2,64,192], index: 6, kind: input, shape index: {}]   ;;  %s6302_s7 = inlined_call_operand.hbm [shape: f32[2,1,192], index: 7, kind: input, shape index: {}]   ;;  %s6303_s8 = inlined_call_operand.hbm [shape: bf16[2,64,64], index: 8, kind: input, shape index: {}]   ;;  %s6304_s9 = inlined_call_operand.hbm [shape: f32[2,1,64], index: 9, kind: input, shape index: {}]   ;;  %s6305_s10 = inlined_call_operand.hbm [shape: bf16[2,64,256], index: 10, kind: input, shape index: {}]   ;;  %s6306_s11 = inlined_call_operand.hbm [shape: f32[2,1,256], index: 11, kind: input, shape index: {}]   ;;  %s6307_s12 = inlined_call_operand.hbm [shape: bf16[2,256,64], index: 12, kind: input, shape index: {}]   ;;  %s6308_s13 = inlined_call_operand.hbm [shape: f32[2,1,64], index: 13, kind: input, shape index: {}]   ;;  %s6309_s14 = inlined_call_operand.hbm [shape: f32[2,64], index: 14, kind: input, shape index: {}]   ;;  %s6310_s15 = inlined_call_operand.hbm [shape: bf16[64,32], index: 15, kind: input, shape index: {}]   ;;  %s6311_s16 = inlined_call_operand.hbm [shape: f32[1,32], index: 16, kind: input, shape index: {}]   ;;  %s6312_s17 = inlined_call_operand.<no memory space> [shape: f32[1,1], index: 17, kind: input, shape index: {}]   ;;  %s6313_s18 = inlined_call_operand.hbm [shape: f32[2,1], index: 18, kind: output, shape index: {}]  }
   0x1   :  { %6355 = sst [smem:[#allocation45_spill]] %s6295_s0  ;;  %v23_v0 = vstv %s6312_s17 }
   0x2   :  { %6356 = sst [smem:[#allocation46_spill]] %s6296_s1  ;;  %24 = vst [vmem:[#allocation3] sm:$0x1] %v23_v0 }
   0x3   :  { %6357 = sst [smem:[#allocation47_spill]] %s6297_s2 }
   0x4   :  { %6358 = sst [smem:[#allocation48_spill]] %s6298_s3 }
   0x5   :  { %6359 = sst [smem:[#allocation49_spill]] %s6299_s4 }
   0x6   :  { %6360 = sst [smem:[#allocation50_spill]] %s6300_s5 }
   0x7   :  { %6361 = sst [smem:[#allocation51_spill]] %s6301_s6 }
   0x8   :  { %6362 = sst [smem:[#allocation52_spill]] %s6302_s7 }
   0x9   :  { %6363 = sst [smem:[#allocation53_spill]] %s6303_s8 }
   0xa   :  { %6364 = sst [smem:[#allocation54_spill]] %s6304_s9 }
   0xb   :  { %6365 = sst [smem:[#allocation55_spill]] %s6305_s10 }
   0xc   :  { %6366 = sst [smem:[#allocation56_spill]] %s6306_s11 }
   0xd   :  { %6367 = sst [smem:[#allocation57_spill]] %s6307_s12 }
   0xe   :  { %6368 = sst [smem:[#allocation58_spill]] %s6309_s14 }
   0xf   :  { %6369 = sst [smem:[#allocation59_spill]] %s6310_s15 }
  0x10   :  { %6370 = sst [smem:[#allocation60_spill]] %s6311_s16 }
  0x11   :  { %6371 = sst [smem:[#allocation61_spill]] %s6313_s18 }
  0x12   :  { %25 = vsyncpa [#allocation5], 0 }
  0x13   :  { %26 = vsyncpa [#allocation8], 0 }
  0x14   :  { %27 = vsyncpa [#allocation11], 0 }
  0x15   :  { %28 = vsyncpa [#allocation14], 0 }
  0x16   :  { %30 = vsyncpa [#allocation14 + $0x1], 0 }
  0x17   :  { %31 = vsyncpa [#allocation17], 0 }
  0x18   :  { %33 = vsyncpa [#allocation17 + $0x1], 0 }
  0x19   :  { %34 = vsyncpa [#allocation20], 0 }
  0x1a   :  { %36 = vsyncpa [#allocation20 + $0x1], 0 }
  0x1b   :  { %37 = vsyncpa [#allocation23], 0 }
  0x1c   :  { %39 = vsyncpa [#allocation23 + $0x1], 0 }
  0x1d   :  { %40 = vsyncpa [#allocation26], 0 }
  0x1e   :  { %42 = vsyncpa [#allocation26 + $0x1], 0 }
  0x1f   :  { %43 = vsyncpa [#allocation29], 0 }
  0x20   :  { %44 = vsyncpa [#allocation6], 0  ;;  %s4950_s29 = smov 0   ;;  %s4952_s30 = smov 0  }
  0x21   :  { %s4954_s17 = smov 0   ;;  %s4956_s0 = smov 0  }
  0x22 LB: > { %s4821_s19 = smov [#allocation7]   ;;  %s4971_s20 = sadd.s32 4294967295, %s4819_s0   ;;  %s4819_s0 = sphi %s4956_s0, %s6437_s0   ;;  %s4815_s17 = sphi %s4954_s17, %s6436_s17   ;;  %s4811_s30 = sphi %s4952_s30, %s6435_s30   ;;  %s4807_s29 = sphi %s4950_s29, %s6434_s29  }
  0x23   : > { %s524_s1 = sshll.u32 %s4821_s19, 4  ;;  %p3388_p0 = scmp.ge.s32.totalorder %s4819_s0, 1  ;;  %s4977_s1 = int_to_ptr.vmem [resolvable:$true] %s524_s1 }
  0x24   : > { %p6324_p1 = scmp.eq.s32.totalorder %s4971_s20, 0  ;;  %p499_p2 = scmp.lt.s32.totalorder %s4819_s0, 3 }
  0x25   : > { %s4822_s22 = smov [#allocation10]   ;;  %s4823_s24 = smov [#allocation27]  }
  0x26   : > { %p4979_p4 = pnand %p3388_p0, %p499_p2  ;;  %s551_s2 = sshll.u32 %s4822_s22, 4  ;;  %s4991_s2 = int_to_ptr.vmem [resolvable:$true] %s551_s2 }
  0x27   : > { %s575_s25 = sshll.u32 %s4823_s24, 4  ;;  %s6375_s28 = sld [smem:[#allocation46_spill]]  ;;  %s4993_s25 = int_to_ptr.vmem [resolvable:$true] %s575_s25 }
  0x28   : > { %s6372_s21 = scalar_select %p4979_p4, 1, 0 }
  0x29   : > { %p3812_p5 = pneg %p4979_p4 }
  0x2a   : > { %6373 = sst [smem:[#allocation43_spill]] %s6372_s21 }
  0x2b   : > { %p4987_p6 = pnand %p3812_p5, %p6324_p1 }
  0x2d   : > { %s6374_s23 = scalar_select %p4987_p6, 1, 0 }
  0x2e   : > { %s4225_s19 = scalar_lea.hbm %s6375_s28, 1536  ;;  %p5003_p8 = pneg %p4987_p6 }
  0x2f   : > { %p4226_p7 = scmp.ne.s32.totalorder %s6375_s28, %s4225_s19  ;;  %p4232_p11 = scmp.lt.u32.totalorder %s4225_s19, %s6375_s28 }
  0x30   : > { %s6376_s22 = scalar_select %p5003_p8, 1, 0 }
  0x31   : > { %p4228_p9 = pnand %p5003_p8, %p4226_p7 }
  0x33   : > { %p4229_p10 = pneg %p4228_p9 }
  0x35   : > { %p4234_p12 = pnand %p4232_p11, %p4229_p10 }
  0x37   : > { %4237 = shalt.err (!%p4234_p12)
}
  0x38   : > { %s4238_s18 = scalar_lea.vmem %s4977_s1, 1536  ;;  %p4246_p5 = scmp.lt.s32.totalorder %s4977_s1, %s4977_s1 }
  0x39   : > { %p4239_p13 = scmp.ne.s32.totalorder %s4977_s1, %s4238_s18  ;;  %p4247_p3 = scmp.lt.s32.totalorder %s4238_s18, %s4238_s18 }
  0x3b   : > { %p4241_p0 = pnand %p4239_p13, %p5003_p8  ;;  %p4248_p7 = por %p4247_p3, %p4246_p5 }
  0x3d   : > { %p4242_p2 = pneg %p4241_p0 }
  0x3f   : > { %p4249_p9 = pnand %p4248_p7, %p4242_p2 }
  0x41   : > { %4252 = shalt.err (!%p4249_p9)
}
  0x42   : > { %s6326_s21 = smov 64   ;;  %s6328_s12 = smov 4  }
  0x43   : > { %3818 = dma.hbm_to_vmem [thread:$0]  (!%p4987_p6), %s6375_s28, 1536, %s4977_s1, [#allocation8], %s6326_s21, %s6326_s21, %s6328_s12  }
  0x44   : > { %s6377_s3 = sld [smem:[#allocation48_spill]] }
  0x4a   : > { %s4253_s18 = scalar_lea.hbm %s6377_s3, 32 }
  0x4b   : > { %p4254_p3 = scmp.ne.s32.totalorder %s6377_s3, %s4253_s18  ;;  %p4260_p12 = scmp.lt.u32.totalorder %s4253_s18, %s6377_s3 }
  0x4d   : > { %p4256_p10 = pnand %p4254_p3, %p5003_p8 }
  0x4f   : > { %p4257_p11 = pneg %p4256_p10 }
  0x51   : > { %p4262_p13 = pnand %p4260_p12, %p4257_p11 }
  0x53   : > { %4265 = shalt.err (!%p4262_p13)
}
  0x54   : > { %s4266_s1 = scalar_lea.vmem %s4991_s2, 32  ;;  %p4274_p7 = scmp.lt.s32.totalorder %s4991_s2, %s4991_s2 }
  0x55   : > { %p4267_p0 = scmp.ne.s32.totalorder %s4991_s2, %s4266_s1  ;;  %p4275_p9 = scmp.lt.s32.totalorder %s4266_s1, %s4266_s1 }
  0x57   : > { %p4269_p2 = pnand %p4267_p0, %p5003_p8  ;;  %p4276_p3 = por %p4275_p9, %p4274_p7 }
  0x59   : > { %p4270_p5 = pneg %p4269_p2 }
  0x5b   : > { %p4277_p10 = pnand %p4276_p3, %p4270_p5 }
  0x5d   : > { %4280 = shalt.err (!%p4277_p10)
}
  0x5e   : > { %3824 = dma.hbm_to_vmem [thread:$0]  (!%p4987_p6), %s6377_s3, 32, %s4991_s2, [#allocation11]  }
  0x5f   : > { %s6378_s14 = sld [smem:[#allocation58_spill]] }
  0x65   : > { %s4281_s26 = scalar_lea.hbm %s6378_s14, 32 }
  0x66   : > { %p4282_p11 = scmp.ne.s32.totalorder %s6378_s14, %s4281_s26  ;;  %p4288_p0 = scmp.lt.u32.totalorder %s4281_s26, %s6378_s14 }
  0x68   : > { %p4284_p12 = pnand %p4282_p11, %p5003_p8 }
  0x6a   : > { %p4285_p13 = pneg %p4284_p12 }
  0x6c   : > { %p4290_p2 = pnand %p4288_p0, %p4285_p13 }
  0x6e   : > { %4293 = shalt.err (!%p4290_p2)
}
  0x6f   : > { %s4294_s2 = scalar_lea.vmem %s4993_s25, 32  ;;  %p4302_p3 = scmp.lt.s32.totalorder %s4993_s25, %s4993_s25 }
  0x70   : > { %p4295_p5 = scmp.ne.s32.totalorder %s4993_s25, %s4294_s2  ;;  %p4303_p10 = scmp.lt.s32.totalorder %s4294_s2, %s4294_s2 }
  0x72   : > { %p4297_p7 = pnand %p4295_p5, %p5003_p8  ;;  %p4304_p11 = por %p4303_p10, %p4302_p3 }
  0x74   : > { %p4298_p9 = pneg %p4297_p7 }
  0x76   : > { %p4305_p12 = pnand %p4304_p11, %p4298_p9 }
  0x78   : > { %4308 = shalt.err (!%p4305_p12)
}
  0x79   : > { %3830 = dma.hbm_to_vmem [thread:$0]  (!%p4987_p6), %s6378_s14, 32, %s4993_s25, [#allocation26]  }
  0x7a   : > { %s4826_s8 = smov [#allocation28]   ;;  %s6379_s15 = sld [smem:[#allocation59_spill]] }
  0x7b   : > { %s585_s10 = sshll.u32 %s4826_s8, 4  ;;  %s586_s10 = int_to_ptr.vmem [resolvable:$true] %s585_s10 }
  0x80   : > { %s4309_s27 = scalar_lea.hbm %s6379_s15, 512 }
  0x81   : > { %p4310_p13 = scmp.ne.s32.totalorder %s6379_s15, %s4309_s27  ;;  %p4316_p5 = scmp.lt.u32.totalorder %s4309_s27, %s6379_s15 }
  0x83   : > { %p4312_p0 = pnand %p4310_p13, %p5003_p8 }
  0x85   : > { %p4313_p2 = pneg %p4312_p0 }
  0x87   : > { %p4318_p7 = pnand %p4316_p5, %p4313_p2 }
  0x89   : > { %4321 = shalt.err (!%p4318_p7)
}
  0x8a   : > { %s4322_s25 = scalar_lea.vmem %s586_s10, 512  ;;  %p4330_p11 = scmp.lt.s32.totalorder %s586_s10, %s586_s10 }
  0x8b   : > { %p4323_p9 = scmp.ne.s32.totalorder %s586_s10, %s4322_s25  ;;  %p4331_p12 = scmp.lt.s32.totalorder %s4322_s25, %s4322_s25 }
  0x8d   : > { %p4325_p3 = pnand %p4323_p9, %p5003_p8  ;;  %p4332_p1 = por %p4331_p12, %p4330_p11 }
  0x8f   : > { %p4326_p10 = pneg %p4325_p3 }
  0x91   : > { %p4333_p4 = pnand %p4332_p1, %p4326_p10 }
  0x93   : > { %4336 = shalt.err (!%p4333_p4)
}
  0x94   : > { %3833 = dma.hbm_to_vmem [thread:$0]  (!%p4987_p6), %s6379_s15, 512, %s586_s10, [#allocation29], %s6326_s21, %s6326_s21, %s6328_s12  }
  0x95   : > { %s5095_s8 = sadd.s32 1, %s4819_s0   ;;  %s162_s16 = sadd.s32 1, %s4815_s17 }
  0x96   : > { %s159_s26 = ssub.s32 %s4819_s0, %s5095_s8  ;;  %p169_p1 = scmp.ne.s32.totalorder %s4815_s17, %s4811_s30 }
  0x97   : > { %p160_p4 = scmp.eq.s32.totalorder %s159_s26, 0  ;;  %p170_p13 = scmp.eq.s32.totalorder %s4819_s0, 0 }
  0x98   : > { %p175_p0 = scmp.ne.s32.totalorder %s4811_s30, %s4807_s29  ;;  %p3873_p2 = scmp.lt.s32.totalorder %s4819_s0, 2 }
  0x99   : > { %s5107_s27 = scalar_select %p160_p4, %s4815_s17, %s162_s16  }
  0x9a   : > { %p171_p5 = por %p170_p13, %p169_p1  ;;  %p6381_p7 = scmp.eq.s32.totalorder %s4971_s20, 0 }
  0x9b   : > { %6380 = sst [smem:[#allocation44_spill]] %s5107_s27  ;;  %s5116_s24 = sand.u32 1, %s4819_s0  }
  0x9c   : > { %p5111_p9 = por %p6381_p7, %p175_p0  ;;  %s5119_s10 = sand.u32 1, %s4815_s17  }
  0x9d   : > { %s3398_s18 = sshll.u32 %s5119_s10, 2  ;;  %s3399_s2 = sshll.u32 %s4819_s0, 6 }
  0x9e   : > { %s6382_s19 = scalar_select %p5111_p9, 1, 0 }
  0x9f   : > { %s6383_s5 = sld [smem:[#allocation50_spill]]  ;;  %s617_s6 = scalar_lea.vmem [#allocation13], %s3398_s18 }
  0xa0   : > { %s624_s16 = sshll.u32 %s617_s6, 4  ;;  %p5130_p3 = pnand %p3873_p2, %p171_p5  ;;  %s5128_s16 = int_to_ptr.vmem [resolvable:$true] %s624_s16 }
  0xa1   : > { %s6335_s12 = scalar_lea.sflag [#allocation14], %s5116_s24 }
  0xa2   : > { %s6384_s26 = scalar_select %p5130_p3, 1, 0 }
  0xa3   : > { %p5140_p11 = pneg %p5130_p3 }
  0xa5   : > { %s5126_s1 = scalar_lea.hbm %s6383_s5, %s3399_s2  ;;  %s4342_s29 = scalar_lea.hbm %s6383_s5, 128 }
  0xa6   : > { %s4337_s3 = scalar_lea.hbm %s5126_s1, 64  ;;  %p4343_p4 = scmp.lt.u32.totalorder %s5126_s1, %s6383_s5 }
  0xa7   : > { %p4338_p10 = scmp.ne.s32.totalorder %s5126_s1, %s4337_s3  ;;  %p4344_p13 = scmp.lt.u32.totalorder %s4342_s29, %s4337_s3 }
  0xa8   : > { %s6385_s2 = scalar_select %p5140_p11, 1, 0 }
  0xa9   : > { %p4340_p12 = pnand %p5140_p11, %p4338_p10  ;;  %p4345_p0 = por %p4344_p13, %p4343_p4 }
  0xaa   : > { %p4346_p2 = scmp.lt.u32.totalorder %s4337_s3, %s5126_s1 }
  0xab   : > { %p4341_p1 = pneg %p4340_p12 }
  0xac   : > { %p4347_p5 = por %p4346_p2, %p4345_p0 }
  0xae   : > { %p4348_p7 = pnand %p4347_p5, %p4341_p1 }
  0xb0   : > { %4351 = shalt.err (!%p4348_p7)
}
  0xb1   : > { %s4352_s21 = scalar_lea.vmem %s5128_s16, 64  ;;  %s4827_s18 = smov [#allocation13]  }
  0xb2   : > { %p4353_p10 = scmp.ne.s32.totalorder %s5128_s16, %s4352_s21  ;;  %s4357_s25 = sshll.u32 %s4827_s18, 4  ;;  %s4358_s25 = int_to_ptr.vmem [resolvable:$false] %s4357_s25 }
  0xb3   : > { %s4359_s14 = scalar_lea.vmem %s4358_s25, 128  ;;  %p4360_p6 = scmp.lt.s32.totalorder %s5128_s16, %s4358_s25 }
  0xb4   : > { %p4355_p12 = pnand %p4353_p10, %p5140_p11  ;;  %p4361_p8 = scmp.lt.s32.totalorder %s4359_s14, %s4352_s21 }
  0xb6   : > { %p4356_p9 = pneg %p4355_p12  ;;  %p4362_p4 = por %p4361_p8, %p4360_p6 }
  0xb8   : > { %p4363_p13 = pnand %p4362_p4, %p4356_p9 }
  0xba   : > { %4366 = shalt.err (!%p4363_p13)
}
  0xbb   : > { %3840 = dma.hbm_to_vmem [thread:$0]  (!%p5130_p3), %s5126_s1, 64, %s5128_s16, %s6335_s12  }
  0xbc   : > { %s6336_s3 = sshll.u32 %s4819_s0, 5  ;;  %s6386_s29 = sshll.u32 %s5119_s10, 1 }
  0xbd   : > { %s656_s6 = scalar_lea.vmem [#allocation16], %s6386_s29  ;;  %s6387_s7 = sld [smem:[#allocation52_spill]] }
  0xbe   : > { %s664_s18 = sshll.u32 %s656_s6, 4  ;;  %s6339_s5 = scalar_lea.sflag [#allocation17], %s5116_s24  ;;  %s665_s18 = int_to_ptr.vmem [resolvable:$true] %s664_s18 }
  0xc3   : > { %s5173_s14 = scalar_lea.hbm %s6387_s7, %s6336_s3  ;;  %s4372_s29 = scalar_lea.hbm %s6387_s7, 64 }
  0xc4   : > { %s4367_s15 = scalar_lea.hbm %s5173_s14, 32  ;;  %p4373_p1 = scmp.lt.u32.totalorder %s5173_s14, %s6387_s7 }
  0xc5   : > { %p4368_p6 = scmp.ne.s32.totalorder %s5173_s14, %s4367_s15  ;;  %p4374_p0 = scmp.lt.u32.totalorder %s4372_s29, %s4367_s15 }
  0xc6   : > { %p4376_p5 = scmp.lt.u32.totalorder %s4367_s15, %s5173_s14 }
  0xc7   : > { %p4370_p8 = pnand %p4368_p6, %p5140_p11  ;;  %p4375_p2 = por %p4374_p0, %p4373_p1 }
  0xc9   : > { %p4371_p9 = pneg %p4370_p8  ;;  %p4377_p7 = por %p4376_p5, %p4375_p2 }
  0xcb   : > { %p4378_p10 = pnand %p4377_p7, %p4371_p9 }
  0xcd   : > { %4381 = shalt.err (!%p4378_p10)
}
  0xce   : > { %s4382_s21 = scalar_lea.vmem %s665_s18, 32  ;;  %s4828_s25 = smov [#allocation16]  }
  0xcf   : > { %p4383_p12 = scmp.ne.s32.totalorder %s665_s18, %s4382_s21  ;;  %s4387_s3 = sshll.u32 %s4828_s25, 4  ;;  %s4388_s3 = int_to_ptr.vmem [resolvable:$false] %s4387_s3 }
  0xd0   : > { %s4389_s1 = scalar_lea.vmem %s4388_s3, 64  ;;  %p4390_p6 = scmp.lt.s32.totalorder %s665_s18, %s4388_s3 }
  0xd1   : > { %p4385_p4 = pnand %p4383_p12, %p5140_p11  ;;  %p4391_p8 = scmp.lt.s32.totalorder %s4389_s1, %s4382_s21 }
  0xd3   : > { %p4386_p13 = pneg %p4385_p4  ;;  %p4392_p3 = por %p4391_p8, %p4390_p6 }
  0xd5   : > { %p4393_p0 = pnand %p4392_p3, %p4386_p13 }
  0xd7   : > { %4396 = shalt.err (!%p4393_p0)
}
  0xd8   : > { %p6388_p1 = scmp.ne.s32.totalorder %s6384_s26, 0  ;;  %s6340_s15 = sshll.u32 %s4819_s0, 4 }
  0xd9   : > { %s695_s12 = scalar_lea.vmem [#allocation19], %s5119_s10  ;;  %s6389_s9 = sld [smem:[#allocation54_spill]] }
  0xda   : > { %3846 = dma.hbm_to_vmem [thread:$0]  (!%p6388_p1), %s5173_s14, 32, %s665_s18, %s6339_s5  }
  0xdb   : > { %s702_s16 = sshll.u32 %s695_s12, 4  ;;  %s6341_s21 = scalar_lea.sflag [#allocation20], %s5116_s24  ;;  %s703_s16 = int_to_ptr.vmem [resolvable:$true] %s702_s16 }
  0xdf   : > { %s5202_s6 = scalar_lea.hbm %s6389_s9, %s6340_s15  ;;  %s4402_s1 = scalar_lea.hbm %s6389_s9, 32 }
  0xe0   : > { %s4397_s25 = scalar_lea.hbm %s5202_s6, 16  ;;  %p4403_p5 = scmp.lt.u32.totalorder %s5202_s6, %s6389_s9 }
  0xe1   : > { %p4398_p3 = scmp.ne.s32.totalorder %s5202_s6, %s4397_s25  ;;  %p4404_p7 = scmp.lt.u32.totalorder %s4402_s1, %s4397_s25 }
  0xe2   : > { %p4406_p12 = scmp.lt.u32.totalorder %s4397_s25, %s5202_s6 }
  0xe3   : > { %p4400_p9 = pnand %p4398_p3, %p5140_p11  ;;  %p4405_p10 = por %p4404_p7, %p4403_p5 }
  0xe5   : > { %p4401_p2 = pneg %p4400_p9  ;;  %p4407_p4 = por %p4406_p12, %p4405_p10 }
  0xe7   : > { %p4408_p13 = pnand %p4407_p4, %p4401_p2 }
  0xe9   : > { %4411 = shalt.err (!%p4408_p13)
}
  0xea   : > { %s4412_s3 = scalar_lea.vmem %s703_s16, 16  ;;  %s4829_s29 = smov [#allocation19]  }
  0xeb   : > { %p4413_p6 = scmp.ne.s32.totalorder %s703_s16, %s4412_s3  ;;  %s4417_s15 = sshll.u32 %s4829_s29, 4  ;;  %s4418_s15 = int_to_ptr.vmem [resolvable:$false] %s4417_s15 }
  0xec   : > { %s4419_s18 = scalar_lea.vmem %s4418_s15, 32  ;;  %p4420_p3 = scmp.lt.s32.totalorder %s703_s16, %s4418_s15 }
  0xed   : > { %p4415_p8 = pnand %p4413_p6, %p5140_p11  ;;  %p4421_p9 = scmp.lt.s32.totalorder %s4419_s18, %s4412_s3 }
  0xef   : > { %p4416_p0 = pneg %p4415_p8  ;;  %p4422_p1 = por %p4421_p9, %p4420_p3 }
  0xf1   : > { %p4423_p5 = pnand %p4422_p1, %p4416_p0 }
  0xf3   : > { %4426 = shalt.err (!%p4423_p5)
}
  0xf4   : > { %p6390_p7 = scmp.ne.s32.totalorder %s6384_s26, 0  ;;  %s6391_s5 = sshll.u32 %s4819_s0, 4 }
  0xf5   : > { %s5229_s15 = scalar_lea.hbm %s6308_s13, %s6391_s5  ;;  %s6392_s1 = sshll.u32 %s4819_s0, 5 }
  0xf6   : > { %3852 = dma.hbm_to_vmem [thread:$0]  (!%p6390_p7), %s5202_s6, 16, %s703_s16, %s6341_s21  }
  0xf7   : > { %s6393_s11 = sld [smem:[#allocation56_spill]]  ;;  %s6394_s18 = sshll.u32 %s5119_s10, 1 }
  0xf8   : > { %s734_s7 = scalar_lea.vmem [#allocation22], %s6394_s18  ;;  %s4830_s16 = smov [#allocation4]  }
  0xf9   : > { %s742_s9 = sshll.u32 %s734_s7, 4  ;;  %s5242_s6 = sshll.u32 %s4830_s16, 4  ;;  %s5240_s9 = int_to_ptr.vmem [resolvable:$true] %s742_s9  ;;  %s512_s6 = int_to_ptr.vmem [resolvable:$true] %s5242_s6 }
  0xfa   : > { %s6343_s5 = scalar_lea.sflag [#allocation23], %s5116_s24 }
  0xfd   : > { %s5236_s29 = scalar_lea.hbm %s6393_s11, %s6392_s1  ;;  %s4432_s12 = scalar_lea.hbm %s6393_s11, 64 }
  0xfe   : > { %s4427_s25 = scalar_lea.hbm %s5236_s29, 32  ;;  %p4433_p12 = scmp.lt.u32.totalorder %s5236_s29, %s6393_s11 }
  0xff   : > { %p4428_p1 = scmp.ne.s32.totalorder %s5236_s29, %s4427_s25  ;;  %p4434_p4 = scmp.lt.u32.totalorder %s4432_s12, %s4427_s25 }
 0x100   : > { %p4436_p6 = scmp.lt.u32.totalorder %s4427_s25, %s5236_s29 }
 0x101   : > { %p4430_p2 = pnand %p4428_p1, %p5140_p11  ;;  %p4435_p13 = por %p4434_p4, %p4433_p12 }
 0x103   : > { %p4431_p10 = pneg %p4430_p2  ;;  %p4437_p8 = por %p4436_p6, %p4435_p13 }
 0x105   : > { %p4438_p0 = pnand %p4437_p8, %p4431_p10 }
 0x107   : > { %4441 = shalt.err (!%p4438_p0)
}
 0x108   : > { %s4442_s7 = scalar_lea.vmem %s5240_s9, 32  ;;  %s4831_s18 = smov [#allocation22]  }
 0x109   : > { %p4443_p3 = scmp.ne.s32.totalorder %s5240_s9, %s4442_s7  ;;  %s4447_s16 = sshll.u32 %s4831_s18, 4  ;;  %s4448_s16 = int_to_ptr.vmem [resolvable:$false] %s4447_s16 }
 0x10a   : > { %s4449_s21 = scalar_lea.vmem %s4448_s16, 64  ;;  %p4450_p1 = scmp.lt.s32.totalorder %s5240_s9, %s4448_s16 }
 0x10b   : > { %p4445_p9 = pnand %p4443_p3, %p5140_p11  ;;  %p4451_p2 = scmp.lt.s32.totalorder %s4449_s21, %s4442_s7 }
 0x10d   : > { %p4446_p5 = pneg %p4445_p9  ;;  %p4452_p12 = por %p4451_p2, %p4450_p1 }
 0x10f   : > { %p4453_p4 = pnand %p4452_p12, %p4446_p5 }
 0x111   : > { %4456 = shalt.err (!%p4453_p4)
}
 0x112   : > { %3858 = dma.hbm_to_vmem [thread:$0]  (!%p6390_p7), %s5236_s29, 32, %s5240_s9, %s6343_s5  }
 0x113   : > { %s6395_s1 = sld [smem:[#allocation45_spill]]  ;;  %p6396_p13 = scmp.ne.s32.totalorder %s6376_s22, 0 }
 0x119   : > { %s4457_s12 = scalar_lea.hbm %s6395_s1, 2048 }
 0x11a   : > { %p4458_p10 = scmp.ne.s32.totalorder %s6395_s1, %s4457_s12  ;;  %p4464_p0 = scmp.lt.u32.totalorder %s4457_s12, %s6395_s1 }
 0x11c   : > { %p4460_p6 = pnand %p4458_p10, %p6396_p13 }
 0x11e   : > { %p4461_p8 = pneg %p4460_p6 }
 0x120   : > { %p4466_p3 = pnand %p4464_p0, %p4461_p8 }
 0x122   : > { %4469 = shalt.err (!%p4466_p3)
}
 0x123   : > { %s4470_s21 = scalar_lea.vmem %s512_s6, 2048  ;;  %p4478_p2 = scmp.lt.s32.totalorder %s512_s6, %s512_s6 }
 0x124   : > { %p4471_p9 = scmp.ne.s32.totalorder %s512_s6, %s4470_s21  ;;  %p4479_p12 = scmp.lt.s32.totalorder %s4470_s21, %s4470_s21 }
 0x126   : > { %p4473_p5 = pnand %p4471_p9, %p6396_p13  ;;  %p4480_p4 = por %p4479_p12, %p4478_p2 }
 0x128   : > { %p4474_p1 = pneg %p4473_p5 }
 0x12a   : > { %p4481_p7 = pnand %p4480_p4, %p4474_p1 }
 0x12c   : > { %4484 = shalt.err (!%p4481_p7)
}
 0x12d   : > { %s4832_s9 = smov 256   ;;  %s4833_s29 = smov 16  }
 0x12e   : > { %p6397_p10 = scmp.ne.s32.totalorder %s6374_s23, 0  ;;  %s4834_s12 = smov [#allocation9]  }
 0x12f   : > { %s537_s3 = sshll.u32 %s4834_s12, 4  ;;  %s6398_s16 = sld [smem:[#allocation47_spill]]  ;;  %s538_s3 = int_to_ptr.vmem [resolvable:$true] %s537_s3 }
 0x130   : > { %3815 = dma.hbm_to_vmem [thread:$0]  (!%p6397_p10), %s6395_s1, 2048, %s512_s6, [#allocation5], %s4832_s9, %s4832_s9, %s4833_s29  }
 0x135   : > { %s4485_s5 = scalar_lea.hbm %s6398_s16, 512 }
 0x136   : > { %p4486_p7 = scmp.ne.s32.totalorder %s6398_s16, %s4485_s5  ;;  %p4492_p0 = scmp.lt.u32.totalorder %s4485_s5, %s6398_s16 }
 0x138   : > { %p4488_p6 = pnand %p4486_p7, %p6396_p13 }
 0x13a   : > { %p4489_p8 = pneg %p4488_p6 }
 0x13c   : > { %p4494_p3 = pnand %p4492_p0, %p4489_p8 }
 0x13e   : > { %4497 = shalt.err (!%p4494_p3)
}
 0x13f   : > { %s4498_s6 = scalar_lea.vmem %s538_s3, 512  ;;  %p4506_p2 = scmp.lt.s32.totalorder %s538_s3, %s538_s3 }
 0x140   : > { %p4499_p9 = scmp.ne.s32.totalorder %s538_s3, %s4498_s6  ;;  %p4507_p12 = scmp.lt.s32.totalorder %s4498_s6, %s4498_s6 }
 0x142   : > { %p4501_p5 = pnand %p4499_p9, %p6396_p13  ;;  %p4508_p4 = por %p4507_p12, %p4506_p2 }
 0x144   : > { %p4502_p1 = pneg %p4501_p5 }
 0x146   : > { %p4509_p11 = pnand %p4508_p4, %p4502_p1 }
 0x148   : > { %4512 = shalt.err (!%p4509_p11)
}
 0x149   : > { %s6349_s11 = smov 128   ;;  %s6350_s9 = smov 8  }
 0x14a   : > { %3821 = dma.hbm_to_vmem [thread:$0]  (!%p6397_p10), %s6398_s16, 512, %s538_s3, [#allocation8], %s6349_s11, %s6349_s11, %s6350_s9  }
 0x14b   : > { %s4837_s5 = smov [#allocation12]   ;;  %s4838_s25 = smov [#allocation30]  }
 0x14c   : > { %s561_s29 = sshll.u32 %s4837_s5, 4  ;;  %s599_s14 = sshll.u32 %s4838_s25, 4  ;;  %s562_s29 = int_to_ptr.vmem [resolvable:$true] %s561_s29  ;;  %s5308_s14 = int_to_ptr.vmem [resolvable:$true] %s599_s14 }
 0x14d   : > { %s6399_s4 = sld [smem:[#allocation49_spill]] }
 0x153   : > { %s4513_s7 = scalar_lea.hbm %s6399_s4, 2048 }
 0x154   : > { %p4514_p11 = scmp.ne.s32.totalorder %s6399_s4, %s4513_s7  ;;  %p4520_p8 = scmp.lt.u32.totalorder %s4513_s7, %s6399_s4 }
 0x156   : > { %p4516_p7 = pnand %p4514_p11, %p6396_p13 }
 0x158   : > { %p4517_p6 = pneg %p4516_p7 }
 0x15a   : > { %p4522_p0 = pnand %p4520_p8, %p4517_p6 }
 0x15c   : > { %4525 = shalt.err (!%p4522_p0)
}
 0x15d   : > { %s4526_s27 = scalar_lea.vmem %s562_s29, 2048  ;;  %p4534_p1 = scmp.lt.s32.totalorder %s562_s29, %s562_s29 }
 0x15e   : > { %p4527_p3 = scmp.ne.s32.totalorder %s562_s29, %s4526_s27  ;;  %p4535_p2 = scmp.lt.s32.totalorder %s4526_s27, %s4526_s27 }
 0x160   : > { %p4529_p9 = pnand %p4527_p3, %p6396_p13  ;;  %p4536_p12 = por %p4535_p2, %p4534_p1 }
 0x162   : > { %p4530_p5 = pneg %p4529_p9 }
 0x164   : > { %p4537_p4 = pnand %p4536_p12, %p4530_p5 }
 0x166   : > { %4540 = shalt.err (!%p4537_p4)
}
 0x167   : > { %3827 = dma.hbm_to_vmem [thread:$0]  (!%p6397_p10), %s6399_s4, 2048, %s562_s29, [#allocation11], %s6349_s11, %s6349_s11, %s6350_s9  }
 0x168   : > { %s6400_s7 = sld [smem:[#allocation60_spill]] }
 0x16e   : > { %s4541_s21 = scalar_lea.hbm %s6400_s7, 16 }
 0x16f   : > { %p4542_p11 = scmp.ne.s32.totalorder %s6400_s7, %s4541_s21  ;;  %p4548_p8 = scmp.lt.u32.totalorder %s4541_s21, %s6400_s7 }
 0x171   : > { %p4544_p7 = pnand %p4542_p11, %p6396_p13 }
 0x173   : > { %p4545_p6 = pneg %p4544_p7 }
 0x175   : > { %p4550_p0 = pnand %p4548_p8, %p4545_p6 }
 0x177   : > { %4553 = shalt.err (!%p4550_p0)
}
 0x178   : > { %s4554_s29 = scalar_lea.vmem %s5308_s14, 16  ;;  %s4561_s5 = scalar_lea.vmem %s5308_s14, 32 }
 0x179   : > { %p4555_p3 = scmp.ne.s32.totalorder %s5308_s14, %s4554_s29  ;;  %p4562_p1 = scmp.lt.s32.totalorder %s5308_s14, %s5308_s14 }
 0x17a   : > { %p4563_p2 = scmp.lt.s32.totalorder %s4561_s5, %s4554_s29 }
 0x17b   : > { %p4557_p9 = pnand %p4555_p3, %p6396_p13 }
 0x17c   : > { %p4564_p12 = por %p4563_p2, %p4562_p1 }
 0x17d   : > { %p4558_p5 = pneg %p4557_p9 }
 0x17f   : > { %p4565_p4 = pnand %p4564_p12, %p4558_p5 }
 0x181   : > { %4568 = shalt.err (!%p4565_p4)
}
 0x182   : > { %3836 = dma.hbm_to_vmem [thread:$0]  (!%p6397_p10), %s6400_s7, 16, %s5308_s14, [#allocation29]  }
 0x183   : > { %s6347_s22 = sshll.u32 %s5119_s10, 6  ;;  %s6348_s18 = sshll.u32 %s4819_s0, 10 }
 0x184   : > { %s6401_s28 = sld [smem:[#allocation51_spill]]  ;;  %s635_s23 = scalar_lea.vmem [#allocation15], %s6347_s22 }
 0x185   : > { %s642_s27 = sshll.u32 %s635_s23, 4  ;;  %s3406_s29 = sshll.u32 %s5119_s10, 5  ;;  %s5367_s27 = int_to_ptr.vmem [resolvable:$true] %s642_s27 }
 0x186   : > { %p6402_p10 = scmp.ne.s32.totalorder %s6385_s2, 0 }
 0x18a   : > { %s5362_s3 = scalar_lea.hbm %s6401_s28, %s6348_s18  ;;  %s4574_s12 = scalar_lea.hbm %s6401_s28, 2048 }
 0x18b   : > { %s4569_s5 = scalar_lea.hbm %s5362_s3, 1024  ;;  %p4575_p6 = scmp.lt.u32.totalorder %s5362_s3, %s6401_s28 }
 0x18c   : > { %p4570_p13 = scmp.ne.s32.totalorder %s5362_s3, %s4569_s5  ;;  %p4576_p8 = scmp.lt.u32.totalorder %s4574_s12, %s4569_s5 }
 0x18d   : > { %p4578_p3 = scmp.lt.u32.totalorder %s4569_s5, %s5362_s3 }
 0x18e   : > { %p4572_p11 = pnand %p4570_p13, %p6402_p10  ;;  %p4577_p0 = por %p4576_p8, %p4575_p6 }
 0x190   : > { %p4573_p7 = pneg %p4572_p11  ;;  %p4579_p9 = por %p4578_p3, %p4577_p0 }
 0x192   : > { %p4580_p5 = pnand %p4579_p9, %p4573_p7 }
 0x194   : > { %4583 = shalt.err (!%p4580_p5)
}
 0x195   : > { %s4584_s23 = scalar_lea.vmem %s5367_s27, 1024  ;;  %s4839_s14 = smov [#allocation15]  }
 0x196   : > { %p4585_p1 = scmp.ne.s32.totalorder %s5367_s27, %s4584_s23  ;;  %s4589_s25 = sshll.u32 %s4839_s14, 4  ;;  %s4590_s25 = int_to_ptr.vmem [resolvable:$false] %s4589_s25 }
 0x197   : > { %s4591_s21 = scalar_lea.vmem %s4590_s25, 2048  ;;  %p4592_p4 = scmp.lt.s32.totalorder %s5367_s27, %s4590_s25 }
 0x198   : > { %p4587_p2 = pnand %p4585_p1, %p6402_p10  ;;  %p4593_p13 = scmp.lt.s32.totalorder %s4591_s21, %s4584_s23 }
 0x19a   : > { %p4588_p12 = pneg %p4587_p2  ;;  %p4594_p11 = por %p4593_p13, %p4592_p4 }
 0x19c   : > { %p4595_p6 = pnand %p4594_p11, %p4588_p12 }
 0x19e   : > { %4598 = shalt.err (!%p4595_p6)
}
 0x19f   : > { %p6403_p7 = scmp.ne.s32.totalorder %s6384_s26, 0  ;;  %s6404_s5 = scalar_lea.sflag [#allocation14], %s5116_s24 }
 0x1a0   : > { %s3545_s12 = sshll.u32 %s4819_s0, 9  ;;  %s675_s6 = scalar_lea.vmem [#allocation18], %s3406_s29 }
 0x1a1   : > { %3843 = dma.hbm_to_vmem [thread:$0]  (!%p6403_p7), %s5362_s3, 1024, %s5367_s27, %s6404_s5, %s6349_s11, %s6349_s11, %s6350_s9  }
 0x1a2   : > { %s682_s23 = sshll.u32 %s675_s6, 4  ;;  %s6405_s21 = sld [smem:[#allocation53_spill]]  ;;  %s5403_s23 = int_to_ptr.vmem [resolvable:$true] %s682_s23 }
 0x1a8   : > { %s5401_s22 = scalar_lea.hbm %s6405_s21, %s3545_s12  ;;  %s4604_s29 = scalar_lea.hbm %s6405_s21, 1024 }
 0x1a9   : > { %s4599_s18 = scalar_lea.hbm %s5401_s22, 512  ;;  %p4605_p9 = scmp.lt.u32.totalorder %s5401_s22, %s6405_s21 }
 0x1aa   : > { %p4600_p8 = scmp.ne.s32.totalorder %s5401_s22, %s4599_s18  ;;  %p4606_p5 = scmp.lt.u32.totalorder %s4604_s29, %s4599_s18 }
 0x1ab   : > { %p4608_p2 = scmp.lt.u32.totalorder %s4599_s18, %s5401_s22 }
 0x1ac   : > { %p4602_p0 = pnand %p4600_p8, %p6402_p10  ;;  %p4607_p1 = por %p4606_p5, %p4605_p9 }
 0x1ae   : > { %p4603_p3 = pneg %p4602_p0  ;;  %p4609_p12 = por %p4608_p2, %p4607_p1 }
 0x1b0   : > { %p4610_p4 = pnand %p4609_p12, %p4603_p3 }
 0x1b2   : > { %4613 = shalt.err (!%p4610_p4)
}
 0x1b3   : > { %s4614_s12 = scalar_lea.vmem %s5403_s23, 512  ;;  %s4840_s14 = smov [#allocation18]  }
 0x1b4   : > { %p4615_p13 = scmp.ne.s32.totalorder %s5403_s23, %s4614_s12  ;;  %s4619_s25 = sshll.u32 %s4840_s14, 4  ;;  %s4620_s25 = int_to_ptr.vmem [resolvable:$false] %s4619_s25 }
 0x1b5   : > { %s4621_s3 = scalar_lea.vmem %s4620_s25, 1024  ;;  %p4622_p8 = scmp.lt.s32.totalorder %s5403_s23, %s4620_s25 }
 0x1b6   : > { %p4617_p11 = pnand %p4615_p13, %p6402_p10  ;;  %p4623_p0 = scmp.lt.s32.totalorder %s4621_s3, %s4614_s12 }
 0x1b8   : > { %p4618_p6 = pneg %p4617_p11  ;;  %p4624_p9 = por %p4623_p0, %p4622_p8 }
 0x1ba   : > { %p4625_p5 = pnand %p4624_p9, %p4618_p6 }
 0x1bc   : > { %4628 = shalt.err (!%p4625_p5)
}
 0x1bd   : > { %s6406_s18 = smov 4   ;;  %s6407_s27 = smov 64  }
 0x1be   : > { %s6408_s29 = scalar_lea.sflag [#allocation17], %s5116_s24  ;;  %s6409_s5 = sshll.u32 %s4819_s0, 10 }
 0x1bf   : > { %3849 = dma.hbm_to_vmem [thread:$0]  (!%p6403_p7), %s5401_s22, 512, %s5403_s23, %s6408_s29, %s6407_s27, %s6407_s27, %s6406_s18  }
 0x1c0   : > { %s6410_s14 = sld [smem:[#allocation55_spill]]  ;;  %s6411_s3 = sshll.u32 %s5119_s10, 6 }
 0x1c1   : > { %s713_s11 = scalar_lea.vmem [#allocation21], %s6411_s3  ;;  %s3416_s1 = sshll.u32 %s5119_s10, 7 }
 0x1c2   : > { %s720_s9 = sshll.u32 %s713_s11, 4  ;;  %s5441_s9 = int_to_ptr.vmem [resolvable:$true] %s720_s9 }
 0x1c6   : > { %s5436_s25 = scalar_lea.hbm %s6410_s14, %s6409_s5  ;;  %s4634_s29 = scalar_lea.hbm %s6410_s14, 2048 }
 0x1c7   : > { %s4629_s4 = scalar_lea.hbm %s5436_s25, 1024  ;;  %p4635_p12 = scmp.lt.u32.totalorder %s5436_s25, %s6410_s14 }
 0x1c8   : > { %p4630_p3 = scmp.ne.s32.totalorder %s5436_s25, %s4629_s4  ;;  %p4636_p4 = scmp.lt.u32.totalorder %s4634_s29, %s4629_s4 }
 0x1c9   : > { %p4638_p11 = scmp.lt.u32.totalorder %s4629_s4, %s5436_s25 }
 0x1ca   : > { %p4632_p1 = pnand %p4630_p3, %p6402_p10  ;;  %p4637_p13 = por %p4636_p4, %p4635_p12 }
 0x1cc   : > { %p4633_p2 = pneg %p4632_p1  ;;  %p4639_p6 = por %p4638_p11, %p4637_p13 }
 0x1ce   : > { %p4640_p8 = pnand %p4639_p6, %p4633_p2 }
 0x1d0   : > { %4643 = shalt.err (!%p4640_p8)
}
 0x1d1   : > { %s4644_s11 = scalar_lea.vmem %s5441_s9, 1024  ;;  %s4841_s12 = smov [#allocation21]  }
 0x1d2   : > { %p4645_p0 = scmp.ne.s32.totalorder %s5441_s9, %s4644_s11  ;;  %s4649_s3 = sshll.u32 %s4841_s12, 4  ;;  %s4650_s3 = int_to_ptr.vmem [resolvable:$false] %s4649_s3 }
 0x1d3   : > { %s4651_s22 = scalar_lea.vmem %s4650_s3, 2048  ;;  %p4652_p3 = scmp.lt.s32.totalorder %s5441_s9, %s4650_s3 }
 0x1d4   : > { %p4647_p9 = pnand %p4645_p0, %p6402_p10  ;;  %p4653_p1 = scmp.lt.s32.totalorder %s4651_s22, %s4644_s11 }
 0x1d6   : > { %p4648_p5 = pneg %p4647_p9  ;;  %p4654_p12 = por %p4653_p1, %p4652_p3 }
 0x1d8   : > { %p4655_p4 = pnand %p4654_p12, %p4648_p5 }
 0x1da   : > { %4658 = shalt.err (!%p4655_p4)
}
 0x1db   : > { %s6412_s4 = smov 8   ;;  %s6413_s23 = smov 128  }
 0x1dc   : > { %s6414_s29 = scalar_lea.sflag [#allocation20], %s5116_s24  ;;  %s3548_s5 = sshll.u32 %s4819_s0, 11 }
 0x1dd   : > { %3855 = dma.hbm_to_vmem [thread:$0]  (!%p6403_p7), %s5436_s25, 1024, %s5441_s9, %s6414_s29, %s6413_s23, %s6413_s23, %s6412_s4  }
 0x1de   : > { %s753_s6 = scalar_lea.vmem [#allocation24], %s3416_s1  ;;  %s6415_s22 = sld [smem:[#allocation57_spill]] }
 0x1df   : > { %s760_s11 = sshll.u32 %s753_s6, 4  ;;  %s5477_s11 = int_to_ptr.vmem [resolvable:$true] %s760_s11 }
 0x1e4   : > { %s5475_s7 = scalar_lea.hbm %s6415_s22, %s3548_s5  ;;  %s4664_s1 = scalar_lea.hbm %s6415_s22, 4096 }
 0x1e5   : > { %s4659_s14 = scalar_lea.hbm %s5475_s7, 2048  ;;  %p4665_p6 = scmp.lt.u32.totalorder %s5475_s7, %s6415_s22 }
 0x1e6   : > { %p4660_p2 = scmp.ne.s32.totalorder %s5475_s7, %s4659_s14  ;;  %p4666_p8 = scmp.lt.u32.totalorder %s4664_s1, %s4659_s14 }
 0x1e7   : > { %p4668_p9 = scmp.lt.u32.totalorder %s4659_s14, %s5475_s7 }
 0x1e8   : > { %p4662_p13 = pnand %p4660_p2, %p6402_p10  ;;  %p4667_p0 = por %p4666_p8, %p4665_p6 }
 0x1ea   : > { %p4663_p11 = pneg %p4662_p13  ;;  %p4669_p5 = por %p4668_p9, %p4667_p0 }
 0x1ec   : > { %p4670_p3 = pnand %p4669_p5, %p4663_p11 }
 0x1ee   : > { %4673 = shalt.err (!%p4670_p3)
}
 0x1ef   : > { %s4674_s23 = scalar_lea.vmem %s5477_s11, 2048  ;;  %s4842_s29 = smov [#allocation24]  }
 0x1f0   : > { %p4675_p1 = scmp.ne.s32.totalorder %s5477_s11, %s4674_s23  ;;  %s4679_s5 = sshll.u32 %s4842_s29, 4  ;;  %s4680_s5 = int_to_ptr.vmem [resolvable:$false] %s4679_s5 }
 0x1f1   : > { %s4681_s6 = scalar_lea.vmem %s4680_s5, 4096  ;;  %p4682_p2 = scmp.lt.s32.totalorder %s5477_s11, %s4680_s5 }
 0x1f2   : > { %p4677_p12 = pnand %p4675_p1, %p6402_p10  ;;  %p4683_p13 = scmp.lt.s32.totalorder %s4681_s6, %s4674_s23 }
 0x1f4   : > { %p4678_p4 = pneg %p4677_p12  ;;  %p4684_p6 = por %p4683_p13, %p4682_p2 }
 0x1f6   : > { %p4685_p8 = pnand %p4684_p6, %p4678_p4 }
 0x1f8   : > { %4688 = shalt.err (!%p4685_p8)
}
 0x1f9   : > { %s6416_s14 = scalar_lea.sflag [#allocation23], %s5116_s24  ;;  %s773_s12 = scalar_lea.vmem [#allocation25], %s5119_s10 }
 0x1fa   : > { %3861 = dma.hbm_to_vmem [thread:$0]  (!%p6403_p7), %s5475_s7, 2048, %s5477_s11, %s6416_s14, %s6407_s27, %s6407_s27, %s6406_s18  }
 0x1fb   : > { %s780_s3 = sshll.u32 %s773_s12, 4  ;;  %s771_s0 = scalar_lea.sflag [#allocation26], %s5116_s24  ;;  %s781_s3 = int_to_ptr.vmem [resolvable:$true] %s780_s3 }
 0x1fc   : > { %s4689_s9 = scalar_lea.hbm %s5229_s15, 16  ;;  %s4694_s4 = scalar_lea.hbm %s6308_s13, 32 }
 0x1fd   : > { %p4690_p11 = scmp.ne.s32.totalorder %s5229_s15, %s4689_s9  ;;  %p4695_p5 = scmp.lt.u32.totalorder %s5229_s15, %s6308_s13 }
 0x1fe   : > { %p4696_p3 = scmp.lt.u32.totalorder %s4694_s4, %s4689_s9  ;;  %p4698_p12 = scmp.lt.u32.totalorder %s4689_s9, %s5229_s15 }
 0x1ff   : > { %p4692_p0 = pnand %p4690_p11, %p6402_p10 }
 0x200   : > { %p4697_p1 = por %p4696_p3, %p4695_p5 }
 0x201   : > { %p4693_p9 = pneg %p4692_p0 }
 0x202   : > { %p4699_p4 = por %p4698_p12, %p4697_p1 }
 0x204   : > { %p4700_p2 = pnand %p4699_p4, %p4693_p9 }
 0x206   : > { %4703 = shalt.err (!%p4700_p2)
}
 0x207   : > { %s4704_s24 = scalar_lea.vmem %s781_s3, 16  ;;  %s4843_s10 = smov [#allocation25]  }
 0x208   : > { %p4705_p13 = scmp.ne.s32.totalorder %s781_s3, %s4704_s24  ;;  %s4709_s7 = sshll.u32 %s4843_s10, 4  ;;  %s4710_s7 = int_to_ptr.vmem [resolvable:$false] %s4709_s7 }
 0x209   : > { %s4711_s18 = scalar_lea.vmem %s4710_s7, 32  ;;  %p4712_p11 = scmp.lt.s32.totalorder %s781_s3, %s4710_s7 }
 0x20a   : > { %p4707_p6 = pnand %p4705_p13, %p6402_p10  ;;  %p4713_p0 = scmp.lt.s32.totalorder %s4711_s18, %s4704_s24 }
 0x20c   : > { %p4708_p8 = pneg %p4707_p6  ;;  %p4714_p7 = por %p4713_p0, %p4712_p11 }
 0x20e   : > { %p4715_p3 = pnand %p4714_p7, %p4708_p8 }
 0x210   : > { %4718 = shalt.err (!%p4715_p3)
}
 0x211   : > { %p6417_p5 = scmp.ne.s32.totalorder %s6384_s26, 0  ;;  %s6418_s27 = sld [smem:[#allocation43_spill]] }
 0x213   : > { %3864 = dma.hbm_to_vmem [thread:$0]  (!%p6417_p5), %s5229_s15, 16, %s781_s3, %s771_s0  }
 0x217   : > { %p6419_p9 = scmp.ne.s32.totalorder %s6418_s27, 0 }
 0x218   : > { %p6420_p1 = scmp.eq.s32.totalorder (!%p6419_p9), %s4971_s20, 0 }
 0x219   : > { %789 = sbr.rel (%p6419_p9) target bundleno = 4641 (0x1221), region = 92 }
 0x220   : > { %4762 = dma.done.wait (%p6420_p1), [#allocation5], 2048   ;;  %p6421_p10 = pmov %p6420_p1 }
 0x221   : > { %p6422_p12 = pmov %p6420_p1 }
 0x222   : > { %4764 = vsyncadd (%p6421_p10), [#allocation5], 4294965248 }
 0x223   : > { %4766 = dma.done.wait (%p6422_p12), [#allocation8], 2048   ;;  %p6423_p4 = pmov %p6420_p1 }
 0x224   : > { %p6424_p7 = pmov %p6420_p1 }
 0x225   : > { %4768 = vsyncadd (%p6423_p4), [#allocation8], 4294965248 }
 0x226   : > { %4770 = dma.done.wait (%p6424_p7), [#allocation11], 2080   ;;  %p6425_p2 = pmov %p6420_p1 }
 0x227   : > { %s5539_s26 = sand.u32 1, %s4971_s20   ;;  %s5542_s2 = sand.u32 1, %s4811_s30  }
 0x228   : > { %4772 = vsyncadd (%p6425_p2), [#allocation11], 4294965216  ;;  %s3426_s15 = sshll.u32 %s5542_s2, 2  ;;  %s812_s11 = scalar_lea.sflag [#allocation14], %s5539_s26 }
 0x229   : > { %s5546_s5 = scalar_lea.vmem [#allocation13], %s3426_s15  ;;  %p6426_p13 = scmp.ne.s32.totalorder %s6382_s19, 0 }
 0x22b   : > { %4774 = dma.done.wait (%p6426_p13), %s812_s11, 1088  }
 0x22c   : > { %4776 = vsyncadd (%p6426_p13), %s812_s11, 4294966208  ;;  %s3427_s6 = sshll.u32 %s5542_s2, 6  ;;  %s3428_s14 = sshll.u32 %s5542_s2, 1 }
 0x22d   : > { %s5554_s12 = scalar_lea.vmem [#allocation15], %s3427_s6  ;;  %s830_s3 = scalar_lea.sflag [#allocation17], %s5539_s26 }
 0x22e   : > { %s5557_s0 = scalar_lea.vmem [#allocation16], %s3428_s14 }
 0x22f   : > { %4778 = dma.done.wait (%p6426_p13), %s830_s3, 544  }
 0x230   : > { %4780 = vsyncadd (%p6426_p13), %s830_s3, 4294966752  ;;  %s3429_s9 = sshll.u32 %s5542_s2, 5  ;;  %s848_s25 = scalar_lea.sflag [#allocation20], %s5539_s26 }
 0x231   : > { %s5564_s1 = scalar_lea.vmem [#allocation18], %s3429_s9  ;;  %s850_s4 = scalar_lea.vmem [#allocation19], %s5542_s2 }
 0x232   : > { %4782 = dma.done.wait (%p6426_p13), %s848_s25, 1040  }
 0x233   : > { %4784 = vsyncadd (%p6426_p13), %s848_s25, 4294966256  ;;  %s5572_s23 = scalar_lea.vmem [#allocation21], %s3427_s6  ;;  %s865_s29 = scalar_lea.sflag [#allocation23], %s5539_s26 }
 0x234   : > { %s5575_s24 = scalar_lea.vmem [#allocation22], %s3428_s14 }
 0x235   : > { %4786 = dma.done.wait (%p6426_p13), %s865_s29, 2080  }
 0x236   : > { %4788 = vsyncadd (%p6426_p13), %s865_s29, 4294965216  ;;  %s3432_s10 = sshll.u32 %s5542_s2, 7  ;;  %s883_s18 = scalar_lea.sflag [#allocation26], %s5539_s26 }
 0x237   : > { %s5582_s7 = scalar_lea.vmem [#allocation24], %s3432_s10  ;;  %s885_s27 = scalar_lea.vmem [#allocation25], %s5542_s2 }
 0x238   : > { %4790 = dma.done.wait (%p6426_p13), %s883_s18, 16  }
 0x239   : > { %4792 = vsyncadd (%p6426_p13), %s883_s18, 4294967280  ;;  %p6427_p6 = pmov %p6420_p1 }
 0x23a   : > { %p6428_p8 = pmov %p6420_p1 }
 0x23b   : > { %4794 = dma.done.wait (%p6427_p6), [#allocation26], 32  }
 0x23c   : > { %4796 = vsyncadd (%p6428_p8), [#allocation26], 4294967264  ;;  %p6429_p11 = pmov %p6420_p1 }
 0x23d   : > { %p6430_p0 = pmov %p6420_p1 }
 0x23e   : > { %4798 = dma.done.wait (%p6429_p11), [#allocation29], 528  }
 0x23f   : > { %4800 = vsyncadd (%p6430_p0), [#allocation29], 4294966768  ;;  %p6431_p3 = scmp.ne.s32.totalorder %s4971_s20, 0 }
 0x240   : > { %v3938_v1 = vld [vmem:[#allocation7] sm:$0xff] (!%p6431_p3)   ;;  %v4844_v2 = vmov (!%p6431_p3), 0   ;;  %v3939_v3 = vld [vmem:[#allocation7 + $0x8] sm:$0xff] (!%p6431_p3)   ;;  %v3940_v4 = vld [vmem:[#allocation7 + $0x10] sm:$0xff] (!%p6431_p3)   ;;  %vm1112_vm0 = vcmask (!%p6431_p3), 523264  }
 0x241   : > { %987 = sbr.rel (%p6431_p3) target bundleno = 1173 (0x495), region = 164  ;;  %1125 = vmatprep.subr.bf16.mxu0 (!%p6431_p3), %v4844_v2  ;;  %3726 = vmatprep.subr.bf16.mxu1 (!%p6431_p3), %v4844_v2  ;;  %v3941_v5 = vld [vmem:[#allocation7 + $0x18] sm:$0xff] (!%p6431_p3)   ;;  %v989_v6 = vld [vmem:[#allocation4 + $0x8] sm:$0xff] (!%p6431_p3)  ;;  %v3942_v11 = vld [vmem:[#allocation7 + $0x20] sm:$0xff] (!%p6431_p3)  }
 0x242   : > { %1126 = vmatpush1.bf16.msra.mxu0 (!%p6431_p3), %v3938_v1  ;;  %3738 = vmatpush1.bf16.msra.mxu1 (!%p6431_p3), %v3938_v1  ;;  %v991_v7 = vld [vmem:[#allocation4 + $0x18] sm:$0xff] (!%p6431_p3)  ;;  %v997_v8 = vld [vmem:[#allocation4 + $0x48] sm:$0xff] (!%p6431_p3)  ;;  %v3944_v14 = vld [vmem:[#allocation7 + $0x30] sm:$0xff] (!%p6431_p3)  }
 0x243   : > { %1127 = vmatprep.subr.bf16.mxu0 (!%p6431_p3), %v4844_v2  ;;  %3727 = vmatprep.subr.bf16.mxu1 (!%p6431_p3), %v4844_v2  ;;  %v1029_v9 = vpack.c.bf16 (!%p6431_p3), %v991_v7, %v989_v6  ;;  %v999_v10 = vld [vmem:[#allocation4 + $0x58] sm:$0xff] (!%p6431_p3)  ;;  %v3943_v13 = vld [vmem:[#allocation7 + $0x28] sm:$0xff] (!%p6431_p3)   ;;  %v3946_v16 = vld [vmem:[#allocation7 + $0x40] sm:$0xff] (!%p6431_p3)  }
 0x244   : > { %v1033_v12 = vpack.c.bf16 (!%p6431_p3), %v999_v10, %v997_v8  ;;  %v3945_v15 = vld [vmem:[#allocation7 + $0x38] sm:$0xff] (!%p6431_p3)   ;;  %v3947_v17 = vld [vmem:[#allocation7 + $0x48] sm:$0xff] (!%p6431_p3)   ;;  %v3948_v18 = vld [vmem:[#allocation7 + $0x50] sm:$0xff] (!%p6431_p3)  }
 0x245   : > { %3449 = vmatprep.mubr.msk.bf16.mxu0 (!%p6431_p3), %vm1112_vm0, %v1029_v9  ;;  %v3949_v19 = vld [vmem:[#allocation7 + $0x58] sm:$0xff] (!%p6431_p3)   ;;  %v988_v20 = vld [vmem:[#allocation4] sm:$0xff] (!%p6431_p3)  ;;  %v990_v21 = vld [vmem:[#allocation4 + $0x10] sm:$0xff] (!%p6431_p3) }
 0x246   : > { %1128 = vmatpush1.bf16.msra.mxu0 (!%p6431_p3), %v3939_v3  ;;  %3739 = vmatpush1.bf16.msra.mxu1 (!%p6431_p3), %v3939_v3  ;;  %v996_v22 = vld [vmem:[#allocation4 + $0x40] sm:$0xff] (!%p6431_p3)  ;;  %v998_v23 = vld [vmem:[#allocation4 + $0x50] sm:$0xff] (!%p6431_p3)  ;;  %v993_v24 = vld [vmem:[#allocation4 + $0x28] sm:$0xff] (!%p6431_p3)  ;;  %v1028_v28 = vpack.c.bf16 (!%p6431_p3), %v990_v21, %v988_v20 }
 0x247   : > { %1129 = vmatprep.subr.bf16.mxu0 (!%p6431_p3), %v4844_v2  ;;  %3728 = vmatprep.subr.bf16.mxu1 (!%p6431_p3), %v4844_v2  ;;  %v995_v25 = vld [vmem:[#allocation4 + $0x38] sm:$0xff] (!%p6431_p3)  ;;  %v1001_v26 = vld [vmem:[#allocation4 + $0x68] sm:$0xff] (!%p6431_p3)  ;;  %v1032_v29 = vpack.c.bf16 (!%p6431_p3), %v998_v23, %v996_v22  ;;  %v992_v32 = vld [vmem:[#allocation4 + $0x20] sm:$0xff] (!%p6431_p3) }
 0x248   : > { %3451 = vmatprep.mubr.msk.bf16.mxu1 %vm1112_vm0, %v1033_v12  ;;  %v1003_v27 = vld [vmem:[#allocation4 + $0x78] sm:$0xff]  ;;  %v1031_v30 = vpack.c.bf16 %v995_v25, %v993_v24  ;;  %v994_v33 = vld [vmem:[#allocation4 + $0x30] sm:$0xff]  ;;  %v1000_v34 = vld [vmem:[#allocation4 + $0x60] sm:$0xff] }
 0x249   : > { %v1035_v31 = vpack.c.bf16 %v1003_v27, %v1001_v26  ;;  %v1002_v35 = vld [vmem:[#allocation4 + $0x70] sm:$0xff]  ;;  %v1030_v36 = vpack.c.bf16 %v994_v33, %v992_v32  ;;  %v1036_v38 = vld [vmem:[#allocation9] sm:$0xff]  ;;  %v1037_v41 = vld [vmem:[#allocation9 + $0x8] sm:$0xff] }
 0x24a   : > { %1130 = vmatpush1.bf16.msra.mxu0 %v3940_v4  ;;  %3740 = vmatpush1.bf16.msra.mxu1 %v3940_v4  ;;  %v1034_v37 = vpack.c.bf16 %v1002_v35, %v1000_v34  ;;  %v1038_v54 = vld [vmem:[#allocation9 + $0x10] sm:$0xff]  ;;  %v1039_v57 = vld [vmem:[#allocation9 + $0x18] sm:$0xff] }
 0x24b   : > { %1131 = vmatprep.subr.bf16.mxu0 %v4844_v2  ;;  %3729 = vmatprep.subr.bf16.mxu1 %v4844_v2 }
 0x24e   : > { %1132 = vmatpush1.bf16.msra.mxu0 %v3941_v5  ;;  %3741 = vmatpush1.bf16.msra.mxu1 %v3941_v5 }
 0x24f   : > { %1133 = vmatprep.subr.bf16.mxu0 %v4844_v2  ;;  %3730 = vmatprep.subr.bf16.mxu1 %v4844_v2 }
 0x252   : > { %1134 = vmatpush1.bf16.msra.mxu0 %v3942_v11  ;;  %3742 = vmatpush1.bf16.msra.mxu1 %v3942_v11 }
 0x253   : > { %1135 = vmatprep.subr.bf16.mxu0 %v4844_v2  ;;  %3731 = vmatprep.subr.bf16.mxu1 %v4844_v2 }
 0x256   : > { %1136 = vmatpush1.bf16.msra.mxu0 %v3943_v13  ;;  %3743 = vmatpush1.bf16.msra.mxu1 %v3943_v13 }
 0x257   : > { %1137 = vmatprep.subr.bf16.mxu0 %v4844_v2  ;;  %3732 = vmatprep.subr.bf16.mxu1 %v4844_v2 }
 0x25a   : > { %1138 = vmatpush1.bf16.msra.mxu0 %v3944_v14  ;;  %3744 = vmatpush1.bf16.msra.mxu1 %v3944_v14 }
 0x25b   : > { %1139 = vmatprep.subr.bf16.mxu0 %v4844_v2  ;;  %3733 = vmatprep.subr.bf16.mxu1 %v4844_v2 }
 0x25e   : > { %1140 = vmatpush1.bf16.msra.mxu0 %v3945_v15  ;;  %3745 = vmatpush1.bf16.msra.mxu1 %v3945_v15 }
 0x25f   : > { %1141 = vmatprep.subr.bf16.mxu0 %v4844_v2  ;;  %3734 = vmatprep.subr.bf16.mxu1 %v4844_v2 }
 0x262   : > { %1142 = vmatpush1.bf16.msra.mxu0 %v3946_v16  ;;  %3746 = vmatpush1.bf16.msra.mxu1 %v3946_v16 }
 0x263   : > { %1143 = vmatprep.subr.bf16.mxu0 %v4844_v2  ;;  %3735 = vmatprep.subr.bf16.mxu1 %v4844_v2 }
 0x266   : > { %1144 = vmatpush1.bf16.msra.mxu0 %v3947_v17  ;;  %3747 = vmatpush1.bf16.msra.mxu1 %v3947_v17 }
 0x267   : > { %1145 = vmatprep.subr.bf16.mxu0 %v4844_v2  ;;  %3736 = vmatprep.subr.bf16.mxu1 %v4844_v2 }
 0x26a   : > { %1146 = vmatpush1.bf16.msra.mxu0 %v3948_v18  ;;  %3748 = vmatpush1.bf16.msra.mxu1 %v3948_v18 }
 0x26b   : > { %1147 = vmatprep.subr.bf16.mxu0 %v4844_v2  ;;  %3737 = vmatprep.subr.bf16.mxu1 %v4844_v2 }
 0x26e   : > { %1148 = vmatpush1.bf16.msra.mxu0 %v3949_v19  ;;  %3749 = vmatpush1.bf16.msra.mxu1 %v3949_v19 }
 0x271   : > { %1158 = vmatmul.mubr.bf16.vlgmr.msra.gmra.mrb[0].mxu0 %v1028_v28  ;;  %1174 = vmatmul.mubr.bf16.vlgmr.msra.gmra.mrb[0].mxu1 %v1032_v29 }
 0x272   : > { %3450 = vmatprep.mubr.msk.bf16.mxu0 %vm1112_vm0, %v1031_v30  ;;  %3452 = vmatprep.mubr.msk.bf16.mxu1 %vm1112_vm0, %v1035_v31 }
 0x279   : > { %1166 = vmatmul.mubr.bf16.gmra.mrb[4].mxu0 %v1030_v36  ;;  %1182 = vmatmul.mubr.bf16.gmra.mrb[4].mxu1 %v1034_v37 }
 0x344   : > { %v1159_v39 = vpop.f32.mrb[0].mxu0  ;;  %v1175_v40 = vpop.f32.mrb[0].mxu1 }
 0x345   : > { %v1160_v42 = vadd.f32 %v1159_v39, %v1036_v38  ;;  %v1176_v43 = vadd.f32 %v1175_v40, %v1036_v38  ;;  %v1161_v44 = vpop.f32.mrb[1].mxu0  ;;  %v1177_v45 = vpop.f32.mrb[1].mxu1 }
 0x346   : > { %v1162_v46 = vpop.f32.mrb[2].mxu0  ;;  %v1178_v47 = vpop.f32.mrb[2].mxu1 }
 0x347   : > { %v1179_v48 = vadd.f32 %v1178_v47, %v1037_v41  ;;  %v1164_v49 = vpop.f32.mrb[3].mxu0  ;;  %v1180_v50 = vpop.f32.mrb[3].mxu1  ;;  %v1192_v51 = vsel %vm1112_vm0, %v1160_v42, 0.0  ;;  %v1204_v53 = vsel %vm1112_vm0, %v1176_v43, 0.0  ;;  %v1163_v55 = vadd.f32 %v1162_v46, %v1037_v41 }
 0x348   : > { %1193 = vadd.xlane.f32.xlu0 %v1192_v51 }
 0x349   : > { %v1207_v52 = vsel %vm1112_vm0, %v1179_v48, 0.0  ;;  %v1195_v4 = vsel %vm1112_vm0, %v1163_v55, 0.0 }
 0x34a   : > { %1208 = vadd.xlane.f32.xlu1 %v1207_v52 }
 0x34c   : > { %v1167_v56 = vpop.f32.mrb[4].mxu0  ;;  %1205 = vadd.xlane.f32.xlu0 %v1204_v53  ;;  %v1183_v58 = vpop.f32.mrb[4].mxu1 }
 0x34d   : > { %v1168_v59 = vadd.f32 %v1167_v56, %v1038_v54  ;;  %v1169_v60 = vpop.f32.mrb[5].mxu0  ;;  %v1184_v61 = vadd.f32 %v1183_v58, %v1038_v54  ;;  %v1185_v62 = vpop.f32.mrb[5].mxu1 }
 0x34e   : > { %v1170_v63 = vpop.f32.mrb[6].mxu0  ;;  %v1186_v0 = vpop.f32.mrb[6].mxu1 }
 0x34f   : > { %v1171_v1 = vadd.f32 %v1170_v63, %v1039_v57  ;;  %v1172_v2 = vpop.f32.mrb[7].mxu0  ;;  %v1198_v3 = vsel %vm1112_vm0, %v1168_v59, 0.0  ;;  %v1188_v5 = vpop.f32.mrb[7].mxu1  ;;  %v1187_v6 = vadd.f32 %v1186_v0, %v1039_v57  ;;  %v1210_v8 = vsel %vm1112_vm0, %v1184_v61, 0.0 }
 0x350   : > { %1199 = vadd.xlane.f32.xlu1 %v1198_v3  ;;  %1196 = vadd.xlane.f32.xlu0 %v1195_v4  ;;  %v3453_v3 = vld [vmem:[#allocation10] ss:$0 sm:$0xff] }
 0x351   : > { %v1201_v7 = vsel %vm1112_vm0, %v1171_v1, 0.0  ;;  %v1213_v9 = vsel %vm1112_vm0, %v1187_v6, 0.0 }
 0x354   : > { %1202 = vadd.xlane.f32.xlu1 %v1201_v7  ;;  %1211 = vadd.xlane.f32.xlu0 %v1210_v8  ;;  %v3454_v8 = vld [vmem:[#allocation10 + $0x1] ss:$0 sm:$0xff] }
 0x358   : > { %1214 = vadd.xlane.f32.xlu1 %v1213_v9 }
 0x3d5   : > { %v1194_v10 = vpop.xlane.xlu0 %1193 }
 0x3d6   : > { %v1217_v11 = vmul.f32 0.015625, %v1194_v10 }
 0x3d7   : > { %v1209_v13 = vpop.xlane.xlu1 %1208 }
 0x3d8   : > { %v5636_v12 = vsub.f32 %v1160_v42, %v1217_v11  ;;  %v1222_v17 = vmul.f32 0.015625, %v1209_v13 }
 0x3d9   : > { %v1206_v14 = vpop.xlane.xlu0 %1205 }
 0x3da   : > { %v1221_v15 = vmul.f32 0.015625, %v1206_v14  ;;  %v1233_v16 = vmul.f32 %v5636_v12, %v5636_v12  ;;  %v5645_v25 = vsub.f32 %v1179_v48, %v1222_v17 }
 0x3dc   : > { %v5640_v18 = vsub.f32 %v1176_v43, %v1221_v15  ;;  %v1241_v19 = vsel %vm1112_vm0, %v1233_v16, 0.0  ;;  %v1238_v35 = vmul.f32 %v5645_v25, %v5645_v25 }
 0x3dd   : > { %v1200_v20 = vpop.xlane.xlu1 %1199  ;;  %1242 = vadd.xlane.f32.xlu0 %v1241_v19  ;;  %v1197_v21 = vpop.xlane.xlu0 %1196 }
 0x3de   : > { %v1219_v22 = vmul.f32 0.015625, %v1200_v20  ;;  %v1218_v23 = vmul.f32 0.015625, %v1197_v21  ;;  %v1237_v24 = vmul.f32 %v5640_v18, %v5640_v18  ;;  %v1256_v44 = vsel %vm1112_vm0, %v1238_v35, 0.0 }
 0x3e0   : > { %v5647_v26 = vsub.f32 %v1168_v59, %v1219_v22  ;;  %v5649_v27 = vsub.f32 %v1163_v55, %v1218_v23  ;;  %v1253_v28 = vsel %vm1112_vm0, %v1237_v24, 0.0 }
 0x3e1   : > { %v1203_v29 = vpop.xlane.xlu1 %1202  ;;  %1254 = vadd.xlane.f32.xlu0 %v1253_v28  ;;  %v1212_v30 = vpop.xlane.xlu0 %1211 }
 0x3e2   : > { %v1220_v31 = vmul.f32 0.015625, %v1203_v29  ;;  %v1223_v32 = vmul.f32 0.015625, %v1212_v30  ;;  %v1235_v33 = vmul.f32 %v5647_v26, %v5647_v26  ;;  %v1234_v34 = vmul.f32 %v5649_v27, %v5649_v27 }
 0x3e4   : > { %v5658_v36 = vsub.f32 %v1171_v1, %v1220_v31  ;;  %v5660_v37 = vsub.f32 %v1184_v61, %v1223_v32  ;;  %v1247_v38 = vsel %vm1112_vm0, %v1235_v33, 0.0  ;;  %v1244_v39 = vsel %vm1112_vm0, %v1234_v34, 0.0 }
 0x3e5   : > { %v1215_v40 = vpop.xlane.xlu1 %1214  ;;  %1248 = vadd.xlane.f32.xlu0 %v1247_v38  ;;  %1245 = vadd.xlane.f32.xlu1 %v1244_v39 }
 0x3e6   : > { %v1224_v41 = vmul.f32 0.015625, %v1215_v40  ;;  %v1239_v42 = vmul.f32 %v5660_v37, %v5660_v37  ;;  %v1236_v46 = vmul.f32 %v5658_v36, %v5658_v36 }
 0x3e8   : > { %v5666_v43 = vsub.f32 %v1187_v6, %v1224_v41  ;;  %v1259_v45 = vsel %vm1112_vm0, %v1239_v42, 0.0  ;;  %v1250_v47 = vsel %vm1112_vm0, %v1236_v46, 0.0 }
 0x3e9   : > { %1257 = vadd.xlane.f32.xlu1 %v1256_v44  ;;  %1260 = vadd.xlane.f32.xlu0 %v1259_v45 }
 0x3ea   : > { %v1240_v48 = vmul.f32 %v5666_v43, %v5666_v43 }
 0x3ec   : > { %v1262_v49 = vsel %vm1112_vm0, %v1240_v48, 0.0 }
 0x3ed   : > { %1251 = vadd.xlane.f32.xlu1 %v1250_v47 }
 0x3f1   : > { %1263 = vadd.xlane.f32.xlu1 %v1262_v49 }
 0x46a   : > { %v1243_v50 = vpop.xlane.xlu0 %1242 }
 0x46b   : > { %v1265_v51 = vmul.f32 0.015625, %v1243_v50 }
 0x46d   : > { %v1273_v52 = vadd.f32 1e-05, %v1265_v51 }
 0x46e   : > { %v1255_v53 = vpop.xlane.xlu0 %1254 }
 0x46f   : > { %3950 = vrsqrt.f32 %v1273_v52  ;;  %v1269_v54 = vmul.f32 0.015625, %v1255_v53 }
 0x471   : > { %v1277_v55 = vadd.f32 1e-05, %v1269_v54 }
 0x472   : > { %v1246_v56 = vpop.xlane.xlu1 %1245  ;;  %v1249_v57 = vpop.xlane.xlu0 %1248 }
 0x473   : > { %3952 = vrsqrt.f32 %v1277_v55  ;;  %v1266_v58 = vmul.f32 0.015625, %v1246_v56  ;;  %v1267_v59 = vmul.f32 0.015625, %v1249_v57 }
 0x475   : > { %v1274_v60 = vadd.f32 1e-05, %v1266_v58  ;;  %v1275_v61 = vadd.f32 1e-05, %v1267_v59 }
 0x476   : > { %v1258_v62 = vpop.xlane.xlu1 %1257  ;;  %v1261_v63 = vpop.xlane.xlu0 %1260 }
 0x477   : > { %3954 = vrsqrt.f32 %v1274_v60  ;;  %v1270_v0 = vmul.f32 0.015625, %v1258_v62  ;;  %v1271_v1 = vmul.f32 0.015625, %v1261_v63 }
 0x478   : > { %3956 = vrsqrt.f32 %v1275_v61 }
 0x479   : > { %v3951_v2 = vpop.eup %3950  ;;  %v1278_v4 = vadd.f32 1e-05, %v1270_v0  ;;  %v1279_v5 = vadd.f32 1e-05, %v1271_v1 }
 0x47a   : > { %v1289_v6 = vmul.f32 %v3951_v2, %v5636_v12  ;;  %v1252_v7 = vpop.xlane.xlu1 %1251 }
 0x47b   : > { %3958 = vrsqrt.f32 %v1278_v4  ;;  %v1268_v9 = vmul.f32 0.015625, %v1252_v7 }
 0x47c   : > { %v1301_v10 = vmul.f32 %v3453_v3, %v1289_v6  ;;  %3960 = vrsqrt.f32 %v1279_v5 }
 0x47d   : > { %v3953_v11 = vpop.eup %3952  ;;  %v1276_v13 = vadd.f32 1e-05, %v1268_v9 }
 0x47e   : > { %v1313_v14 = vadd.f32 %v3454_v8, %v1301_v10  ;;  %v1293_v15 = vmul.f32 %v3953_v11, %v5640_v18  ;;  %v1264_v16 = vpop.xlane.xlu1 %1263 }
 0x47f   : > { %3962 = vrsqrt.f32 %v1276_v13  ;;  %v1272_v17 = vmul.f32 0.015625, %v1264_v16 }
 0x480   : > { %1321 = vst.msk [vmem:[#allocation2] sm:$0xff] %vm1112_vm0, %v1313_v14  ;;  %v1305_v19 = vmul.f32 %v3453_v3, %v1293_v15 }
 0x481   : > { %v3955_v20 = vpop.eup %3954  ;;  %v1280_v21 = vadd.f32 1e-05, %v1272_v17 }
 0x482   : > { %v3957_v12 = vpop.eup %3956  ;;  %v1317_v22 = vadd.f32 %v3454_v8, %v1305_v19  ;;  %v1290_v23 = vmul.f32 %v3955_v20, %v5649_v27 }
 0x483   : > { %v1291_v24 = vmul.f32 %v3957_v12, %v5647_v26  ;;  %3964 = vrsqrt.f32 %v1280_v21 }
 0x484   : > { %1325 = vst.msk [vmem:[#allocation2 + $0x20] sm:$0xff] %vm1112_vm0, %v1317_v22  ;;  %v1302_v28 = vmul.f32 %v3453_v3, %v1290_v23 }
 0x485   : > { %v3959_v29 = vpop.eup %3958  ;;  %v1303_v18 = vmul.f32 %v3453_v3, %v1291_v24 }
 0x486   : > { %v3961_v30 = vpop.eup %3960  ;;  %v1314_v31 = vadd.f32 %v3454_v8, %v1302_v28  ;;  %v1294_v32 = vmul.f32 %v3959_v29, %v5645_v25 }
 0x487   : > { %v1315_v33 = vadd.f32 %v3454_v8, %v1303_v18  ;;  %v1295_v34 = vmul.f32 %v3961_v30, %v5660_v37 }
 0x488   : > { %1322 = vst.msk [vmem:[#allocation2 + $0x8] sm:$0xff] %vm1112_vm0, %v1314_v31  ;;  %v1306_v35 = vmul.f32 %v3453_v3, %v1294_v32 }
 0x489   : > { %v3963_v38 = vpop.eup %3962  ;;  %1323 = vst.msk [vmem:[#allocation2 + $0x10] sm:$0xff] %vm1112_vm0, %v1315_v33  ;;  %v1307_v26 = vmul.f32 %v3453_v3, %v1295_v34 }
 0x48a   : > { %v1318_v27 = vadd.f32 %v3454_v8, %v1306_v35  ;;  %v1292_v39 = vmul.f32 %v3963_v38, %v5658_v36 }
 0x48b   : > { %v1319_v40 = vadd.f32 %v3454_v8, %v1307_v26 }
 0x48c   : > { %1326 = vst.msk [vmem:[#allocation2 + $0x28] sm:$0xff] %vm1112_vm0, %v1318_v27  ;;  %v1304_v41 = vmul.f32 %v3453_v3, %v1292_v39 }
 0x48d   : > { %v3965_v42 = vpop.eup %3964  ;;  %1327 = vst.msk [vmem:[#allocation2 + $0x30] sm:$0xff] %vm1112_vm0, %v1319_v40 }
 0x48e   : > { %v1316_v25 = vadd.f32 %v3454_v8, %v1304_v41  ;;  %v1296_v37 = vmul.f32 %v3965_v42, %v5666_v43 }
 0x490   : > { %1324 = vst.msk [vmem:[#allocation2 + $0x18] sm:$0xff] %vm1112_vm0, %v1316_v25  ;;  %v1308_v44 = vmul.f32 %v3453_v3, %v1296_v37 }
 0x492   : > { %v1320_v45 = vadd.f32 %v3454_v8, %v1308_v44 }
 0x494   : > { %1328 = vst.msk [vmem:[#allocation2 + $0x38] sm:$0xff] %vm1112_vm0, %v1320_v45 }
 0x495 PF: > { %v1329_v46 = vld [vmem:[#allocation2] sm:$0xff]  ;;  %vm1338_vm1 = vcmask 523264   ;;  %v1331_v36 = vld [vmem:[#allocation2 + $0x10] sm:$0xff]  ;;  %v1330_v47 = vld [vmem:[#allocation2 + $0x8] sm:$0xff]  ;;  %s4846_s19 = smov 96   ;;  %vm1753_vm2 = vcmask 261120  }
 0x496   : > { %v1339_v48 = vsel %vm1338_vm1, %v1329_v46, 0.0  ;;  %v1345_v49 = vsel %vm1338_vm1, %v1331_v36, 0.0  ;;  %v1333_v51 = vld [vmem:[#allocation2 + $0x20] sm:$0xff]  ;;  %v1334_v43 = vld [vmem:[#allocation2 + $0x28] sm:$0xff]  ;;  %v1342_v52 = vsel %vm1338_vm1, %v1330_v47, 0.0  ;;  %v1335_v56 = vld [vmem:[#allocation2 + $0x30] sm:$0xff] }
 0x497   : > { %v1332_v50 = vld [vmem:[#allocation2 + $0x18] sm:$0xff]  ;;  %1340 = vadd.xlane.f32.xlu0 %v1339_v48  ;;  %1346 = vadd.xlane.f32.xlu1 %v1345_v49  ;;  %v1351_v54 = vsel %vm1338_vm1, %v1333_v51, 0.0  ;;  %v1354_v55 = vsel %vm1338_vm1, %v1334_v43, 0.0  ;;  %v1357_v58 = vsel %vm1338_vm1, %v1335_v56, 0.0  ;;  %v4008_v40 = vld [vmem:[%s5554_s12] ss:$8 sps:$4 sm:$0xff]  }
 0x498   : > { %v1348_v53 = vsel %vm1338_vm1, %v1332_v50, 0.0  ;;  %v4006_v39 = vld [vmem:[%s5554_s12 + $0x4] ss:$8 sps:$4 sm:$0xff]   ;;  %v4009_v41 = vld [vmem:[%s5554_s12 + $0x14] ss:$8 sps:$4 sm:$0xff]   ;;  %s4847_s26 = smov 64  }
 0x499   : > { %1544 = vmatprep.subr.bf16.mxu0 %v4006_v39  ;;  %v4011_v42 = vld [vmem:[%s5554_s12 + $0x10] ss:$8 sps:$4 sm:$0xff]   ;;  %v4012_v25 = vld [vmem:[%s5554_s12 + $0x24] ss:$8 sps:$4 sm:$0xff]   ;;  %v4014_v37 = vld [vmem:[%s5554_s12 + $0x20] ss:$8 sps:$4 sm:$0xff]  }
 0x49a   : > { %1545 = vmatpush1.bf16.msra.mxu0 %v4008_v40  ;;  %v4015_v44 = vld [vmem:[%s5554_s12 + $0x34] ss:$8 sps:$4 sm:$0xff]   ;;  %v4017_v45 = vld [vmem:[%s5554_s12 + $0x30] ss:$8 sps:$4 sm:$0xff]   ;;  %s4848_s15 = smov 32   ;;  %p3529_p5 = scmp.ne.s32.totalorder %s4971_s20, 1 }
 0x49b   : > { %v1336_v57 = vld [vmem:[#allocation2 + $0x38] sm:$0xff]  ;;  %1343 = vadd.xlane.f32.xlu0 %v1342_v52  ;;  %1349 = vadd.xlane.f32.xlu1 %v1348_v53  ;;  %vm2960_vm3 = vcmask (!%p3529_p5), 1040384   ;;  %vm2964_vm4 = vcmask (!%p3529_p5), 517120   ;;  %vm4850_vm5 = vmmov (!%p3529_p5), 0   ;;  %vm3072_vm6 = vcmask (!%p3529_p5), 254976  }
 0x49c   : > { %v1360_v59 = vsel %vm1338_vm1, %v1336_v57, 0.0  ;;  %1546 = vmatprep.subr.bf16.mxu0 %v4009_v41  ;;  %vm3084_vm7 = vcmask (!%p3529_p5), 1024  }
 0x49e   : > { %1547 = vmatpush1.bf16.msra.mxu0 %v4011_v42 }
 0x49f   : > { %1352 = vadd.xlane.f32.xlu0 %v1351_v54  ;;  %1355 = vadd.xlane.f32.xlu1 %v1354_v55 }
 0x4a0   : > { %1548 = vmatprep.subr.bf16.mxu0 %v4012_v25 }
 0x4a2   : > { %1549 = vmatpush1.bf16.msra.mxu0 %v4014_v37 }
 0x4a3   : > { %1358 = vadd.xlane.f32.xlu0 %v1357_v58  ;;  %1361 = vadd.xlane.f32.xlu1 %v1360_v59 }
 0x4a4   : > { %1550 = vmatprep.subr.bf16.mxu0 %v4015_v44 }
 0x4a6   : > { %1551 = vmatpush1.bf16.msra.mxu0 %v4017_v45 }
 0x524   : > { %v1341_v60 = vpop.xlane.xlu0 %1340  ;;  %v1347_v61 = vpop.xlane.xlu1 %1346 }
 0x525   : > { %v1364_v62 = vmul.f32 0.015625, %v1341_v60  ;;  %v1366_v63 = vmul.f32 0.015625, %v1347_v61 }
 0x527   : > { %v5700_v0 = vsub.f32 %v1329_v46, %v1364_v62  ;;  %v5702_v1 = vsub.f32 %v1331_v36, %v1366_v63  ;;  %v4845_v46 = vmov 0  }
 0x528   : > { %v1344_v2 = vpop.xlane.xlu0 %1343  ;;  %v1350_v3 = vpop.xlane.xlu1 %1349  ;;  %1576 = vmatprep.mubr.bf16.mxu0 %v4845_v46 }
 0x529   : > { %v1365_v4 = vmul.f32 0.015625, %v1344_v2  ;;  %v1367_v5 = vmul.f32 0.015625, %v1350_v3  ;;  %v1380_v6 = vmul.f32 %v5700_v0, %v5700_v0  ;;  %v1382_v7 = vmul.f32 %v5702_v1, %v5702_v1  ;;  %v1337_v2 = vld [vmem:[%s5546_s5] sm:$0xf] }
 0x52b   : > { %v5708_v8 = vsub.f32 %v1330_v47, %v1365_v4  ;;  %v5710_v9 = vsub.f32 %v1332_v50, %v1367_v5  ;;  %v1388_v10 = vsel %vm1338_vm1, %v1380_v6, 0.0  ;;  %v1394_v14 = vsel %vm1338_vm1, %v1382_v7, 0.0 }
 0x52c   : > { %1389 = vadd.xlane.f32.xlu0 %v1388_v10  ;;  %v1353_v11 = vpop.xlane.xlu0 %1352  ;;  %v1356_v13 = vpop.xlane.xlu1 %1355 }
 0x52d   : > { %v1368_v15 = vmul.f32 0.015625, %v1353_v11  ;;  %v1369_v16 = vmul.f32 0.015625, %v1356_v13  ;;  %v1381_v17 = vmul.f32 %v5708_v8, %v5708_v8  ;;  %v1383_v19 = vmul.f32 %v5710_v9, %v5710_v9 }
 0x52f   : > { %v5718_v20 = vsub.f32 %v1333_v51, %v1368_v15  ;;  %v5720_v21 = vsub.f32 %v1334_v43, %v1369_v16  ;;  %v1391_v12 = vsel %vm1338_vm1, %v1381_v17, 0.0  ;;  %v1397_v24 = vsel %vm1338_vm1, %v1383_v19, 0.0 }
 0x530   : > { %1395 = vadd.xlane.f32.xlu0 %v1394_v14  ;;  %1392 = vadd.xlane.f32.xlu1 %v1391_v12  ;;  %v1359_v22 = vpop.xlane.xlu0 %1358  ;;  %v1362_v23 = vpop.xlane.xlu1 %1361  ;;  %v1444_v51 = vlaneseq }
 0x531   : > { %v1370_v28 = vmul.f32 0.015625, %v1359_v22  ;;  %v1371_v29 = vmul.f32 0.015625, %v1362_v23  ;;  %v1384_v18 = vmul.f32 %v5718_v20, %v5718_v20  ;;  %v1385_v30 = vmul.f32 %v5720_v21, %v5720_v21 }
 0x533   : > { %v5728_v31 = vsub.f32 %v1335_v56, %v1370_v28  ;;  %v5730_v32 = vsub.f32 %v1336_v57, %v1371_v29  ;;  %v1400_v33 = vsel %vm1338_vm1, %v1384_v18, 0.0  ;;  %v1403_v34 = vsel %vm1338_vm1, %v1385_v30, 0.0 }
 0x534   : > { %1398 = vadd.xlane.f32.xlu1 %v1397_v24  ;;  %1401 = vadd.xlane.f32.xlu0 %v1400_v33  ;;  %v5749_v57 = vshrl.u32 %v1444_v51, 7 }
 0x535   : > { %v1386_v35 = vmul.f32 %v5728_v31, %v5728_v31  ;;  %v1387_v38 = vmul.f32 %v5730_v32, %v5730_v32 }
 0x536   : > { %v5752_v62 = vsub.s32 0, %v5749_v57  ;;  %v5758_v13 = vsub.s32 1, %v5749_v57 }
 0x537   : > { %v1406_v26 = vsel %vm1338_vm1, %v1386_v35, 0.0  ;;  %v1409_v27 = vsel %vm1338_vm1, %v1387_v38, 0.0 }
 0x538   : > { %1404 = vadd.xlane.f32.xlu1 %v1403_v34  ;;  %1407 = vadd.xlane.f32.xlu0 %v1406_v26  ;;  %v1447_v11 = vrot.slane %v1337_v2, %v5752_v62  ;;  %v1459_v12 = vrot.slane %v1337_v2, %v5758_v13 }
 0x53c   : > { %1410 = vadd.xlane.f32.xlu1 %v1409_v27 }
 0x5b9   : > { %v1390_v36 = vpop.xlane.xlu0 %1389 }
 0x5ba   : > { %v1412_v47 = vmul.f32 0.015625, %v1390_v36 }
 0x5bc   : > { %v1420_v48 = vadd.f32 1e-05, %v1412_v47 }
 0x5bd   : > { %v1393_v49 = vpop.xlane.xlu1 %1392  ;;  %v1396_v50 = vpop.xlane.xlu0 %1395 }
 0x5be   : > { %4050 = vrsqrt.f32 %v1420_v48  ;;  %v1413_v43 = vmul.f32 0.015625, %v1393_v49  ;;  %v1414_v52 = vmul.f32 0.015625, %v1396_v50 }
 0x5c0   : > { %v1421_v53 = vadd.f32 1e-05, %v1413_v43  ;;  %v1422_v54 = vadd.f32 1e-05, %v1414_v52  ;;  %v1480_v43 = vld [vmem:[%s5557_s0] sm:$0x3] }
 0x5c1   : > { %v1399_v55 = vpop.xlane.xlu1 %1398  ;;  %v1402_v56 = vpop.xlane.xlu0 %1401  ;;  %v5777_v52 = vrot.slane %v1480_v43, %v5752_v62 }
 0x5c2   : > { %4052 = vrsqrt.f32 %v1421_v53  ;;  %v1415_v58 = vmul.f32 0.015625, %v1399_v55  ;;  %v1416_v60 = vmul.f32 0.015625, %v1402_v56 }
 0x5c3   : > { %4054 = vrsqrt.f32 %v1422_v54 }
 0x5c4   : > { %v1423_v59 = vadd.f32 1e-05, %v1415_v58  ;;  %v1424_v4 = vadd.f32 1e-05, %v1416_v60 }
 0x5c5   : > { %v1405_v61 = vpop.xlane.xlu1 %1404  ;;  %v1408_v7 = vpop.xlane.xlu0 %1407 }
 0x5c6   : > { %4056 = vrsqrt.f32 %v1423_v59  ;;  %v1417_v63 = vmul.f32 0.015625, %v1405_v61  ;;  %v1418_v16 = vmul.f32 0.015625, %v1408_v7 }
 0x5c8   : > { %v4051_v3 = vpop.eup %4050  ;;  %v1425_v5 = vadd.f32 1e-05, %v1417_v63  ;;  %v1426_v28 = vadd.f32 1e-05, %v1418_v16 }
 0x5c9   : > { %v1436_v6 = vmul.f32 %v4051_v3, %v5700_v0  ;;  %v1411_v10 = vpop.xlane.xlu1 %1410 }
 0x5ca   : > { %4058 = vrsqrt.f32 %v1425_v5  ;;  %v1419_v14 = vmul.f32 0.015625, %v1411_v10 }
 0x5cb   : > { %4060 = vrsqrt.f32 %v1424_v4  ;;  %v1448_v19 = vmul.f32 %v1447_v11, %v1436_v6 }
 0x5cc   : > { %v4053_v15 = vpop.eup %4052  ;;  %v1427_v23 = vadd.f32 1e-05, %v1419_v14 }
 0x5cd   : > { %v1437_v17 = vmul.f32 %v4053_v15, %v5708_v8  ;;  %v4055_v22 = vpop.eup %4054  ;;  %v1460_v30 = vadd.f32 %v1459_v12, %v1448_v19 }
 0x5ce   : > { %v1438_v29 = vmul.f32 %v4055_v22, %v5702_v1  ;;  %4062 = vrsqrt.f32 %v1427_v23 }
 0x5cf   : > { %v1449_v0 = vmul.f32 %v1447_v11, %v1437_v17  ;;  %4064 = vrsqrt.f32 %v1426_v28 }
 0x5d0   : > { %v4057_v24 = vpop.eup %4056  ;;  %v1450_v8 = vmul.f32 %v1447_v11, %v1438_v29 }
 0x5d1   : > { %v1439_v18 = vmul.f32 %v4057_v24, %v5710_v9  ;;  %v1461_v33 = vadd.f32 %v1459_v12, %v1449_v0 }
 0x5d2   : > { %v1462_v40 = vadd.f32 %v1459_v12, %v1450_v8 }
 0x5d3   : > { %v1476_v34 = vpack.c.bf16 %v1461_v33, %v1460_v30  ;;  %v1451_v35 = vmul.f32 %v1447_v11, %v1439_v18 }
 0x5d4   : > { %v4059_v38 = vpop.eup %4058 }
 0x5d5   : > { %3463 = vmatmul.mubr.msk.bf16.vlgmr.msra.gmra.mrb[0].mxu0 %vm1338_vm1, %v1476_v34  ;;  %v4061_v26 = vpop.eup %4060  ;;  %v1441_v27 = vmul.f32 %v4059_v38, %v5720_v21  ;;  %v1463_v39 = vadd.f32 %v1459_v12, %v1451_v35 }
 0x5d6   : > { %1586 = vmatprep.mubr.bf16.mxu0 %v4845_v46  ;;  %v1440_v1 = vmul.f32 %v4061_v26, %v5718_v20 }
 0x5d7   : > { %v1477_v9 = vpack.c.bf16 %v1463_v39, %v1462_v40  ;;  %v1453_v41 = vmul.f32 %v1447_v11, %v1441_v27 }
 0x5d8   : > { %v4063_v42 = vpop.eup %4062  ;;  %v1452_v25 = vmul.f32 %v1447_v11, %v1440_v1 }
 0x5d9   : > { %v4065_v37 = vpop.eup %4064  ;;  %v1443_v44 = vmul.f32 %v4063_v42, %v5730_v32  ;;  %v1465_v45 = vadd.f32 %v1459_v12, %v1453_v41 }
 0x5da   : > { %v1442_v36 = vmul.f32 %v4065_v37, %v5728_v31  ;;  %v1464_v21 = vadd.f32 %v1459_v12, %v1452_v25  ;;  %v5780_v31 = vrot.slane %v1480_v43, %v5758_v13 }
 0x5db   : > { %v1455_v48 = vmul.f32 %v1447_v11, %v1443_v44 }
 0x5dc   : > { %v1478_v47 = vpack.c.bf16 %v1465_v45, %v1464_v21  ;;  %v1454_v20 = vmul.f32 %v1447_v11, %v1442_v36 }
 0x5dd   : > { %3464 = vmatmul.mubr.msk.bf16.gmra.mrb[4].mxu0 %vm1338_vm1, %v1477_v9  ;;  %v1467_v49 = vadd.f32 %v1459_v12, %v1455_v48 }
 0x5de   : > { %1596 = vmatprep.mubr.bf16.mxu0 %v4845_v46  ;;  %v1466_v50 = vadd.f32 %v1459_v12, %v1454_v20 }
 0x5e0   : > { %v1479_v51 = vpack.c.bf16 %v1467_v49, %v1466_v50 }
 0x5e5   : > { %3465 = vmatmul.mubr.msk.bf16.gmra.mrb[8].mxu0 %vm1338_vm1, %v1478_v47 }
 0x5e6   : > { %1606 = vmatprep.mubr.bf16.mxu0 %v4845_v46 }
 0x5ed   : > { %3466 = vmatmul.mubr.msk.bf16.gmra.mrb[12].mxu0 %vm1338_vm1, %v1479_v51 }
 0x6a8   : > { %v1578_v32 = vpop.f32.mrb[0].mxu0 }
 0x6a9   : > { %v5783_v53 = vadd.f32 %v1578_v32, %v5777_v52  ;;  %v1580_v54 = vpop.f32.mrb[1].mxu0 }
 0x6aa   : > { %v1582_v55 = vpop.f32.mrb[2].mxu0  ;;  %v5791_v59 = vadd.f32 %v1580_v54, %v5780_v31 }
 0x6ab   : > { %v5786_v56 = vadd.f32 %v1582_v55, %v5777_v52  ;;  %v1584_v58 = vpop.f32.mrb[3].mxu0  ;;  %1625 = vrot.lane.b32.xlu0 %v5783_v53, %s4846_s19  ;;  %v1681_v61 = vmul.f32 0.17677669, %v5783_v53 }
 0x6ac   : > { %v5794_v60 = vadd.f32 %v1584_v58, %v5780_v31 }
 0x6ad   : > { %1627 = vrot.lane.b32.xlu1 %v5786_v56, %s4846_s19  ;;  %v1682_v63 = vmul.f32 0.17677669, %v5786_v56  ;;  %v1705_v2 = vpack.c.bf16 %v5786_v56, %v5783_v53 }
 0x6ae   : > { %v3966_v3 = vpack.i.bf16 %v5794_v60, %v5791_v59  ;;  %v2051_v4 = vpack.c.bf16 %v5794_v60, %v5791_v59 }
 0x6af   : > { %v1697_v5 = vpack.c.bf16 %v1682_v63, %v1681_v61 }
 0x6b0   : > { %v1588_v6 = vpop.f32.mrb[4].mxu0  ;;  %3666 = vmatprep.subr.bf16.mxu0 %v2051_v4 }
 0x6b1   : > { %v1589_v7 = vadd.f32 %v1588_v6, %v5777_v52  ;;  %v1590_v10 = vpop.f32.mrb[5].mxu0  ;;  %3650 = vmatprep.mubr.msk.bf16.mxu1 %vm1753_vm2, %v1697_v5  ;;  %3667 = vmatpush3.bf16.msra.mxu0 %v2051_v4 }
 0x6b2   : > { %v1592_v11 = vpop.f32.mrb[6].mxu0  ;;  %v5811_v16 = vadd.f32 %v1590_v10, %v5780_v31 }
 0x6b3   : > { %v1593_v14 = vadd.f32 %v1592_v11, %v5777_v52  ;;  %v1594_v15 = vpop.f32.mrb[7].mxu0  ;;  %1629 = vrot.lane.b32.xlu1 %v1589_v7, %s4846_s19  ;;  %v5816_v19 = vmul.f32 0.17677669, %v1589_v7 }
 0x6b4   : > { %v5814_v17 = vadd.f32 %v1594_v15, %v5780_v31 }
 0x6b5   : > { %v5818_v12 = vmul.f32 0.17677669, %v1593_v14  ;;  %v1706_v22 = vpack.c.bf16 %v1593_v14, %v1589_v7 }
 0x6b6   : > { %v3971_v23 = vpack.i.bf16 %v5814_v17, %v5811_v16  ;;  %v2052_v0 = vpack.c.bf16 %v5814_v17, %v5811_v16 }
 0x6b7   : > { %v1698_v24 = vpack.c.bf16 %v5818_v12, %v5816_v19  ;;  %1631 = vrot.lane.b32.xlu1 %v1593_v14, %s4846_s19  ;;  %v1715_v19 = vld [vmem:[#allocation12 + $0x10] sm:$0xff] }
 0x6b8   : > { %v1598_v28 = vpop.f32.mrb[8].mxu0  ;;  %3668 = vmatprep.subr.bf16.mxu0 %v2052_v0 }
 0x6b9   : > { %v1599_v29 = vadd.f32 %v1598_v28, %v5777_v52  ;;  %v1600_v18 = vpop.f32.mrb[9].mxu0  ;;  %3669 = vmatpush3.bf16.msra.mxu0 %v2052_v0 }
 0x6ba   : > { %v1602_v30 = vpop.f32.mrb[10].mxu0  ;;  %v5831_v35 = vadd.f32 %v1600_v18, %v5780_v31 }
 0x6bb   : > { %v1603_v33 = vadd.f32 %v1602_v30, %v5777_v52  ;;  %v1604_v34 = vpop.f32.mrb[11].mxu0  ;;  %1633 = vrot.lane.b32.xlu0 %v1599_v29, %s4846_s19  ;;  %v5836_v8 = vmul.f32 0.17677669, %v1599_v29 }
 0x6bc   : > { %v5834_v38 = vadd.f32 %v1604_v34, %v5780_v31 }
 0x6bd   : > { %v5838_v26 = vmul.f32 0.17677669, %v1603_v33  ;;  %1635 = vrot.lane.b32.xlu1 %v1603_v33, %s4846_s19  ;;  %v1707_v27 = vpack.c.bf16 %v1603_v33, %v1599_v29 }
 0x6be   : > { %v3976_v39 = vpack.i.bf16 %v5834_v38, %v5831_v35  ;;  %v2053_v1 = vpack.c.bf16 %v5834_v38, %v5831_v35 }
 0x6bf   : > { %v1699_v40 = vpack.c.bf16 %v5838_v26, %v5836_v8  ;;  %v1714_v26 = vld [vmem:[#allocation12 + $0x8] sm:$0xff] }
 0x6c0   : > { %v1608_v9 = vpop.f32.mrb[12].mxu0  ;;  %3670 = vmatprep.subr.bf16.mxu0 %v2053_v1 }
 0x6c1   : > { %v1609_v41 = vadd.f32 %v1608_v9, %v5777_v52  ;;  %v1610_v42 = vpop.f32.mrb[13].mxu0  ;;  %3671 = vmatpush3.bf16.msra.mxu0 %v2053_v1 }
 0x6c2   : > { %v1612_v25 = vpop.f32.mrb[14].mxu0  ;;  %v5851_v45 = vadd.f32 %v1610_v42, %v5780_v31 }
 0x6c3   : > { %v1613_v37 = vadd.f32 %v1612_v25, %v5777_v52  ;;  %v1614_v44 = vpop.f32.mrb[15].mxu0  ;;  %1637 = vrot.lane.b32.xlu0 %v1609_v41, %s4846_s19  ;;  %v5856_v21 = vmul.f32 0.17677669, %v1609_v41 }
 0x6c4   : > { %v5854_v36 = vadd.f32 %v1614_v44, %v5780_v31 }
 0x6c5   : > { %v5858_v47 = vmul.f32 0.17677669, %v1613_v37  ;;  %1639 = vrot.lane.b32.xlu1 %v1613_v37, %s4846_s19  ;;  %v1708_v48 = vpack.c.bf16 %v1613_v37, %v1609_v41 }
 0x6c6   : > { %v3981_v20 = vpack.i.bf16 %v5854_v36, %v5851_v45  ;;  %v2054_v49 = vpack.c.bf16 %v5854_v36, %v5851_v45 }
 0x6c7   : > { %v1700_v50 = vpack.c.bf16 %v5858_v47, %v5856_v21  ;;  %1737 = vrot.lane.b32.xlu0 %v1705_v2, %s4847_s26 }
 0x6c8   : > { %3672 = vmatprep.subr.bf16.mxu0 %v2054_v49 }
 0x6c9   : > { %1739 = vrot.lane.b32.xlu1 %v1706_v22, %s4847_s26  ;;  %3673 = vmatpush3.bf16.msra.mxu0 %v2054_v49 }
 0x6cb   : > { %1741 = vrot.lane.b32.xlu0 %v1707_v27, %s4847_s26 }
 0x6cd   : > { %1743 = vrot.lane.b32.xlu1 %v1708_v48, %s4847_s26 }
 0x71d   : > { %v1626_v51 = vpop.permute.xlu0 %1625 }
 0x71e   : > { %v1689_v52 = vmul.f32 0.17677669, %v1626_v51 }
 0x71f   : > { %v1628_v43 = vpop.permute.xlu1 %1627 }
 0x720   : > { %v1690_v32 = vmul.f32 0.17677669, %v1628_v43  ;;  %v1709_v31 = vpack.c.bf16 %v1628_v43, %v1626_v51 }
 0x722   : > { %v1701_v53 = vpack.c.bf16 %v1690_v32, %v1689_v52  ;;  %1745 = vrot.lane.b32.xlu0 %v1709_v31, %s4847_s26  ;;  %v1716_v52 = vld [vmem:[#allocation12 + $0x18] sm:$0xff] }
 0x723   : > { %v1720_v31 = vld [vmem:[#allocation12 + $0x38] sm:$0xff] }
 0x725   : > { %v1630_v54 = vpop.permute.xlu1 %1629 }
 0x726   : > { %v1691_v56 = vmul.f32 0.17677669, %v1630_v54 }
 0x729   : > { %v1632_v55 = vpop.permute.xlu1 %1631 }
 0x72a   : > { %v1692_v58 = vmul.f32 0.17677669, %v1632_v55  ;;  %v1710_v61 = vpack.c.bf16 %v1632_v55, %v1630_v54  ;;  %v1719_v55 = vld [vmem:[#allocation12 + $0x30] sm:$0xff] }
 0x72c   : > { %v1702_v63 = vpack.c.bf16 %v1692_v58, %v1691_v56  ;;  %1747 = vrot.lane.b32.xlu1 %v1710_v61, %s4847_s26 }
 0x72d   : > { %v1634_v2 = vpop.permute.xlu0 %1633 }
 0x72e   : > { %v1693_v5 = vmul.f32 0.17677669, %v1634_v2 }
 0x72f   : > { %v1636_v4 = vpop.permute.xlu1 %1635 }
 0x730   : > { %v1694_v6 = vmul.f32 0.17677669, %v1636_v4  ;;  %v1711_v7 = vpack.c.bf16 %v1636_v4, %v1634_v2  ;;  %v1717_v4 = vld [vmem:[#allocation12 + $0x20] sm:$0xff] }
 0x732   : > { %v1703_v10 = vpack.c.bf16 %v1694_v6, %v1693_v5  ;;  %1749 = vrot.lane.b32.xlu0 %v1711_v7, %s4847_s26  ;;  %v1724_v7 = vld [vmem:[#allocation12 + $0x58] sm:$0xff] }
 0x735   : > { %v1638_v11 = vpop.permute.xlu0 %1637 }
 0x736   : > { %v1695_v15 = vmul.f32 0.17677669, %v1638_v11 }
 0x737   : > { %v1640_v14 = vpop.permute.xlu1 %1639 }
 0x738   : > { %v1696_v22 = vmul.f32 0.17677669, %v1640_v14  ;;  %v1712_v0 = vpack.c.bf16 %v1640_v14, %v1638_v11  ;;  %v1723_v14 = vld [vmem:[#allocation12 + $0x50] sm:$0xff] }
 0x739   : > { %v1738_v28 = vpop.permute.xlu0 %1737 }
 0x73a   : > { %v1704_v29 = vpack.c.bf16 %v1696_v22, %v1695_v15  ;;  %1751 = vrot.lane.b32.xlu1 %v1712_v0, %s4847_s26  ;;  %3750 = vmatprep.subr.msk.bf16.mxu1 %vm1753_vm2, %v1738_v28  ;;  %v1779_v18 = vsel %vm1753_vm2, %v1738_v28, 0  ;;  %v1722_v28 = vld [vmem:[#allocation12 + $0x48] sm:$0xff] }
 0x73b   : > { %v1740_v30 = vpop.permute.xlu1 %1739  ;;  %3635 = vmatpush3.bf16.xpose.msra.mxu1 %v1779_v18  ;;  %v1721_v18 = vld [vmem:[#allocation12 + $0x40] sm:$0xff] }
 0x73c   : > { %3751 = vmatprep.subr.msk.bf16.mxu1 %vm1753_vm2, %v1740_v30  ;;  %v1782_v33 = vsel %vm1753_vm2, %v1740_v30, 0 }
 0x73d   : > { %v1742_v34 = vpop.permute.xlu0 %1741 }
 0x73e   : > { %v1785_v27 = vsel %vm1753_vm2, %v1742_v34, 0 }
 0x73f   : > { %v1744_v1 = vpop.permute.xlu1 %1743 }
 0x740   : > { %v1788_v9 = vsel %vm1753_vm2, %v1744_v1, 0 }
 0x743   : > { %3637 = vmatpush3.bf16.xpose.msra.mxu1 %v1782_v33 }
 0x744   : > { %3752 = vmatprep.subr.msk.bf16.mxu1 %vm1753_vm2, %v1742_v34  ;;  %v1728_v34 = vld [vmem:[#allocation12 + $0x78] sm:$0xff] }
 0x74b   : > { %3639 = vmatpush3.bf16.xpose.msra.mxu1 %v1785_v27 }
 0x74c   : > { %3753 = vmatprep.subr.msk.bf16.mxu1 %vm1753_vm2, %v1744_v1 }
 0x753   : > { %3641 = vmatpush3.bf16.xpose.msra.mxu1 %v1788_v9  ;;  %v1727_v9 = vld [vmem:[#allocation12 + $0x70] sm:$0xff] }
 0x794   : > { %v1746_v41 = vpop.permute.xlu0 %1745 }
 0x795   : > { %3754 = vmatprep.subr.msk.bf16.mxu1 %vm1753_vm2, %v1746_v41  ;;  %v1791_v42 = vsel %vm1753_vm2, %v1746_v41, 0 }
 0x796   : > { %3643 = vmatpush3.bf16.xpose.msra.mxu1 %v1791_v42 }
 0x79e   : > { %v1748_v25 = vpop.permute.xlu1 %1747 }
 0x79f   : > { %3755 = vmatprep.subr.msk.bf16.mxu1 %vm1753_vm2, %v1748_v25  ;;  %v1794_v37 = vsel %vm1753_vm2, %v1748_v25, 0 }
 0x7a0   : > { %3645 = vmatpush3.bf16.xpose.msra.mxu1 %v1794_v37  ;;  %v1726_v37 = vld [vmem:[#allocation12 + $0x68] sm:$0xff] }
 0x7a4   : > { %v1750_v44 = vpop.permute.xlu0 %1749 }
 0x7a5   : > { %3756 = vmatprep.subr.msk.bf16.mxu1 %vm1753_vm2, %v1750_v44  ;;  %v1797_v48 = vsel %vm1753_vm2, %v1750_v44, 0 }
 0x7a8   : > { %3647 = vmatpush3.bf16.xpose.msra.mxu1 %v1797_v48  ;;  %v1725_v48 = vld [vmem:[#allocation12 + $0x60] sm:$0xff] }
 0x7ac   : > { %v1752_v49 = vpop.permute.xlu1 %1751 }
 0x7ad   : > { %3757 = vmatprep.subr.msk.bf16.mxu1 %vm1753_vm2, %v1752_v49  ;;  %v1800_v51 = vsel %vm1753_vm2, %v1752_v49, 0 }
 0x7b0   : > { %3649 = vmatpush3.bf16.xpose.msra.mxu1 %v1800_v51 }
 0x7b7   : > { %3651 = vmatmul.mubr.msk.bf16.vlgmr.msra.gmra.mrb[0].mxu1 %vm1753_vm2, %v1698_v24 }
 0x7b8   : > { %3654 = vmatprep.mubr.msk.bf16.mxu1 %vm1753_vm2, %v1699_v40  ;;  %v1713_v40 = vld [vmem:[#allocation12] sm:$0xff] }
 0x7bf   : > { %3655 = vmatmul.mubr.msk.bf16.gmra.mrb[4].mxu1 %vm1753_vm2, %v1700_v50 }
 0x7c0   : > { %3658 = vmatprep.mubr.msk.bf16.mxu1 %vm1753_vm2, %v1701_v53 }
 0x7c7   : > { %3659 = vmatmul.mubr.msk.bf16.gmra.mrb[8].mxu1 %vm1753_vm2, %v1702_v63  ;;  %v1718_v63 = vld [vmem:[#allocation12 + $0x28] sm:$0xff] }
 0x7c8   : > { %3662 = vmatprep.mubr.msk.bf16.mxu1 %vm1753_vm2, %v1703_v10 }
 0x7cf   : > { %3663 = vmatmul.mubr.msk.bf16.gmra.mrb[12].mxu1 %vm1753_vm2, %v1704_v29 }
 0x88a   : > { %v3652_v12 = vpop.f32.mrb[0].mxu1 }
 0x88b   : > { %v5907_v24 = vadd.f32 %v3652_v12, %v1715_v19  ;;  %v1836_v8 = vpop.f32.mrb[1].mxu1 }
 0x88c   : > { %v3653_v43 = vpop.f32.mrb[2].mxu1  ;;  %v5912_v50 = vadd.f32 %v1836_v8, %v1713_v40 }
 0x88d   : > { %1903 = vmax.xlane.f32.xlu0 %v5907_v24  ;;  %v1839_v21 = vpop.f32.mrb[3].mxu1  ;;  %v5916_v53 = vadd.f32 %v3653_v43, %v1716_v52 }
 0x88e   : > { %v5910_v47 = vadd.f32 %v1839_v21, %v1714_v26 }
 0x890   : > { %1901 = vmax.xlane.f32.xlu1 %v5910_v47 }
 0x891   : > { %1899 = vmax.xlane.f32.xlu0 %v5912_v50 }
 0x892   : > { %v3656_v32 = vpop.f32.mrb[4].mxu1 }
 0x893   : > { %v1852_v54 = vpop.f32.mrb[5].mxu1  ;;  %v5921_v2 = vadd.f32 %v3656_v32, %v1719_v55 }
 0x894   : > { %v3657_v56 = vpop.f32.mrb[6].mxu1  ;;  %v5927_v10 = vadd.f32 %v1852_v54, %v1717_v4 }
 0x895   : > { %v5918_v58 = vadd.f32 %v3657_v56, %v1720_v31  ;;  %v1855_v61 = vpop.f32.mrb[7].mxu1  ;;  %1905 = vmax.xlane.f32.xlu0 %v5916_v53 }
 0x896   : > { %v5924_v5 = vadd.f32 %v1855_v61, %v1718_v63 }
 0x897   : > { %1913 = vmax.xlane.f32.xlu1 %v5918_v58 }
 0x899   : > { %1911 = vmax.xlane.f32.xlu0 %v5921_v2 }
 0x89a   : > { %v3660_v6 = vpop.f32.mrb[8].mxu1 }
 0x89b   : > { %v1868_v11 = vpop.f32.mrb[9].mxu1  ;;  %1909 = vmax.xlane.f32.xlu1 %v5924_v5  ;;  %v5933_v29 = vadd.f32 %v3660_v6, %v1723_v14 }
 0x89c   : > { %v3661_v15 = vpop.f32.mrb[10].mxu1  ;;  %v5939_v27 = vadd.f32 %v1868_v11, %v1721_v18 }
 0x89d   : > { %v5930_v22 = vadd.f32 %v3661_v15, %v1724_v7  ;;  %v1871_v0 = vpop.f32.mrb[11].mxu1  ;;  %1907 = vmax.xlane.f32.xlu0 %v5927_v10 }
 0x89e   : > { %v5936_v30 = vadd.f32 %v1871_v0, %v1722_v28 }
 0x89f   : > { %1921 = vmax.xlane.f32.xlu1 %v5930_v22 }
 0x8a1   : > { %1919 = vmax.xlane.f32.xlu0 %v5933_v29 }
 0x8a2   : > { %v3664_v33 = vpop.f32.mrb[12].mxu1 }
 0x8a3   : > { %v1884_v1 = vpop.f32.mrb[13].mxu1  ;;  %1917 = vmax.xlane.f32.xlu1 %v5936_v30  ;;  %v5945_v44 = vadd.f32 %v3664_v33, %v1727_v9 }
 0x8a4   : > { %v3665_v41 = vpop.f32.mrb[14].mxu1  ;;  %v5951_v51 = vadd.f32 %v1884_v1, %v1725_v48 }
 0x8a5   : > { %v5942_v42 = vadd.f32 %v3665_v41, %v1728_v34  ;;  %v1887_v25 = vpop.f32.mrb[15].mxu1  ;;  %1915 = vmax.xlane.f32.xlu0 %v5939_v27 }
 0x8a6   : > { %v5948_v49 = vadd.f32 %v1887_v25, %v1726_v37 }
 0x8a7   : > { %1929 = vmax.xlane.f32.xlu1 %v5942_v42 }
 0x8a9   : > { %1927 = vmax.xlane.f32.xlu0 %v5945_v44 }
 0x8ab   : > { %1925 = vmax.xlane.f32.xlu1 %v5948_v49 }
 0x8ad   : > { %1923 = vmax.xlane.f32.xlu0 %v5951_v51 }
 0x8bc   : > { %3972 = vrot.lane.b32.xlu1 %v3971_v23, %s4846_s19 }
 0x8c3   : > { %3967 = vrot.lane.b32.xlu0 %v3966_v3, %s4846_s19 }
 0x91a   : > { %v1904_v19 = vpop.xlane.xlu0 %1903 }
 0x91b   : > { %v1933_v12 = vsub.f32 %v5907_v24, %v1904_v19 }
 0x91d   : > { %v1951_v8 = vmul.f32 1.442695, %v1933_v12  ;;  %v1902_v40 = vpop.xlane.xlu1 %1901 }
 0x91e   : > { %v1900_v26 = vpop.xlane.xlu0 %1899  ;;  %v1932_v52 = vsub.f32 %v5910_v47, %v1902_v40 }
 0x91f   : > { %4066 = vpow2.f32 %v1951_v8  ;;  %v1931_v43 = vsub.f32 %v5912_v50, %v1900_v26 }
 0x920   : > { %v1949_v59 = vmul.f32 1.442695, %v1932_v52 }
 0x921   : > { %v1947_v21 = vmul.f32 1.442695, %v1931_v43 }
 0x922   : > { %v1906_v32 = vpop.xlane.xlu0 %1905 }
 0x923   : > { %4068 = vpow2.f32 %v1947_v21  ;;  %v1934_v16 = vsub.f32 %v5916_v53, %v1906_v32 }
 0x924   : > { %v1914_v17 = vpop.xlane.xlu1 %1913 }
 0x925   : > { %v1953_v23 = vmul.f32 1.442695, %v1934_v16  ;;  %v1938_v60 = vsub.f32 %v5918_v58, %v1914_v17 }
 0x926   : > { %v1912_v3 = vpop.xlane.xlu0 %1911 }
 0x927   : > { %4070 = vpow2.f32 %v1953_v23  ;;  %v1937_v24 = vsub.f32 %v5921_v2, %v1912_v3  ;;  %v1961_v55 = vmul.f32 1.442695, %v1938_v60 }
 0x928   : > { %v1910_v31 = vpop.xlane.xlu1 %1909  ;;  %4072 = vpow2.f32 %v1949_v59 }
 0x929   : > { %v5969_v54 = vpop.eup %4066  ;;  %v1959_v50 = vmul.f32 1.442695, %v1937_v24  ;;  %v1936_v47 = vsub.f32 %v5924_v5, %v1910_v31 }
 0x92a   : > { %1983 = vadd.xlane.f32.xlu0 %v5969_v54  ;;  %v1908_v53 = vpop.xlane.xlu0 %1907 }
 0x92b   : > { %4074 = vpow2.f32 %v1959_v50  ;;  %v1935_v56 = vsub.f32 %v5927_v10, %v1908_v53  ;;  %v1957_v2 = vmul.f32 1.442695, %v1936_v47 }
 0x92c   : > { %v1922_v61 = vpop.xlane.xlu1 %1921  ;;  %4076 = vpow2.f32 %v1961_v55 }
 0x92d   : > { %v5974_v58 = vpop.eup %4068  ;;  %v1955_v63 = vmul.f32 1.442695, %v1935_v56  ;;  %v1942_v15 = vsub.f32 %v5930_v22, %v1922_v61 }
 0x92e   : > { %1979 = vadd.xlane.f32.xlu0 %v5974_v58  ;;  %v1920_v4 = vpop.xlane.xlu0 %1919 }
 0x92f   : > { %4078 = vpow2.f32 %v1955_v63  ;;  %v1941_v6 = vsub.f32 %v5933_v29, %v1920_v4  ;;  %v1969_v1 = vmul.f32 1.442695, %v1942_v15 }
 0x930   : > { %v1918_v7 = vpop.xlane.xlu1 %1917  ;;  %4080 = vpow2.f32 %v1957_v2 }
 0x931   : > { %v5978_v5 = vpop.eup %4070  ;;  %v1967_v11 = vmul.f32 1.442695, %v1941_v6  ;;  %v1940_v14 = vsub.f32 %v5936_v30, %v1918_v7 }
 0x932   : > { %1985 = vadd.xlane.f32.xlu1 %v5978_v5  ;;  %v1916_v10 = vpop.xlane.xlu0 %1915  ;;  %v5984_v18 = vpop.eup %4072 }
 0x933   : > { %4082 = vpow2.f32 %v1967_v11  ;;  %v1965_v0 = vmul.f32 1.442695, %v1940_v14  ;;  %v1939_v28 = vsub.f32 %v5939_v27, %v1916_v10 }
 0x934   : > { %v1930_v33 = vpop.xlane.xlu1 %1929 }
 0x935   : > { %v5986_v29 = vpop.eup %4074  ;;  %v1963_v34 = vmul.f32 1.442695, %v1939_v28  ;;  %4084 = vpow2.f32 %v1965_v0  ;;  %v1946_v24 = vsub.f32 %v5942_v42, %v1930_v33 }
 0x936   : > { %1981 = vadd.xlane.f32.xlu1 %v5984_v18  ;;  %1991 = vadd.xlane.f32.xlu0 %v5986_v29  ;;  %v1928_v30 = vpop.xlane.xlu0 %1927  ;;  %v5990_v9 = vpop.eup %4076 }
 0x937   : > { %4086 = vpow2.f32 %v1963_v34  ;;  %v1945_v23 = vsub.f32 %v5945_v44, %v1928_v30  ;;  %v1977_v45 = vmul.f32 1.442695, %v1946_v24 }
 0x938   : > { %v1926_v22 = vpop.xlane.xlu1 %1925  ;;  %4088 = vpow2.f32 %v1969_v1 }
 0x939   : > { %v5992_v41 = vpop.eup %4078  ;;  %v1944_v17 = vsub.f32 %v5948_v49, %v1926_v22  ;;  %v1975_v3 = vmul.f32 1.442695, %v1945_v23 }
 0x93a   : > { %1993 = vadd.xlane.f32.xlu1 %v5990_v9  ;;  %1987 = vadd.xlane.f32.xlu0 %v5992_v41  ;;  %v1924_v27 = vpop.xlane.xlu0 %1923  ;;  %v5996_v25 = vpop.eup %4080 }
 0x93b   : > { %v1973_v59 = vmul.f32 1.442695, %v1944_v17  ;;  %v1943_v60 = vsub.f32 %v5951_v51, %v1924_v27 }
 0x93c   : > { %v3973_v37 = vpop.permute.xlu1 %3972 }
 0x93d   : > { %v5998_v48 = vpop.eup %4082  ;;  %v3975_v12 = vunpack.i.h.bf16 %v3973_v37  ;;  %v3974_v8 = vunpack.i.l.bf16 %v3973_v37  ;;  %4090 = vpow2.f32 %v1973_v59  ;;  %v1971_v31 = vmul.f32 1.442695, %v1943_v60 }
 0x93e   : > { %1989 = vadd.xlane.f32.xlu1 %v5996_v25  ;;  %1999 = vadd.xlane.f32.xlu0 %v5998_v48  ;;  %v3968_v19 = vpop.permute.xlu0 %3967  ;;  %4092 = vpow2.f32 %v1975_v3 }
 0x93f   : > { %v3970_v26 = vunpack.i.h.bf16 %v3968_v19  ;;  %v3969_v40 = vunpack.i.l.bf16 %v3968_v19  ;;  %v6002_v43 = vpop.eup %4084  ;;  %v2056_v32 = vpack.c.bf16 %v3975_v12, %v3974_v8  ;;  %4094 = vpow2.f32 %v1971_v31 }
 0x940   : > { %4096 = vpow2.f32 %v1977_v45 }
 0x941   : > { %v6004_v21 = vpop.eup %4086  ;;  %v2055_v52 = vpack.c.bf16 %v3970_v26, %v3969_v40 }
 0x942   : > { %1997 = vadd.xlane.f32.xlu0 %v6002_v43  ;;  %1995 = vadd.xlane.f32.xlu1 %v6004_v21  ;;  %v6008_v16 = vpop.eup %4088 }
 0x943   : > { %3674 = vmatprep.subr.bf16.mxu0 %v2055_v52 }
 0x944   : > { %3675 = vmatpush3.bf16.msra.mxu0 %v2055_v52 }
 0x945   : > { %3676 = vmatprep.subr.bf16.mxu0 %v2056_v32 }
 0x946   : > { %2001 = vadd.xlane.f32.xlu1 %v6008_v16 }
 0x947   : > { %v6023_v36 = vpop.eup %4090 }
 0x948   : > { %3677 = vmatpush3.bf16.msra.mxu0 %v2056_v32  ;;  %v6026_v35 = vpop.eup %4092 }
 0x949   : > { %v6028_v38 = vpop.eup %4094 }
 0x957   : > { %3982 = vrot.lane.b32.xlu1 %v3981_v20, %s4846_s19 }
 0x958   : > { %3977 = vrot.lane.b32.xlu0 %v3976_v39, %s4846_s19  ;;  %v6032_v39 = vpop.eup %4096 }
 0x977   : > { %2005 = vadd.xlane.f32.xlu0 %v6023_v36 }
 0x97b   : > { %2007 = vadd.xlane.f32.xlu0 %v6026_v35  ;;  %2003 = vadd.xlane.f32.xlu1 %v6028_v38 }
 0x97f   : > { %2009 = vadd.xlane.f32.xlu1 %v6032_v39 }
 0x9b7   : > { %v1984_v20 = vpop.xlane.xlu0 %1983 }
 0x9bb   : > { %v1980_v42 = vpop.xlane.xlu0 %1979 }
 0x9bc   : > { %4098 = vrcp.f32 %v1980_v42 }
 0x9bf   : > { %v1986_v44 = vpop.xlane.xlu1 %1985 }
 0x9c3   : > { %v1982_v49 = vpop.xlane.xlu1 %1981  ;;  %v1992_v51 = vpop.xlane.xlu0 %1991 }
 0x9c4   : > { %4100 = vrcp.f32 %v1982_v49 }
 0x9c5   : > { %4102 = vrcp.f32 %v1986_v44 }
 0x9c6   : > { %v4099_v56 = vpop.eup %4098 }
 0x9c7   : > { %v1994_v50 = vpop.xlane.xlu1 %1993  ;;  %v1988_v55 = vpop.xlane.xlu0 %1987  ;;  %v2027_v4 = vmul.f32 %v4099_v56, %v5974_v58  ;;  %v4019_v56 = vld [vmem:[%s5564_s1 + $0x8] sm:$0xff]  }
 0x9cb   : > { %v1990_v47 = vpop.xlane.xlu1 %1989  ;;  %v2000_v53 = vpop.xlane.xlu0 %1999 }
 0x9cc   : > { %4104 = vrcp.f32 %v1990_v47 }
 0x9cd   : > { %4106 = vrcp.f32 %v1984_v20 }
 0x9ce   : > { %v4101_v61 = vpop.eup %4100  ;;  %4108 = vrcp.f32 %v1988_v55 }
 0x9cf   : > { %v1996_v63 = vpop.xlane.xlu1 %1995  ;;  %v1998_v2 = vpop.xlane.xlu0 %1997  ;;  %v2028_v6 = vmul.f32 %v4101_v61, %v5984_v18  ;;  %4110 = vrcp.f32 %v1994_v50  ;;  %v4020_v61 = vld [vmem:[%s5564_s1 + $0x10] sm:$0xff]  }
 0x9d0   : > { %4112 = vrcp.f32 %v1996_v63  ;;  %v4103_v28 = vpop.eup %4102 }
 0x9d1   : > { %v2043_v7 = vpack.c.bf16 %v2028_v6, %v2027_v4  ;;  %4114 = vrcp.f32 %v1998_v2  ;;  %v2030_v22 = vmul.f32 %v4103_v28, %v5978_v5 }
 0x9d2   : > { %4116 = vrcp.f32 %v1992_v51 }
 0x9d3   : > { %v2002_v11 = vpop.xlane.xlu1 %2001  ;;  %3682 = vmatprep.mubr.bf16.mxu0 %v2043_v7  ;;  %v3978_v14 = vpop.permute.xlu0 %3977 }
 0x9d4   : > { %v3980_v10 = vunpack.i.h.bf16 %v3978_v14  ;;  %v3979_v15 = vunpack.i.l.bf16 %v3978_v14  ;;  %4118 = vrcp.f32 %v2002_v11 }
 0x9d5   : > { %4120 = vrcp.f32 %v2000_v53  ;;  %v4018_v53 = vld [vmem:[%s5564_s1] sm:$0xff]  }
 0x9d6   : > { %v2057_v0 = vpack.c.bf16 %v3980_v10, %v3979_v15  ;;  %v4105_v34 = vpop.eup %4104 }
 0x9d7   : > { %v3983_v33 = vpop.permute.xlu1 %3982  ;;  %v4107_v58 = vpop.eup %4106  ;;  %v2032_v37 = vmul.f32 %v4105_v34, %v5996_v25 }
 0x9d8   : > { %v3985_v30 = vunpack.i.h.bf16 %v3983_v33  ;;  %v3984_v1 = vunpack.i.l.bf16 %v3983_v33  ;;  %3678 = vmatprep.subr.bf16.mxu0 %v2057_v0  ;;  %v4109_v18 = vpop.eup %4108  ;;  %v2029_v19 = vmul.f32 %v4107_v58, %v5969_v54 }
 0x9d9   : > { %3679 = vmatpush3.bf16.msra.mxu0 %v2057_v0  ;;  %v2031_v12 = vmul.f32 %v4109_v18, %v5992_v41  ;;  %v4111_v8 = vpop.eup %4110 }
 0x9da   : > { %v2058_v27 = vpack.c.bf16 %v3985_v30, %v3984_v1  ;;  %v2044_v26 = vpack.c.bf16 %v2030_v22, %v2029_v19  ;;  %v4113_v40 = vpop.eup %4112  ;;  %v2034_v5 = vmul.f32 %v4111_v8, %v5990_v9 }
 0x9db   : > { %v2045_v52 = vpack.c.bf16 %v2032_v37, %v2031_v12  ;;  %v4115_v32 = vpop.eup %4114  ;;  %v2035_v25 = vmul.f32 %v4113_v40, %v6004_v21 }
 0x9dc   : > { %3680 = vmatprep.subr.bf16.mxu0 %v2058_v27  ;;  %v4117_v17 = vpop.eup %4116  ;;  %v2036_v54 = vmul.f32 %v4115_v32, %v6002_v43 }
 0x9dd   : > { %3681 = vmatpush3.bf16.msra.mxu0 %v2058_v27  ;;  %v2033_v23 = vmul.f32 %v4117_v17, %v5986_v29 }
 0x9de   : > { %v4119_v60 = vpop.eup %4118  ;;  %v2047_v41 = vpack.c.bf16 %v2036_v54, %v2035_v25  ;;  %3698 = vmatprep.subr.bf16.mxu0 %v4018_v53 }
 0x9df   : > { %v2046_v59 = vpack.c.bf16 %v2034_v5, %v2033_v23  ;;  %v4121_v3 = vpop.eup %4120  ;;  %v2038_v24 = vmul.f32 %v4119_v60, %v6008_v16 }
 0x9e0   : > { %3683 = vmatmul.mubr.bf16.vlgmr.msra.gmra.mrb[16].mxu0 %v2044_v26  ;;  %v2037_v31 = vmul.f32 %v4121_v3, %v5998_v48 }
 0x9e1   : > { %3686 = vmatprep.mubr.bf16.mxu0 %v2045_v52  ;;  %3699 = vmatpush3.bf16.msra.mxu0 %v4018_v53 }
 0x9e2   : > { %v2048_v45 = vpack.c.bf16 %v2038_v24, %v2037_v31  ;;  %3700 = vmatprep.subr.bf16.mxu0 %v4019_v56 }
 0x9e5   : > { %3701 = vmatpush3.bf16.msra.mxu0 %v4019_v56  ;;  %v4212_v56 = vld [vmem:[#allocation2 + $0x8] sm:$0xff] }
 0x9e6   : > { %3702 = vmatprep.subr.bf16.mxu0 %v4020_v61 }
 0x9e8   : > { %3687 = vmatmul.mubr.bf16.gmra.mrb[20].mxu0 %v2046_v59 }
 0x9e9   : > { %3690 = vmatprep.mubr.bf16.mxu0 %v2047_v41  ;;  %3703 = vmatpush3.bf16.msra.mxu0 %v4020_v61 }
 0x9f0   : > { %3691 = vmatmul.mubr.bf16.gmra.mrb[24].mxu0 %v2048_v45 }
 0xa04   : > { %v2006_v20 = vpop.xlane.xlu0 %2005 }
 0xa05   : > { %4122 = vrcp.f32 %v2006_v20 }
 0xa08   : > { %v2004_v9 = vpop.xlane.xlu1 %2003  ;;  %v2008_v21 = vpop.xlane.xlu0 %2007 }
 0xa09   : > { %4124 = vrcp.f32 %v2004_v9 }
 0xa0a   : > { %4126 = vrcp.f32 %v2008_v21  ;;  %v3475_v21 = vld [vmem:[%s850_s4] ss:$0 sm:$0xff] }
 0xa0c   : > { %v2010_v29 = vpop.xlane.xlu1 %2009 }
 0xa0d   : > { %4128 = vrcp.f32 %v2010_v29 }
 0xa0f   : > { %v4123_v43 = vpop.eup %4122 }
 0xa10   : > { %v2040_v16 = vmul.f32 %v4123_v43, %v6023_v36 }
 0xa13   : > { %v4125_v42 = vpop.eup %4124 }
 0xa14   : > { %v2039_v44 = vmul.f32 %v4125_v42, %v6028_v38  ;;  %v4127_v48 = vpop.eup %4126 }
 0xa15   : > { %v2041_v50 = vmul.f32 %v4127_v48, %v6026_v35 }
 0xa16   : > { %v2049_v49 = vpack.c.bf16 %v2040_v16, %v2039_v44 }
 0xa17   : > { %v4129_v51 = vpop.eup %4128 }
 0xa18   : > { %3694 = vmatprep.mubr.bf16.mxu0 %v2049_v49  ;;  %v2042_v55 = vmul.f32 %v4129_v51, %v6032_v39  ;;  %v4021_v39 = vld [vmem:[%s5564_s1 + $0x18] sm:$0xff]  }
 0xa19   : > { %3704 = vmatprep.subr.bf16.mxu0 %v4021_v39  ;;  %v4210_v49 = vld [vmem:[#allocation2] sm:$0xff] }
 0xa1a   : > { %v2050_v47 = vpack.c.bf16 %v2042_v55, %v2041_v50  ;;  %3705 = vmatpush3.bf16.msra.mxu0 %v4021_v39  ;;  %v4211_v55 = vld [vmem:[#allocation2 + $0x10] sm:$0xff] }
 0xa1c   : > { %3695 = vmatmul.mubr.bf16.gmra.mrb[28].mxu0 %v2050_v47 }
 0xab3   : > { %v3684_v36 = vpop.f32.mrb[16].mxu0 }
 0xab4   : > { %v2093_v38 = vpop.f32.mrb[17].mxu0 }
 0xab5   : > { %v3685_v63 = vpop.f32.mrb[18].mxu0 }
 0xab6   : > { %v2096_v2 = vpop.f32.mrb[19].mxu0 }
 0xabb   : > { %v3688_v4 = vpop.f32.mrb[20].mxu0 }
 0xabc   : > { %v2109_v35 = vpop.f32.mrb[21].mxu0 }
 0xabd   : > { %v3689_v6 = vpop.f32.mrb[22].mxu0 }
 0xabe   : > { %v2112_v7 = vpop.f32.mrb[23].mxu0 }
 0xac3   : > { %v3692_v11 = vpop.f32.mrb[24].mxu0 }
 0xac4   : > { %v2125_v14 = vpop.f32.mrb[25].mxu0 }
 0xac5   : > { %v3693_v10 = vpop.f32.mrb[26].mxu0 }
 0xac6   : > { %v3991_v15 = vpack.i.bf16 %v3693_v10, %v3692_v11  ;;  %v2128_v0 = vpop.f32.mrb[27].mxu0 }
 0xac7   : > { %v3986_v28 = vpack.i.bf16 %v2128_v0, %v2125_v14 }
 0xac8   : > { %3992 = vrot.lane.b32.xlu1 %v3991_v15, %s4848_s15  ;;  %v4214_v15 = vld [vmem:[#allocation2 + $0x20] sm:$0xff] }
 0xac9   : > { %3987 = vrot.lane.b32.xlu0 %v3986_v28, %s4848_s15 }
 0xaef   : > { %v3696_v33 = vpop.f32.mrb[28].mxu0 }
 0xaf0   : > { %v2141_v34 = vpop.f32.mrb[29].mxu0 }
 0xaf1   : > { %v3697_v30 = vpop.f32.mrb[30].mxu0 }
 0xaf2   : > { %v4001_v1 = vpack.i.bf16 %v3697_v30, %v3696_v33  ;;  %v2144_v58 = vpop.f32.mrb[31].mxu0 }
 0xaf3   : > { %v3996_v18 = vpack.i.bf16 %v2144_v58, %v2141_v34  ;;  %v4215_v34 = vld [vmem:[#allocation2 + $0x30] sm:$0xff] }
 0xaf5   : > { %3997 = vrot.lane.b32.xlu1 %v3996_v18, %s4848_s15 }
 0xaf9   : > { %4002 = vrot.lane.b32.xlu1 %v4001_v1, %s4848_s15  ;;  %v4216_v1 = vld [vmem:[#allocation2 + $0x28] sm:$0xff] }
 0xb3a   : > { %v3993_v22 = vpop.permute.xlu1 %3992 }
 0xb3b   : > { %v3995_v27 = vunpack.i.h.bf16 %v3993_v22  ;;  %v3994_v37 = vunpack.i.l.bf16 %v3993_v22  ;;  %v3988_v19 = vpop.permute.xlu0 %3987  ;;  %v4217_v22 = vld [vmem:[#allocation2 + $0x38] sm:$0xff] }
 0xb3c   : > { %v3990_v12 = vunpack.i.h.bf16 %v3988_v19  ;;  %v3989_v8 = vunpack.i.l.bf16 %v3988_v19 }
 0xb3d   : > { %v2191_v26 = vsel %vm1753_vm2, %v3685_v63, %v3995_v27  ;;  %v2190_v40 = vsel %vm1753_vm2, %v3684_v36, %v3994_v37  ;;  %v4213_v63 = vld [vmem:[#allocation2 + $0x18] sm:$0xff] }
 0xb3e   : > { %v2205_v52 = vpack.c.bf16 %v2191_v26, %v2190_v40  ;;  %v2189_v32 = vsel %vm1753_vm2, %v2096_v2, %v3990_v12  ;;  %v2188_v17 = vsel %vm1753_vm2, %v2093_v38, %v3989_v8 }
 0xb3f   : > { %v2204_v5 = vpack.c.bf16 %v2189_v32, %v2188_v17 }
 0xb41   : > { %3706 = vmatprep.mubr.msk.bf16.mxu0 %vm1338_vm1, %v2204_v5 }
 0xb42   : > { %3707 = vmatmul.mubr.msk.bf16.vlgmr.msra.gmra.mrb[32].mxu0 %vm1338_vm1, %v2205_v52 }
 0xb67   : > { %v3998_v25 = vpop.permute.xlu1 %3997 }
 0xb68   : > { %v4000_v54 = vunpack.i.h.bf16 %v3998_v25  ;;  %v3999_v23 = vunpack.i.l.bf16 %v3998_v25 }
 0xb6a   : > { %v2193_v59 = vsel %vm1753_vm2, %v2112_v7, %v4000_v54  ;;  %v2192_v60 = vsel %vm1753_vm2, %v2109_v35, %v3999_v23 }
 0xb6b   : > { %v2206_v41 = vpack.c.bf16 %v2193_v59, %v2192_v60  ;;  %v4003_v3 = vpop.permute.xlu1 %4002 }
 0xb6c   : > { %v4005_v24 = vunpack.i.h.bf16 %v4003_v3  ;;  %v4004_v31 = vunpack.i.l.bf16 %v4003_v3 }
 0xb6d   : > { %3710 = vmatprep.mubr.msk.bf16.mxu0 %vm1338_vm1, %v2206_v41 }
 0xb6e   : > { %v2195_v45 = vsel %vm1753_vm2, %v3689_v6, %v4005_v24  ;;  %v2194_v20 = vsel %vm1753_vm2, %v3688_v4, %v4004_v31 }
 0xb6f   : > { %v2207_v9 = vpack.c.bf16 %v2195_v45, %v2194_v20 }
 0xb71   : > { %3711 = vmatmul.mubr.msk.bf16.gmra.mrb[36].mxu0 %vm1338_vm1, %v2207_v9 }
 0xb72   : > { %2560 = vmatprep.mubr.bf16.mxu0 %v4845_v46 }
 0xc15   : > { %v3708_v29 = vpop.f32.mrb[32].mxu0 }
 0xc16   : > { %v2285_v43 = vpop.f32.mrb[33].mxu0  ;;  %v2294_v42 = vadd.f32 %v3708_v29, %v3475_v21  ;;  %v4024_v29 = vld [vmem:[%s5572_s23 + $0x4] ss:$8 sps:$4 sm:$0xff]  }
 0xc17   : > { %v2286_v44 = vadd.f32 %v3475_v21, %v2285_v43  ;;  %v3709_v16 = vpop.f32.mrb[34].mxu0  ;;  %v4022_v43 = vld [vmem:[%s5572_s23] ss:$8 sps:$4 sm:$0xff]   ;;  %2528 = vmatprep.subr.bf16.mxu0 %v4024_v29 }
 0xc18   : > { %v2288_v48 = vpop.f32.mrb[35].mxu0  ;;  %v6072_v47 = vadd.f32 %v4211_v55, %v2294_v42  ;;  %v2297_v53 = vadd.f32 %v3709_v16, %v3475_v21  ;;  %2529 = vmatpush1.bf16.msra.mxu0 %v4022_v43  ;;  %v4027_v42 = vld [vmem:[%s5572_s23 + $0x14] ss:$8 sps:$4 sm:$0xff]   ;;  %v4030_v16 = vld [vmem:[%s5572_s23 + $0x24] ss:$8 sps:$4 sm:$0xff]  }
 0xc19   : > { %v6070_v51 = vadd.f32 %v4210_v49, %v2286_v44  ;;  %v2289_v50 = vadd.f32 %v3475_v21, %v2288_v48  ;;  %v4025_v44 = vld [vmem:[%s5572_s23 + $0x10] ss:$8 sps:$4 sm:$0xff]   ;;  %2530 = vmatprep.subr.bf16.mxu0 %v4027_v42  ;;  %v4028_v48 = vld [vmem:[%s5572_s23 + $0x20] ss:$8 sps:$4 sm:$0xff]   ;;  %v4033_v49 = vld [vmem:[%s5572_s23 + $0x34] ss:$8 sps:$4 sm:$0xff]  }
 0xc1a   : > { %v6080_v2 = vadd.f32 %v4213_v63, %v2297_v53  ;;  %v2330_v4 = vsel %vm1338_vm1, %v6072_v47, 0.0 }
 0xc1b   : > { %v6074_v61 = vadd.f32 %v4212_v56, %v2289_v50  ;;  %v2324_v36 = vsel %vm1338_vm1, %v6070_v51, 0.0  ;;  %v4031_v50 = vld [vmem:[%s5572_s23 + $0x30] ss:$8 sps:$4 sm:$0xff]  }
 0xc1c   : > { %2325 = vadd.xlane.f32.xlu0 %v2324_v36  ;;  %v2333_v35 = vsel %vm1338_vm1, %v6080_v2, 0.0  ;;  %2531 = vmatpush1.bf16.msra.mxu0 %v4025_v44 }
 0xc1d   : > { %v2327_v38 = vsel %vm1338_vm1, %v6074_v61, 0.0  ;;  %2532 = vmatprep.subr.bf16.mxu0 %v4030_v16 }
 0xc1e   : > { %2328 = vadd.xlane.f32.xlu1 %v2327_v38 }
 0xc20   : > { %2331 = vadd.xlane.f32.xlu0 %v2330_v4  ;;  %2533 = vmatpush1.bf16.msra.mxu0 %v4028_v48 }
 0xc21   : > { %2534 = vmatprep.subr.bf16.mxu0 %v4033_v49 }
 0xc24   : > { %2334 = vadd.xlane.f32.xlu0 %v2333_v35  ;;  %2535 = vmatpush1.bf16.msra.mxu0 %v4031_v50 }
 0xc44   : > { %v3712_v6 = vpop.f32.mrb[36].mxu0 }
 0xc45   : > { %v2301_v39 = vpop.f32.mrb[37].mxu0  ;;  %v2310_v7 = vadd.f32 %v3712_v6, %v3475_v21 }
 0xc46   : > { %v2302_v11 = vadd.f32 %v3475_v21, %v2301_v39  ;;  %v3713_v14 = vpop.f32.mrb[38].mxu0 }
 0xc47   : > { %v2304_v10 = vpop.f32.mrb[39].mxu0  ;;  %v2313_v28 = vadd.f32 %v3713_v14, %v3475_v21  ;;  %v6088_v30 = vadd.f32 %v4215_v34, %v2310_v7 }
 0xc48   : > { %v6086_v0 = vadd.f32 %v4214_v15, %v2302_v11  ;;  %v2305_v33 = vadd.f32 %v3475_v21, %v2304_v10 }
 0xc49   : > { %v6094_v27 = vadd.f32 %v4217_v22, %v2313_v28  ;;  %v2342_v19 = vsel %vm1338_vm1, %v6088_v30, 0.0 }
 0xc4a   : > { %v6090_v58 = vadd.f32 %v4216_v1, %v2305_v33  ;;  %v2336_v18 = vsel %vm1338_vm1, %v6086_v0, 0.0 }
 0xc4b   : > { %2337 = vadd.xlane.f32.xlu0 %v2336_v18  ;;  %v2345_v12 = vsel %vm1338_vm1, %v6094_v27, 0.0 }
 0xc4c   : > { %v2339_v37 = vsel %vm1338_vm1, %v6090_v58, 0.0 }
 0xc4d   : > { %2340 = vadd.xlane.f32.xlu1 %v2339_v37 }
 0xc4f   : > { %2343 = vadd.xlane.f32.xlu0 %v2342_v19 }
 0xc51   : > { %2346 = vadd.xlane.f32.xlu1 %v2345_v12 }
 0xca9   : > { %v2326_v8 = vpop.xlane.xlu0 %2325 }
 0xcaa   : > { %v2348_v26 = vmul.f32 0.015625, %v2326_v8 }
 0xcab   : > { %v2329_v40 = vpop.xlane.xlu1 %2328 }
 0xcac   : > { %v6103_v52 = vsub.f32 %v6070_v51, %v2348_v26  ;;  %v2349_v32 = vmul.f32 0.015625, %v2329_v40 }
 0xcad   : > { %v2332_v17 = vpop.xlane.xlu0 %2331 }
 0xcae   : > { %v6106_v5 = vsub.f32 %v6074_v61, %v2349_v32  ;;  %v2350_v25 = vmul.f32 0.015625, %v2332_v17  ;;  %v2364_v54 = vmul.f32 %v6103_v52, %v6103_v52 }
 0xcb0   : > { %v6111_v23 = vsub.f32 %v6072_v47, %v2350_v25  ;;  %v2372_v59 = vsel %vm1338_vm1, %v2364_v54, 0.0  ;;  %v2365_v60 = vmul.f32 %v6106_v5, %v6106_v5 }
 0xcb1   : > { %2373 = vadd.xlane.f32.xlu0 %v2372_v59  ;;  %v2335_v41 = vpop.xlane.xlu0 %2334  ;;  %v2430_v59 = vsub.s32 2, %v5749_v57 }
 0xcb2   : > { %v2351_v3 = vmul.f32 0.015625, %v2335_v41  ;;  %v2375_v24 = vsel %vm1338_vm1, %v2365_v60, 0.0  ;;  %v2366_v31 = vmul.f32 %v6111_v23, %v6111_v23  ;;  %v4218_v41 = vld [vmem:[%s5546_s5] sm:$0xf] }
 0xcb3   : > { %2376 = vadd.xlane.f32.xlu1 %v2375_v24  ;;  %v2442_v24 = vsub.s32 3, %v5749_v57 }
 0xcb4   : > { %v6120_v45 = vsub.f32 %v6080_v2, %v2351_v3  ;;  %v2378_v20 = vsel %vm1338_vm1, %v2366_v31, 0.0  ;;  %v2431_v3 = vrot.slane %v4218_v41, %v2430_v59 }
 0xcb5   : > { %2379 = vadd.xlane.f32.xlu0 %v2378_v20 }
 0xcb6   : > { %v2367_v9 = vmul.f32 %v6120_v45, %v6120_v45 }
 0xcb8   : > { %v2381_v21 = vsel %vm1338_vm1, %v2367_v9, 0.0 }
 0xcb9   : > { %2382 = vadd.xlane.f32.xlu1 %v2381_v21  ;;  %v2443_v21 = vrot.slane %v4218_v41, %v2442_v24  ;;  %v4035_v41 = vld [vmem:[%s5582_s7] sm:$0xff]   ;;  %v4036_v24 = vld [vmem:[%s5582_s7 + $0x48] sm:$0xff]  }
 0xcd8   : > { %v2338_v55 = vpop.xlane.xlu0 %2337 }
 0xcd9   : > { %v2352_v53 = vmul.f32 0.015625, %v2338_v55 }
 0xcda   : > { %v2341_v56 = vpop.xlane.xlu1 %2340 }
 0xcdb   : > { %v6135_v36 = vsub.f32 %v6086_v0, %v2352_v53  ;;  %v2353_v38 = vmul.f32 0.015625, %v2341_v56 }
 0xcdc   : > { %v2344_v63 = vpop.xlane.xlu0 %2343 }
 0xcdd   : > { %v6138_v4 = vsub.f32 %v6090_v58, %v2353_v38  ;;  %v2354_v35 = vmul.f32 0.015625, %v2344_v63  ;;  %v2368_v6 = vmul.f32 %v6135_v36, %v6135_v36 }
 0xcde   : > { %v2347_v39 = vpop.xlane.xlu1 %2346 }
 0xcdf   : > { %v6143_v7 = vsub.f32 %v6088_v30, %v2354_v35  ;;  %v2355_v11 = vmul.f32 0.015625, %v2347_v39  ;;  %v2384_v14 = vsel %vm1338_vm1, %v2368_v6, 0.0  ;;  %v2369_v10 = vmul.f32 %v6138_v4, %v6138_v4 }
 0xce0   : > { %2385 = vadd.xlane.f32.xlu0 %v2384_v14 }
 0xce1   : > { %v6149_v15 = vsub.f32 %v6094_v27, %v2355_v11  ;;  %v2387_v28 = vsel %vm1338_vm1, %v2369_v10, 0.0  ;;  %v2370_v33 = vmul.f32 %v6143_v7, %v6143_v7 }
 0xce2   : > { %2388 = vadd.xlane.f32.xlu1 %v2387_v28 }
 0xce3   : > { %v2390_v34 = vsel %vm1338_vm1, %v2370_v33, 0.0  ;;  %v2371_v1 = vmul.f32 %v6149_v15, %v6149_v15 }
 0xce4   : > { %2391 = vadd.xlane.f32.xlu0 %v2390_v34 }
 0xce5   : > { %v2393_v18 = vsel %vm1338_vm1, %v2371_v1, 0.0 }
 0xce6   : > { %2394 = vadd.xlane.f32.xlu1 %v2393_v18 }
 0xd3e   : > { %v2374_v22 = vpop.xlane.xlu0 %2373 }
 0xd3f   : > { %v2396_v37 = vmul.f32 0.015625, %v2374_v22 }
 0xd40   : > { %v2377_v19 = vpop.xlane.xlu1 %2376 }
 0xd41   : > { %v2404_v12 = vadd.f32 1e-05, %v2396_v37  ;;  %v2397_v8 = vmul.f32 0.015625, %v2377_v19 }
 0xd42   : > { %v2380_v26 = vpop.xlane.xlu0 %2379 }
 0xd43   : > { %4130 = vrsqrt.f32 %v2404_v12  ;;  %v2405_v40 = vadd.f32 1e-05, %v2397_v8  ;;  %v2398_v32 = vmul.f32 0.015625, %v2380_v26 }
 0xd45   : > { %4132 = vrsqrt.f32 %v2405_v40  ;;  %v2406_v17 = vadd.f32 1e-05, %v2398_v32 }
 0xd46   : > { %v2383_v25 = vpop.xlane.xlu1 %2382 }
 0xd47   : > { %4134 = vrsqrt.f32 %v2406_v17  ;;  %v2399_v54 = vmul.f32 0.015625, %v2383_v25 }
 0xd49   : > { %v2407_v60 = vadd.f32 1e-05, %v2399_v54 }
 0xd4b   : > { %4136 = vrsqrt.f32 %v2407_v60 }
 0xd4d   : > { %v4131_v31 = vpop.eup %4130 }
 0xd4e   : > { %v2420_v20 = vmul.f32 %v4131_v31, %v6103_v52  ;;  %v4037_v31 = vld [vmem:[%s5582_s7 + $0x8] sm:$0xff]  }
 0xd4f   : > { %v4133_v9 = vpop.eup %4132 }
 0xd50   : > { %v2432_v29 = vmul.f32 %v2431_v3, %v2420_v20  ;;  %v2421_v43 = vmul.f32 %v4133_v9, %v6106_v5  ;;  %v4040_v20 = vld [vmem:[%s5582_s7 + $0x58] sm:$0xff]  }
 0xd51   : > { %v4135_v42 = vpop.eup %4134  ;;  %v4041_v9 = vld [vmem:[%s5582_s7 + $0x18] sm:$0xff]  }
 0xd52   : > { %v2433_v44 = vmul.f32 %v2431_v3, %v2421_v43  ;;  %v2444_v16 = vadd.f32 %v2443_v21, %v2432_v29  ;;  %v2422_v49 = vmul.f32 %v4135_v42, %v6111_v23  ;;  %v4043_v29 = vld [vmem:[%s5582_s7 + $0x20] sm:$0xff]   ;;  %v4044_v43 = vld [vmem:[%s5582_s7 + $0x68] sm:$0xff]  }
 0xd53   : > { %v4045_v42 = vld [vmem:[%s5582_s7 + $0x28] sm:$0xff]  }
 0xd54   : > { %v2445_v48 = vadd.f32 %v2443_v21, %v2433_v44  ;;  %v2434_v57 = vmul.f32 %v2431_v3, %v2422_v49  ;;  %v4046_v44 = vld [vmem:[%s5582_s7 + $0x70] sm:$0xff]   ;;  %v4049_v49 = vld [vmem:[%s5582_s7 + $0x38] sm:$0xff]  }
 0xd55   : > { %v4137_v50 = vpop.eup %4136 }
 0xd56   : > { %v2423_v55 = vmul.f32 %v4137_v50, %v6120_v45  ;;  %v2460_v53 = vpack.c.bf16 %v2445_v48, %v2444_v16  ;;  %v2446_v38 = vadd.f32 %v2443_v21, %v2434_v57  ;;  %v4047_v16 = vld [vmem:[%s5582_s7 + $0x30] sm:$0xff]   ;;  %v4048_v48 = vld [vmem:[%s5582_s7 + $0x78] sm:$0xff]  }
 0xd57   : > { %v2464_v50 = vld [vmem:[%s5575_s24] sm:$0x3] }
 0xd58   : > { %3492 = vmatmul.mubr.msk.bf16.vlgmr.msra.gmra.mrb[40].mxu0 %vm1338_vm1, %v2460_v53  ;;  %v2435_v56 = vmul.f32 %v2431_v3, %v2423_v55  ;;  %v6194_v55 = vrot.slane %v2464_v50, %v5752_v62  ;;  %v6197_v53 = vrot.slane %v2464_v50, %v5758_v13 }
 0xd59   : > { %2570 = vmatprep.mubr.bf16.mxu0 %v4845_v46 }
 0xd5a   : > { %v2447_v52 = vadd.f32 %v2443_v21, %v2435_v56 }
 0xd5c   : > { %v2461_v63 = vpack.c.bf16 %v2447_v52, %v2446_v38 }
 0xd60   : > { %3493 = vmatmul.mubr.msk.bf16.gmra.mrb[44].mxu0 %vm1338_vm1, %v2461_v63 }
 0xd61   : > { %2580 = vmatprep.mubr.bf16.mxu0 %v4845_v46 }
 0xd6d   : > { %v2386_v5 = vpop.xlane.xlu0 %2385 }
 0xd6e   : > { %v2400_v35 = vmul.f32 0.015625, %v2386_v5 }
 0xd6f   : > { %v2389_v23 = vpop.xlane.xlu1 %2388 }
 0xd70   : > { %v2408_v6 = vadd.f32 1e-05, %v2400_v35  ;;  %v2401_v39 = vmul.f32 0.015625, %v2389_v23 }
 0xd71   : > { %v2392_v45 = vpop.xlane.xlu0 %2391 }
 0xd72   : > { %4138 = vrsqrt.f32 %v2408_v6  ;;  %v2409_v11 = vadd.f32 1e-05, %v2401_v39  ;;  %v2402_v14 = vmul.f32 0.015625, %v2392_v45 }
 0xd73   : > { %v2395_v10 = vpop.xlane.xlu1 %2394 }
 0xd74   : > { %4140 = vrsqrt.f32 %v2409_v11  ;;  %v2410_v28 = vadd.f32 1e-05, %v2402_v14  ;;  %v2403_v33 = vmul.f32 0.015625, %v2395_v10 }
 0xd76   : > { %4142 = vrsqrt.f32 %v2410_v28  ;;  %v2411_v34 = vadd.f32 1e-05, %v2403_v33 }
 0xd78   : > { %4144 = vrsqrt.f32 %v2411_v34 }
 0xd7c   : > { %v4139_v1 = vpop.eup %4138 }
 0xd7d   : > { %v2424_v18 = vmul.f32 %v4139_v1, %v6135_v36 }
 0xd7e   : > { %v4141_v22 = vpop.eup %4140 }
 0xd7f   : > { %v2425_v37 = vmul.f32 %v4141_v22, %v6138_v4  ;;  %v2436_v19 = vmul.f32 %v2431_v3, %v2424_v18 }
 0xd80   : > { %v4143_v12 = vpop.eup %4142 }
 0xd81   : > { %v2437_v8 = vmul.f32 %v2431_v3, %v2425_v37  ;;  %v2426_v40 = vmul.f32 %v4143_v12, %v6143_v7  ;;  %v2448_v17 = vadd.f32 %v2443_v21, %v2436_v19 }
 0xd82   : > { %v4145_v26 = vpop.eup %4144 }
 0xd83   : > { %v2427_v32 = vmul.f32 %v4145_v26, %v6149_v15  ;;  %v2449_v25 = vadd.f32 %v2443_v21, %v2437_v8  ;;  %v2438_v36 = vmul.f32 %v2431_v3, %v2426_v40  ;;  %v4034_v15 = vld [vmem:[%s5582_s7 + $0x40] sm:$0xff]  }
 0xd84   : > { %3589 = vmatprep.subr.bf16.mxu1 %v4034_v15 }
 0xd85   : > { %v2462_v54 = vpack.c.bf16 %v2449_v25, %v2448_v17  ;;  %v2439_v59 = vmul.f32 %v2431_v3, %v2427_v32  ;;  %v2450_v60 = vadd.f32 %v2443_v21, %v2438_v36  ;;  %3590 = vmatpush3.bf16.msra.mxu1 %v4035_v41  ;;  %v4039_v3 = vld [vmem:[%s5582_s7 + $0x10] sm:$0xff]  }
 0xd86   : > { %3591 = vmatprep.subr.bf16.mxu1 %v4036_v24 }
 0xd87   : > { %3494 = vmatmul.mubr.msk.bf16.gmra.mrb[48].mxu0 %vm1338_vm1, %v2462_v54  ;;  %v2451_v4 = vadd.f32 %v2443_v21, %v2439_v59  ;;  %v4042_v21 = vld [vmem:[%s5582_s7 + $0x60] sm:$0xff]  }
 0xd88   : > { %2590 = vmatprep.mubr.bf16.mxu0 %v4845_v46  ;;  %v4038_v46 = vld [vmem:[%s5582_s7 + $0x50] sm:$0xff]  }
 0xd89   : > { %v2463_v7 = vpack.c.bf16 %v2451_v4, %v2450_v60  ;;  %3592 = vmatpush3.bf16.msra.mxu1 %v4037_v31 }
 0xd8a   : > { %3593 = vmatprep.subr.bf16.mxu1 %v4038_v46 }
 0xd8d   : > { %3594 = vmatpush3.bf16.msra.mxu1 %v4039_v3 }
 0xd8e   : > { %3595 = vmatprep.subr.bf16.mxu1 %v4040_v20 }
 0xd8f   : > { %3495 = vmatmul.mubr.msk.bf16.gmra.mrb[52].mxu0 %vm1338_vm1, %v2463_v7 }
 0xd91   : > { %3596 = vmatpush3.bf16.msra.mxu1 %v4041_v9 }
 0xd92   : > { %3597 = vmatprep.subr.bf16.mxu1 %v4042_v21 }
 0xd95   : > { %3598 = vmatpush3.bf16.msra.mxu1 %v4043_v29 }
 0xd96   : > { %3599 = vmatprep.subr.bf16.mxu1 %v4044_v43 }
 0xd99   : > { %3600 = vmatpush3.bf16.msra.mxu1 %v4045_v42 }
 0xd9a   : > { %3601 = vmatprep.subr.bf16.mxu1 %v4046_v44 }
 0xd9d   : > { %3602 = vmatpush3.bf16.msra.mxu1 %v4047_v16 }
 0xd9e   : > { %3603 = vmatprep.subr.bf16.mxu1 %v4048_v48 }
 0xda1   : > { %3604 = vmatpush3.bf16.msra.mxu1 %v4049_v49 }
 0xe2b   : > { %v2562_v57 = vpop.f32.mrb[40].mxu0 }
 0xe2c   : > { %v6200_v56 = vadd.f32 %v2562_v57, %v6194_v55  ;;  %v2564_v52 = vpop.f32.mrb[41].mxu0 }
 0xe2d   : > { %v6203_v38 = vadd.f32 %v2564_v52, %v6197_v53  ;;  %v2566_v63 = vpop.f32.mrb[42].mxu0 }
 0xe2e   : > { %v3496_v5 = vmul.f32 -1.702, %v6200_v56  ;;  %v6207_v35 = vadd.f32 %v2566_v63, %v6194_v55  ;;  %v2568_v23 = vpop.f32.mrb[43].mxu0 }
 0xe2f   : > { %v3497_v62 = vmul.f32 -1.702, %v6203_v38  ;;  %v2569_v13 = vadd.f32 %v2568_v23, %v6197_v53 }
 0xe30   : > { %v2633_v6 = vmul.f32 1.442695, %v3496_v5  ;;  %v3498_v39 = vmul.f32 -1.702, %v6207_v35 }
 0xe31   : > { %v2635_v45 = vmul.f32 1.442695, %v3497_v62  ;;  %v3499_v11 = vmul.f32 -1.702, %v2569_v13 }
 0xe32   : > { %4146 = vpow2.f32 %v2633_v6  ;;  %v2637_v14 = vmul.f32 1.442695, %v3498_v39 }
 0xe33   : > { %4148 = vpow2.f32 %v2635_v45  ;;  %v2639_v10 = vmul.f32 1.442695, %v3499_v11  ;;  %v2572_v28 = vpop.f32.mrb[44].mxu0 }
 0xe34   : > { %4150 = vpow2.f32 %v2637_v14  ;;  %v2573_v33 = vadd.f32 %v2572_v28, %v6194_v55  ;;  %v2574_v34 = vpop.f32.mrb[45].mxu0 }
 0xe35   : > { %4152 = vpow2.f32 %v2639_v10  ;;  %v2575_v1 = vadd.f32 %v2574_v34, %v6197_v53  ;;  %v2576_v18 = vpop.f32.mrb[46].mxu0 }
 0xe36   : > { %v3500_v22 = vmul.f32 -1.702, %v2573_v33  ;;  %v2577_v37 = vadd.f32 %v2576_v18, %v6194_v55  ;;  %v2578_v19 = vpop.f32.mrb[47].mxu0 }
 0xe37   : > { %v3501_v12 = vmul.f32 -1.702, %v2575_v1  ;;  %v2579_v8 = vadd.f32 %v2578_v19, %v6197_v53 }
 0xe38   : > { %v2641_v26 = vmul.f32 1.442695, %v3500_v22  ;;  %v3502_v40 = vmul.f32 -1.702, %v2577_v37 }
 0xe39   : > { %v2643_v32 = vmul.f32 1.442695, %v3501_v12  ;;  %v3503_v17 = vmul.f32 -1.702, %v2579_v8 }
 0xe3a   : > { %4154 = vpow2.f32 %v2641_v26  ;;  %v2645_v25 = vmul.f32 1.442695, %v3502_v40 }
 0xe3b   : > { %4156 = vpow2.f32 %v2643_v32  ;;  %v2647_v54 = vmul.f32 1.442695, %v3503_v17 }
 0xe3c   : > { %v4147_v59 = vpop.eup %4146  ;;  %4158 = vpow2.f32 %v2645_v25 }
 0xe3d   : > { %v4149_v36 = vpop.eup %4148  ;;  %v2665_v4 = vadd.f32 1.0, %v4147_v59  ;;  %4160 = vpow2.f32 %v2647_v54 }
 0xe3e   : > { %v4151_v60 = vpop.eup %4150  ;;  %v2666_v7 = vadd.f32 1.0, %v4149_v36 }
 0xe3f   : > { %v4153_v15 = vpop.eup %4152  ;;  %4162 = vrcp.f32 %v2665_v4  ;;  %v2667_v41 = vadd.f32 1.0, %v4151_v60 }
 0xe40   : > { %4164 = vrcp.f32 %v2666_v7  ;;  %v2668_v24 = vadd.f32 1.0, %v4153_v15 }
 0xe41   : > { %4166 = vrcp.f32 %v2667_v41 }
 0xe42   : > { %4168 = vrcp.f32 %v2668_v24 }
 0xe44   : > { %v4155_v31 = vpop.eup %4154 }
 0xe45   : > { %v4157_v46 = vpop.eup %4156  ;;  %v2669_v3 = vadd.f32 1.0, %v4155_v31 }
 0xe46   : > { %v4159_v20 = vpop.eup %4158  ;;  %v2670_v9 = vadd.f32 1.0, %v4157_v46 }
 0xe47   : > { %v4161_v21 = vpop.eup %4160  ;;  %4170 = vrcp.f32 %v2669_v3  ;;  %v2671_v29 = vadd.f32 1.0, %v4159_v20 }
 0xe48   : > { %4172 = vrcp.f32 %v2670_v9  ;;  %v2672_v43 = vadd.f32 1.0, %v4161_v21 }
 0xe49   : > { %v4163_v42 = vpop.eup %4162  ;;  %4174 = vrcp.f32 %v2671_v29 }
 0xe4a   : > { %v4165_v44 = vpop.eup %4164  ;;  %4176 = vrcp.f32 %v2672_v43  ;;  %v2713_v49 = vmul.f32 %v4163_v42, %v6200_v56 }
 0xe4b   : > { %v4167_v16 = vpop.eup %4166  ;;  %v2714_v57 = vmul.f32 %v4165_v44, %v6203_v38 }
 0xe4c   : > { %v4169_v48 = vpop.eup %4168  ;;  %v2715_v50 = vmul.f32 %v4167_v16, %v6207_v35 }
 0xe4d   : > { %v2716_v52 = vmul.f32 %v4169_v48, %v2569_v13 }
 0xe4e   : > { %v2761_v63 = vpack.c.bf16 %v2715_v50, %v2713_v49 }
 0xe4f   : > { %v2762_v5 = vpack.c.bf16 %v2716_v52, %v2714_v57 }
 0xe51   : > { %v4171_v23 = vpop.eup %4170  ;;  %2904 = vmatprep.mubr.bf16.mxu1 %v2762_v5 }
 0xe52   : > { %v4173_v62 = vpop.eup %4172  ;;  %2905 = vmatmul.mubr.bf16.vlgmr.msra.gmra.mrb[16].mxu1 %v2761_v63  ;;  %v2717_v45 = vmul.f32 %v4171_v23, %v2573_v33 }
 0xe53   : > { %v4175_v6 = vpop.eup %4174  ;;  %v2718_v14 = vmul.f32 %v4173_v62, %v2575_v1 }
 0xe54   : > { %v4177_v39 = vpop.eup %4176  ;;  %v2719_v11 = vmul.f32 %v4175_v6, %v2577_v37 }
 0xe55   : > { %v2720_v10 = vmul.f32 %v4177_v39, %v2579_v8 }
 0xe56   : > { %v2763_v28 = vpack.c.bf16 %v2719_v11, %v2717_v45 }
 0xe57   : > { %v2764_v34 = vpack.c.bf16 %v2720_v10, %v2718_v14 }
 0xe59   : > { %2912 = vmatprep.mubr.bf16.mxu1 %v2764_v34 }
 0xe5a   : > { %v2582_v56 = vpop.f32.mrb[48].mxu0  ;;  %2913 = vmatmul.mubr.bf16.gmra.mrb[20].mxu1 %v2763_v28 }
 0xe5b   : > { %v6220_v38 = vadd.f32 %v2582_v56, %v6194_v55  ;;  %v2584_v35 = vpop.f32.mrb[49].mxu0 }
 0xe5c   : > { %v6223_v13 = vadd.f32 %v2584_v35, %v6197_v53  ;;  %v2586_v18 = vpop.f32.mrb[50].mxu0 }
 0xe5d   : > { %v3504_v22 = vmul.f32 -1.702, %v6220_v38  ;;  %v6227_v33 = vadd.f32 %v2586_v18, %v6194_v55  ;;  %v2588_v1 = vpop.f32.mrb[51].mxu0 }
 0xe5e   : > { %v3505_v37 = vmul.f32 -1.702, %v6223_v13  ;;  %v2589_v19 = vadd.f32 %v2588_v1, %v6197_v53 }
 0xe5f   : > { %v2649_v12 = vmul.f32 1.442695, %v3504_v22  ;;  %v3506_v8 = vmul.f32 -1.702, %v6227_v33 }
 0xe60   : > { %v2651_v26 = vmul.f32 1.442695, %v3505_v37  ;;  %v3507_v40 = vmul.f32 -1.702, %v2589_v19 }
 0xe61   : > { %4178 = vpow2.f32 %v2649_v12  ;;  %v2653_v32 = vmul.f32 1.442695, %v3506_v8 }
 0xe62   : > { %4180 = vpow2.f32 %v2651_v26  ;;  %v2655_v17 = vmul.f32 1.442695, %v3507_v40  ;;  %v2592_v25 = vpop.f32.mrb[52].mxu0 }
 0xe63   : > { %4182 = vpow2.f32 %v2653_v32  ;;  %v2593_v54 = vadd.f32 %v2592_v25, %v6194_v55  ;;  %v2594_v59 = vpop.f32.mrb[53].mxu0 }
 0xe64   : > { %4184 = vpow2.f32 %v2655_v17  ;;  %v2595_v36 = vadd.f32 %v2594_v59, %v6197_v53  ;;  %v2596_v4 = vpop.f32.mrb[54].mxu0 }
 0xe65   : > { %v3508_v60 = vmul.f32 -1.702, %v2593_v54  ;;  %v2597_v7 = vadd.f32 %v2596_v4, %v6194_v55  ;;  %v2598_v15 = vpop.f32.mrb[55].mxu0 }
 0xe66   : > { %v3509_v41 = vmul.f32 -1.702, %v2595_v36  ;;  %v2599_v24 = vadd.f32 %v2598_v15, %v6197_v53 }
 0xe67   : > { %v2657_v31 = vmul.f32 1.442695, %v3508_v60  ;;  %v3510_v46 = vmul.f32 -1.702, %v2597_v7 }
 0xe68   : > { %v2659_v3 = vmul.f32 1.442695, %v3509_v41  ;;  %v3511_v20 = vmul.f32 -1.702, %v2599_v24 }
 0xe69   : > { %4186 = vpow2.f32 %v2657_v31  ;;  %v2661_v9 = vmul.f32 1.442695, %v3510_v46 }
 0xe6a   : > { %4188 = vpow2.f32 %v2659_v3  ;;  %v2663_v21 = vmul.f32 1.442695, %v3511_v20 }
 0xe6b   : > { %v4179_v29 = vpop.eup %4178  ;;  %4190 = vpow2.f32 %v2661_v9 }
 0xe6c   : > { %v4181_v43 = vpop.eup %4180  ;;  %v2673_v42 = vadd.f32 1.0, %v4179_v29  ;;  %4192 = vpow2.f32 %v2663_v21 }
 0xe6d   : > { %v4183_v44 = vpop.eup %4182  ;;  %v2674_v16 = vadd.f32 1.0, %v4181_v43 }
 0xe6e   : > { %v4185_v55 = vpop.eup %4184  ;;  %4194 = vrcp.f32 %v2673_v42  ;;  %v2675_v48 = vadd.f32 1.0, %v4183_v44 }
 0xe6f   : > { %4196 = vrcp.f32 %v2674_v16  ;;  %v2676_v53 = vadd.f32 1.0, %v4185_v55 }
 0xe70   : > { %4198 = vrcp.f32 %v2675_v48 }
 0xe71   : > { %4200 = vrcp.f32 %v2676_v53 }
 0xe73   : > { %v4187_v49 = vpop.eup %4186 }
 0xe74   : > { %v4189_v50 = vpop.eup %4188  ;;  %v2677_v57 = vadd.f32 1.0, %v4187_v49 }
 0xe75   : > { %v4191_v52 = vpop.eup %4190  ;;  %v2678_v63 = vadd.f32 1.0, %v4189_v50 }
 0xe76   : > { %v4193_v5 = vpop.eup %4192  ;;  %4202 = vrcp.f32 %v2677_v57  ;;  %v2679_v23 = vadd.f32 1.0, %v4191_v52 }
 0xe77   : > { %4204 = vrcp.f32 %v2678_v63  ;;  %v2680_v62 = vadd.f32 1.0, %v4193_v5 }
 0xe78   : > { %v4195_v6 = vpop.eup %4194  ;;  %4206 = vrcp.f32 %v2679_v23 }
 0xe79   : > { %v4197_v39 = vpop.eup %4196  ;;  %4208 = vrcp.f32 %v2680_v62  ;;  %v2721_v14 = vmul.f32 %v4195_v6, %v6220_v38 }
 0xe7a   : > { %v4199_v45 = vpop.eup %4198  ;;  %v2722_v28 = vmul.f32 %v4197_v39, %v6223_v13  ;;  %v3512_v13 = vld [vmem:[%s885_s27] ss:$0 sm:$0xff] }
 0xe7b   : > { %v4201_v11 = vpop.eup %4200  ;;  %v2723_v10 = vmul.f32 %v4199_v45, %v6227_v33 }
 0xe7c   : > { %v2724_v34 = vmul.f32 %v4201_v11, %v2589_v19 }
 0xe7d   : > { %v2765_v56 = vpack.c.bf16 %v2723_v10, %v2721_v14 }
 0xe7e   : > { %v2766_v35 = vpack.c.bf16 %v2724_v34, %v2722_v28  ;;  %v4219_v28 = vld [vmem:[#allocation28] sm:$0xff] (!%p3529_p5)   ;;  %v4849_v34 = vmov (!%p3529_p5), 0.0  }
 0xe7f   : > { %3714 = vmatprep.subr.bf16.mxu0 (!%p3529_p5), %v4849_v34  ;;  %3722 = vmatprep.mubr.msk.bf16.mxu0 (!%p3529_p5), %vm4850_vm5, %v4849_v34 }
 0xe80   : > { %v4203_v18 = vpop.eup %4202  ;;  %2920 = vmatprep.mubr.bf16.mxu1 %v2766_v35  ;;  %3715 = vmatpush3.bf16.msra.mxu0 (!%p3529_p5), %v4219_v28  ;;  %v4222_v35 = vld [vmem:[#allocation28 + $0x18] sm:$0xff] (!%p3529_p5)  }
 0xe81   : > { %v4205_v22 = vpop.eup %4204  ;;  %2921 = vmatmul.mubr.bf16.gmra.mrb[24].mxu1 %v2765_v56  ;;  %v2725_v12 = vmul.f32 %v4203_v18, %v2593_v54  ;;  %3716 = vmatprep.subr.bf16.mxu0 (!%p3529_p5), %v4849_v34  ;;  %v4221_v56 = vld [vmem:[#allocation28 + $0x10] sm:$0xff] (!%p3529_p5)  }
 0xe82   : > { %v4207_v1 = vpop.eup %4206  ;;  %v2726_v26 = vmul.f32 %v4205_v22, %v2595_v36 }
 0xe83   : > { %v4209_v37 = vpop.eup %4208  ;;  %v2727_v8 = vmul.f32 %v4207_v1, %v2597_v7 }
 0xe84   : > { %v2728_v40 = vmul.f32 %v4209_v37, %v2599_v24 }
 0xe85   : > { %v2767_v32 = vpack.c.bf16 %v2727_v8, %v2725_v12  ;;  %v3530_v12 = vld [vmem:[#allocation27] ss:$0 sm:$0xff] (!%p3529_p5) }
 0xe86   : > { %v2768_v38 = vpack.c.bf16 %v2728_v40, %v2726_v26  ;;  %v3531_v26 = vld [vmem:[#allocation27 + $0x1] ss:$0 sm:$0xff] (!%p3529_p5) }
 0xe88   : > { %2928 = vmatprep.mubr.bf16.mxu1 %v2768_v38 }
 0xe89   : > { %2929 = vmatmul.mubr.bf16.gmra.mrb[28].mxu1 %v2767_v32 }
 0xf25   : > { %v3605_v33 = vpop.f32.mrb[16].mxu1 }
 0xf26   : > { %v3606_v19 = vpop.f32.mrb[17].mxu1 }
 0xf27   : > { %v3607_v17 = vadd.f32 %v3606_v19, %v3605_v33  ;;  %v3608_v25 = vpop.f32.mrb[18].mxu1  ;;  %v3537_v33 = vld [vmem:[#allocation30] ss:$0 sm:$0xff] (!%p3529_p5) }
 0xf28   : > { %v3609_v59 = vpop.f32.mrb[19].mxu1 }
 0xf29   : > { %v2907_v4 = vadd.f32 %v3607_v17, %v3512_v13  ;;  %v3610_v60 = vadd.f32 %v3609_v59, %v3608_v25 }
 0xf2b   : > { %v2937_v15 = vadd.f32 %v2907_v4, %v6070_v51  ;;  %v2910_v41 = vadd.f32 %v3610_v60, %v3512_v13  ;;  %v3538_v60 = vld [vmem:[#allocation3] ss:$0 sm:$0xff] (!%p3529_p5) }
 0xf2d   : > { %2945 = vst.msk [vmem:[#allocation2] sm:$0xff] %vm1338_vm1, %v2937_v15  ;;  %v2938_v54 = vadd.f32 %v2910_v41, %v6074_v61  ;;  %v3611_v36 = vpop.f32.mrb[20].mxu1 }
 0xf2e   : > { %v3612_v7 = vpop.f32.mrb[21].mxu1 }
 0xf2f   : > { %2946 = vst.msk [vmem:[#allocation2 + $0x8] sm:$0xff] %vm1338_vm1, %v2938_v54  ;;  %v3613_v24 = vadd.f32 %v3612_v7, %v3611_v36  ;;  %v3614_v31 = vpop.f32.mrb[22].mxu1 }
 0xf30   : > { %v3615_v46 = vpop.f32.mrb[23].mxu1 }
 0xf31   : > { %v2915_v3 = vadd.f32 %v3613_v24, %v3512_v13  ;;  %v3616_v20 = vadd.f32 %v3615_v46, %v3614_v31 }
 0xf33   : > { %v2939_v9 = vadd.f32 %v2915_v3, %v6072_v47  ;;  %v2918_v21 = vadd.f32 %v3616_v20, %v3512_v13 }
 0xf35   : > { %2947 = vst.msk [vmem:[#allocation2 + $0x10] sm:$0xff] %vm1338_vm1, %v2939_v9  ;;  %v2940_v51 = vadd.f32 %v2918_v21, %v6080_v2 }
 0xf37   : > { %2948 = vst.msk [vmem:[#allocation2 + $0x18] sm:$0xff] %vm1338_vm1, %v2940_v51 }
 0xf54   : > { %v3617_v29 = vpop.f32.mrb[24].mxu1 }
 0xf55   : > { %v3618_v61 = vpop.f32.mrb[25].mxu1 }
 0xf56   : > { %v3619_v43 = vadd.f32 %v3618_v61, %v3617_v29  ;;  %v3620_v42 = vpop.f32.mrb[26].mxu1 }
 0xf57   : > { %v3621_v44 = vpop.f32.mrb[27].mxu1 }
 0xf58   : > { %v2923_v16 = vadd.f32 %v3619_v43, %v3512_v13  ;;  %v3622_v55 = vadd.f32 %v3621_v44, %v3620_v42 }
 0xf5a   : > { %v2941_v48 = vadd.f32 %v2923_v16, %v6086_v0  ;;  %v2926_v53 = vadd.f32 %v3622_v55, %v3512_v13 }
 0xf5c   : > { %2949 = vst.msk [vmem:[#allocation2 + $0x20] sm:$0xff] %vm1338_vm1, %v2941_v48  ;;  %v2942_v47 = vadd.f32 %v2926_v53, %v6090_v58  ;;  %v3623_v49 = vpop.f32.mrb[28].mxu1  ;;  %v2958_v58 = vrot.slane (!%p3529_p5), %v2941_v48, 7 }
 0xf5d   : > { %v3624_v50 = vpop.f32.mrb[29].mxu1 }
 0xf5e   : > { %2950 = vst.msk [vmem:[#allocation2 + $0x28] sm:$0xff] %vm1338_vm1, %v2942_v47  ;;  %v3625_v2 = vadd.f32 %v3624_v50, %v3623_v49  ;;  %v3626_v57 = vpop.f32.mrb[30].mxu1  ;;  %v2961_v6 = vsel (!%p3529_p5), %vm2960_vm3, %v2937_v15, %v2958_v58 }
 0xf5f   : > { %v3627_v52 = vpop.f32.mrb[31].mxu1  ;;  %v2965_v39 = vsel (!%p3529_p5), %vm2964_vm4, %v2961_v6, 0.0 }
 0xf60   : > { %v2931_v63 = vadd.f32 %v3625_v2, %v3512_v13  ;;  %v3628_v5 = vadd.f32 %v3627_v52, %v3626_v57  ;;  %2956 = sbr.rel (%p3529_p5) target bundleno = 4610 (0x1202), region = 168  ;;  %2966 = vadd.xlane.f32.xlu0 (!%p3529_p5), %v2965_v39 }
 0xf62   : > { %v2943_v23 = vadd.f32 %v2931_v63, %v6088_v30  ;;  %v2934_v62 = vadd.f32 %v3628_v5, %v3512_v13 }
 0xf64   : > { %2951 = vst.msk [vmem:[#allocation2 + $0x30] sm:$0xff] %vm1338_vm1, %v2943_v23  ;;  %v2944_v0 = vadd.f32 %v2934_v62, %v6094_v27  ;;  %v4220_v27 = vld [vmem:[#allocation28 + $0x8] sm:$0xff] (!%p3529_p5)  }
 0xf65   : > { %3717 = vmatpush3.bf16.msra.mxu0 (!%p3529_p5), %v4220_v27 }
 0xf66   : > { %2952 = vst.msk [vmem:[#allocation2 + $0x38] sm:$0xff] %vm1338_vm1, %v2944_v0  ;;  %3718 = vmatprep.subr.bf16.mxu0 (!%p3529_p5), %v4849_v34 }
 0xf69   : > { %3719 = vmatpush3.bf16.msra.mxu0 %v4221_v56 }
 0xf6a   : > { %3720 = vmatprep.subr.bf16.mxu0 %v4849_v34 }
 0xf6d   : > { %3721 = vmatpush3.bf16.msra.mxu0 %v4222_v35 }
 0xfed   : > { %v2967_v45 = vpop.xlane.xlu0 %2966 }
 0xfee   : > { %v2968_v11 = vmul.f32 0.015625, %v2967_v45 }
 0xff0   : > { %v2969_v14 = vsub.f32 %v2961_v6, %v2968_v11 }
 0xff2   : > { %v2970_v30 = vmul.f32 %v2969_v14, %v2969_v14 }
 0xff4   : > { %v2971_v10 = vsel %vm2964_vm4, %v2970_v30, 0.0 }
 0xff5   : > { %2972 = vadd.xlane.f32.xlu0 %v2971_v10 }
0x1082   : > { %v2973_v18 = vpop.xlane.xlu0 %2972 }
0x1083   : > { %v2974_v22 = vmul.f32 0.015625, %v2973_v18 }
0x1085   : > { %v2975_v1 = vadd.f32 1e-05, %v2974_v22 }
0x1087   : > { %4223 = vrsqrt.f32 %v2975_v1 }
0x1091   : > { %v4224_v37 = vpop.eup %4223 }
0x1092   : > { %v2977_v8 = vmul.f32 %v4224_v37, %v2969_v14 }
0x1094   : > { %v2982_v40 = vmul.f32 %v3530_v12, %v2977_v8 }
0x1096   : > { %v2987_v32 = vadd.f32 %v3531_v26, %v2982_v40 }
0x1098   : > { %v2996_v38 = vpack.c.bf16 %v2987_v32, %v2987_v32 }
0x109a   : > { %3723 = vmatmul.mubr.msk.bf16.vlgmr.msra.gmra.mrb[0].mxu0 %vm1338_vm1, %v2996_v38 }
0x116d   : > { %v3058_v13 = vpop.f32.mrb[0].mxu0 }
0x116e   : > { %v3071_v19 = vmul.f32 %v3537_v33, %v3058_v13  ;;  %v3724_v17 = vpop.f32.mrb[1].mxu0 }
0x116f   : > { %v3061_v25 = vpop.f32.mrb[2].mxu0 }
0x1170   : > { %v3725_v59 = vpop.f32.mrb[3].mxu0  ;;  %v3073_v4 = vsel %vm3072_vm6, %v3071_v19, 0.0 }
0x1171   : > { %3074 = vadd.xlane.f32.xlu1 %v3073_v4 }
0x11fe   : > { %v3075_v15 = vpop.xlane.xlu1 %3074 }
0x11ff   : > { %v3083_v41 = vadd.f32 %v3538_v60, %v3075_v15 }
0x1201   : > { %3085 = vst.msk [vmem:[#allocation31] sm:$0x3] %vm3084_vm7, %v3083_v41 }
0x1202 PF: > { %p3882_p9 = scmp.eq.s32.totalorder %s4971_s20, 1  ;;  %s4851_s2 = smov [#allocation31]  }
0x1203   : > { %s3093_s11 = sshll.u32 %s4851_s2, 4  ;;  %s3094_s11 = int_to_ptr.vmem [resolvable:$true] %s3093_s11 }
0x1204   : > { %s4719_s5 = scalar_lea.vmem %s3094_s11, 32  ;;  %p4726_p4 = scmp.lt.s32.totalorder %s3094_s11, %s3094_s11 }
0x1205   : > { %p4720_p1 = scmp.ne.s32.totalorder %s3094_s11, %s4719_s5  ;;  %p4727_p7 = scmp.lt.s32.totalorder %s4719_s5, %s4719_s5 }
0x1207   : > { %p4721_p10 = pnand %p4720_p1, %p3882_p9  ;;  %p4728_p2 = por %p4727_p7, %p4726_p4 }
0x1209   : > { %p4722_p12 = pneg %p4721_p10 }
0x120b   : > { %p4729_p13 = pnand %p4728_p2, %p4722_p12 }
0x120d   : > { %4732 = shalt.err (!%p4729_p13)
}
0x120e   : > { %s6432_s12 = sld [smem:[#allocation61_spill]] }
0x1214   : > { %s4733_s3 = scalar_lea.hbm %s6432_s12, 32 }
0x1215   : > { %p4734_p6 = scmp.ne.s32.totalorder %s6432_s12, %s4733_s3  ;;  %p4739_p0 = scmp.lt.u32.totalorder %s4733_s3, %s6432_s12 }
0x1217   : > { %p4735_p8 = pnand %p4734_p6, %p3882_p9 }
0x1219   : > { %p4736_p11 = pneg %p4735_p8 }
0x121b   : > { %p4741_p3 = pnand %p4739_p0, %p4736_p11 }
0x121d   : > { %4744 = shalt.err (!%p4741_p3)
}
0x121e   : > { %3809 = dma.vmem_to_hbm [thread:$0]  (%p3882_p9), %s3094_s11, 32, %s6432_s12, [#allocation6]  }
0x121f   : > { %4802 = dma.done.wait (%p3882_p9), [#allocation6], 32  }
0x1220   : > { %4804 = vsyncadd (%p3882_p9), [#allocation6], 4294967264 }
0x1221 PF: > { %s6433_s24 = sld [smem:[#allocation44_spill]]  ;;  %p47_p5 = scmp.ge.s32.totalorder %s5095_s8, 4  }
0x1222   : > { %s6434_s29 = smov %s4811_s30  ;;  %s6435_s30 = smov %s4815_s17 }
0x1223   : > { %s6437_s0 = smov %s5095_s8  ;;  %49 = sbr.rel (!%p47_p5) target bundleno = 34 (0x22), region = 266 }
0x1227   : > { %s6436_s17 = smov %s6433_s24 }
0x122a   :  { %3106 = vsyncpa [#allocation5], 1 }
0x122b   :  { %3108 = vsyncpa [#allocation5 + $0x1], 1 }
0x122c   :  { %3109 = vsyncpa [#allocation8], 1 }
0x122d   :  { %3110 = vsyncpa [#allocation11], 1 }
0x122e   :  { %3111 = vsyncpa [#allocation14], 1 }
0x122f   :  { %3113 = vsyncpa [#allocation14 + $0x1], 1 }
0x1230   :  { %3114 = vsyncpa [#allocation17], 1 }
0x1231   :  { %3116 = vsyncpa [#allocation17 + $0x1], 1 }
0x1232   :  { %3117 = vsyncpa [#allocation20], 1 }
0x1233   :  { %3119 = vsyncpa [#allocation20 + $0x1], 1 }
0x1234   :  { %3120 = vsyncpa [#allocation23], 1 }
0x1235   :  { %3122 = vsyncpa [#allocation23 + $0x1], 1 }
0x1236   :  { %3123 = vsyncpa [#allocation26], 1 }
0x1237   :  { %3125 = vsyncpa [#allocation26 + $0x1], 1 }
0x1238   :  { %3126 = vsyncpa [#allocation29], 1 }
0x1239   :  { %3127 = vsyncpa [#allocation6], 1 }
0x123a   :  { %3129 = vsyncpa [#allocation6 + $0x1], 1 }

</bundles_post_ra>
